<compile_context>
chip_gen: v6e
topology: v6e:2x2x1
jax: 0.10.0
libtpu: 0.0.40
codegen_flags: <defaults>
</compile_context>

<pallas_src>
import jax
import jax.numpy as jnp
import numpy as np
from jax import lax
from jax.experimental import pallas as pl
from jax.experimental.pallas import tpu as pltpu

# ---------------- model hyper-parameters (consistent with GPS.__init__) -----------
CHANNELS = 32          # channels
PE_DIM = 8             # pe_dim
NUM_LAYERS = 2         # num_layers
HEADS = 4              # GPSConv heads
BN_EPS = 1e-5

# rows of the packed per-layer vector-parameter block vecs[l] ([13, 128] f32)
R_B1, R_B2, R_BQKV, R_BO = 0, 1, 2, 3
R_BN1S, R_BN1B, R_BN2S, R_BN2B = 4, 5, 6, 7
R_B3, R_B4, R_BN3S, R_BN3B = 8, 9, 10, 11
R_ENCB = 12            # encoder bias (stored once, in the layer-0 slot)


# ---------------------------------------------------------------------------------
# Fused Pallas kernel: encoder -> 2x GPSConv -> global_add_pool
# ---------------------------------------------------------------------------------
def gps_fused_kernel(xpe_ref, eattr_ref, src_oh_ref, dst_oh_t_ref, batch_oh_ref,
                     segc_ref, segr_ref, enc_ref, vecs_ref, mats_ref, wide_ref,
                     out_ref):
    f32, bf16 = jnp.float32, jnp.bfloat16
    C = CHANNELS
    C2 = 2 * C
    D = C // HEADS

    # ---- encoder: block-diagonal [node_lin || pe_lin o pe_norm] as one bf16 matmul
    encp = enc_ref[...]                                    # [36, C] bf16
    enc_w = encp[0:29, :]                                  # rows 0..28: encoder weight
    etab = encp[32:36, :]                                  # rows 32..35: Embedding(4, C)
    enc_b = vecs_ref[0][R_ENCB:R_ENCB + 1, :C]             # [1, C] f32
    h = jnp.dot(xpe_ref[...], enc_w, preferred_element_type=f32) + enc_b    # [N, C]

    # ---- edge_emb(argmax(edge_attr, 1)): VPU first-argmax one-hot, then [E,4]@[4,C]
    ea = eattr_ref[...]                                    # [E, 4] f32 (exact ties)
    maxv = jnp.max(ea, axis=1, keepdims=True)
    cols = lax.broadcasted_iota(jnp.int32, ea.shape, 1)
    first = jnp.min(jnp.where(ea >= maxv, cols, ea.shape[1]), axis=1, keepdims=True)
    onehot = (cols == first).astype(bf16)                  # torch.argmax first-occurrence
    eemb = jnp.dot(onehot, etab, preferred_element_type=f32)                # [E, C]

    src_oh = src_oh_ref[...]                               # [E, N] bf16 (exact 0/1)
    dst_oh_t = dst_oh_t_ref[...]                           # [N, E] bf16
    batch_oh = batch_oh_ref[...]                           # [B, N] bf16

    # ---- same-graph additive attention bias built in-kernel (no N^2 DMA) ----
    mask_bias = jnp.where(segc_ref[...] == segr_ref[...], 0.0, -1e30)       # [N, N] f32

    # ---- statically unrolled GPSConv layers (packed params, indexed by l) ----
    for l in range(NUM_LAYERS):
        vp = vecs_ref[l]            # [13, 128] f32 : packed small vector params
        wm = mats_ref[l]            # [5C,  C ] bf16: [w1; w2; wo; w4]
        ww = wide_ref[l]            # [2C, 3C ] bf16: [wqkv(Q pre-scaled); w3 | 0]
        w1, w2 = wm[0:C, :], wm[C:2 * C, :]
        wo, w4 = wm[2 * C:3 * C, :], wm[3 * C:5 * C, :]
        wqkv, w3 = ww[0:C, :], ww[C:2 * C, 0:C2]
        b1, b2 = vp[R_B1:R_B1 + 1, :C], vp[R_B2:R_B2 + 1, :C]
        bqkv, bo = vp[R_BQKV:R_BQKV + 1, :3 * C], vp[R_BO:R_BO + 1, :C]
        bn1s, bn1b = vp[R_BN1S:R_BN1S + 1, :C], vp[R_BN1B:R_BN1B + 1, :C]
        bn2s, bn2b = vp[R_BN2S:R_BN2S + 1, :C], vp[R_BN2B:R_BN2B + 1, :C]
        b3, b4 = vp[R_B3:R_B3 + 1, :C2], vp[R_B4:R_B4 + 1, :C]
        bn3s, bn3b = vp[R_BN3S:R_BN3S + 1, :C], vp[R_BN3B:R_BN3B + 1, :C]

        x = h                       # f32 state; bf16 only at MXU operand sites
        xb = x.astype(bf16)

        # local branch: GINEConv(nn = Linear->ReLU->Linear), aggr='add', eps=0
        x_j = jnp.dot(src_oh, xb, preferred_element_type=f32)          # gather x[src]
        msg = jnp.maximum(x_j + eemb, 0.0)                             # (x_j + e).relu()
        agg = jnp.dot(dst_oh_t, msg.astype(bf16), preferred_element_type=f32)
        gin = agg + x                                                  # + (1 + eps) * x
        t = jnp.maximum(jnp.dot(gin.astype(bf16), w1, preferred_element_type=f32) + b1, 0.0)
        t = jnp.dot(t.astype(bf16), w2, preferred_element_type=f32) + b2
        h_local = (t + x) * bn1s + bn1b                                # residual + BN (eval)

        # global branch: 4-head MHA over same-graph pairs (Q scale folded in)
        qkv = jnp.dot(xb, wqkv, preferred_element_type=f32) + bqkv     # [N, 3C]
        attn = jnp.zeros_like(x)
        for hh in range(HEADS):                                        # static unroll
            q = qkv[:, hh * D:(hh + 1) * D].astype(bf16)
            k = qkv[:, C + hh * D:C + (hh + 1) * D].astype(bf16)
            vv = qkv[:, 2 * C + hh * D:2 * C + (hh + 1) * D].astype(bf16)
            s = lax.dot_general(q, k, (((1,), (1,)), ((), ())),
                                preferred_element_type=f32)            # [N, N] f32
            s = s + mask_bias
            s = s - jnp.max(s, axis=-1, keepdims=True)
            p = jnp.exp(s)
            p = p * pl.reciprocal(jnp.sum(p, axis=-1, keepdims=True), approx=True)
            pv = jnp.dot(p.astype(bf16), vv, preferred_element_type=f32)   # [N, D]
            # per-head out-proj: sublane-aligned wo row slice, VPU accumulate (no concat)
            attn = attn + jnp.dot(pv.astype(bf16), wo[hh * D:(hh + 1) * D, :],
                                  preferred_element_type=f32)
        h_attn = (attn + bo + x) * bn2s + bn2b                         # residual + BN (eval)

        # combine + feed-forward MLP (C -> 2C -> ReLU -> C) + BN
        out = h_local + h_attn
        ff = jnp.maximum(jnp.dot(out.astype(bf16), w3, preferred_element_type=f32) + b3, 0.0)
        ff = jnp.dot(ff.astype(bf16), w4, preferred_element_type=f32) + b4
        h = (out + ff) * bn3s + bn3b

    # ---- global_add_pool: one-hot(batch) [B, N] @ h [N, C] ----
    out_ref[...] = jnp.dot(batch_oh, h.astype(bf16), preferred_element_type=f32)


# ---------------------------------------------------------------------------------
# Wrapper: fold / pack params host-side, single pallas_call (11 refs, was 27)
# ---------------------------------------------------------------------------------
def gps_forward(x, pe, eattr, src_oh, dst_oh_t, batch, batch_oh, params):
    f32, bf16 = jnp.float32, jnp.bfloat16
    C, PE, L = CHANNELS, PE_DIM, NUM_LAYERS
    B = batch_oh.shape[0]

    # --- fold BatchNorm1d(pe) (eval) into pe_lin, build block-diagonal encoder weight,
    #     pack it with the edge Embedding table (table starts at sublane-aligned row 32).
    w_pe_f = params['w_pe'] * params['pe_scale'].T                 # scale rows of (20, PE)
    b_pe_f = params['pe_shift'] @ params['w_pe'] + params['b_pe']  # (1, PE)
    enc_w = jnp.zeros((29, C), f32)
    enc_w = enc_w.at[:9, :C - PE].set(params['w_node'])
    enc_w = enc_w.at[9:, C - PE:].set(w_pe_f)
    enc_b = jnp.concatenate([params['b_node'], b_pe_f], axis=1)    # (1, C)
    enc_pack = (jnp.zeros((36, C), f32)
                .at[0:29, :].set(enc_w)
                .at[32:36, :].set(params['etab'])).astype(bf16)

    # --- per-layer packs: tiny vectors -> one f32 block, matrices -> two bf16 blocks ---
    scale = 1.0 / float(C // HEADS) ** 0.5

    def row128(vec):
        vec = jnp.reshape(vec, (1, -1)).astype(f32)
        return jnp.pad(vec, ((0, 0), (0, 128 - vec.shape[1])))

    vecs, mats, wide = [], [], []
    for li, lp in enumerate(params['layers']):
        wqkv = lp['wqkv'].at[:, :C].multiply(scale)       # fold 1/sqrt(D) into Q columns
        bqkv = lp['bqkv'].at[:, :C].multiply(scale)
        rows = [lp['b1'], lp['b2'], bqkv, lp['bo'],
                lp['bn1s'], lp['bn1b'], lp['bn2s'], lp['bn2b'],
                lp['b3'], lp['b4'], lp['bn3s'], lp['bn3b'],
                enc_b if li == 0 else jnp.zeros_like(enc_b)]
        vecs.append(jnp.concatenate([row128(r) for r in rows], axis=0))   # [13, 128]
        mats.append(jnp.concatenate([lp['w1'], lp['w2'], lp['wo'], lp['w4']], axis=0))
        wide.append(jnp.concatenate([wqkv, jnp.pad(lp['w3'], ((0, 0), (0, C)))], axis=0))
    vecs = jnp.stack(vecs)                     # [L, 13, 128] f32
    mats = jnp.stack(mats).astype(bf16)        # [L, 5C,  C ] bf16
    wide = jnp.stack(wide).astype(bf16)        # [L, 2C, 3C ] bf16

    seg = batch.astype(f32)                    # per-node graph id
    inputs = [jnp.concatenate([x, pe], axis=1).astype(bf16),              # [N, 29]
              eattr.astype(f32),                                          # [E, 4]
              src_oh.astype(bf16), dst_oh_t.astype(bf16), batch_oh.astype(bf16),
              seg[:, None], seg[None, :],                                 # [N,1], [1,N]
              enc_pack, vecs, mats, wide]

    vmem = pltpu.MemorySpace.VMEM
    return pl.pallas_call(
        gps_fused_kernel,
        out_shape=jax.ShapeDtypeStruct((B, C), f32),
        in_specs=[pl.BlockSpec(memory_space=vmem) for _ in inputs],
        out_specs=pl.BlockSpec(memory_space=vmem),
    )(*inputs)


gps_forward_jit = jax.jit(gps_forward)


# ---------------------------------------------------------------------------------
# Deterministic parameter init (shapes dictated by GPS.__init__ / GPSConv / GINEConv)
# ---------------------------------------------------------------------------------
def init_params(key):
    C, PE = CHANNELS, PE_DIM
    ks = iter(jax.random.split(key, 256))

    def nrm(shape, scale=0.1):
        return (scale * jax.random.normal(next(ks), shape)).astype(jnp.float32)

    def folded_bn(dim):
        g = 1.0 + nrm((1, dim))
        b = nrm((1, dim))
        rm = nrm((1, dim))
        rv = jnp.abs(nrm((1, dim))) + 1.0
        s = g / jnp.sqrt(rv + BN_EPS)
        return s, b - rm * s

    p = {}
    p['w_node'], p['b_node'] = nrm((9, C - PE)), nrm((1, C - PE))     # Linear(9, C-pe)
    p['w_pe'], p['b_pe'] = nrm((20, PE)), nrm((1, PE))                # Linear(20, pe)
    p['pe_scale'], p['pe_shift'] = folded_bn(20)                      # BatchNorm1d(20), eval
    p['etab'] = nrm((4, C))                                           # Embedding(4, C)

    layers = []
    for _ in range(NUM_LAYERS):
        lp = {}
        lp['w1'], lp['b1'] = nrm((C, C)), nrm((1, C))                 # GINE nn Linear 1
        lp['w2'], lp['b2'] = nrm((C, C)), nrm((1, C))                 # GINE nn Linear 2
        lp['wqkv'], lp['bqkv'] = nrm((C, 3 * C)), nrm((1, 3 * C))     # MHA in_proj
        lp['wo'], lp['bo'] = nrm((C, C)), nrm((1, C))                 # MHA out_proj
        lp['bn1s'], lp['bn1b'] = folded_bn(C)                         # norm1 (eval, folded)
        lp['bn2s'], lp['bn2b'] = folded_bn(C)                         # norm2
        lp['bn3s'], lp['bn3b'] = folded_bn(C)                         # norm3
        lp['w3'], lp['b3'] = nrm((C, 2 * C)), nrm((1, 2 * C))         # mlp Linear(C, 2C)
        lp['w4'], lp['b4'] = nrm((2 * C, C)), nrm((1, C))             # mlp Linear(2C, C)
        layers.append(lp)
    p['layers'] = layers
    return p


# ---------------------------------------------------------------------------------
# Pure-JAX reference (unfolded math).  `matmul_dtype` lets us compare the kernel both
# against an operand-precision-matched (bf16) reference and against full f32.
# ---------------------------------------------------------------------------------
def reference_forward(x, pe, eattr, src_oh, dst_oh_t, mask, batch_oh, params,
                      matmul_dtype=jnp.float32):
    C, D = CHANNELS, CHANNELS // HEADS

    def mm(a, b):
        return jnp.dot(a.astype(matmul_dtype), b.astype(matmul_dtype),
                       preferred_element_type=jnp.float32)

    pe_n = pe * params['pe_scale'] + params['pe_shift']
    h = jnp.concatenate([mm(x, params['w_node']) + params['b_node'],
                         mm(pe_n, params['w_pe']) + params['b_pe']], axis=1)
    eemb = mm(jax.nn.one_hot(jnp.argmax(eattr, axis=1), 4, dtype=jnp.float32),
              params['etab'])
    for lp in params['layers']:
        x_in = h
        msg = jnp.maximum(mm(src_oh, x_in) + eemb, 0.0)
        gin = mm(dst_oh_t, msg) + x_in
        t = mm(jnp.maximum(mm(gin, lp['w1']) + lp['b1'], 0.0), lp['w2']) + lp['b2']
        h_local = (t + x_in) * lp['bn1s'] + lp['bn1b']
        qkv = mm(x_in, lp['wqkv']) + lp['bqkv']
        proj = jnp.zeros_like(x_in)
        for hh in range(HEADS):
            q = qkv[:, hh * D:(hh + 1) * D] / (D ** 0.5)
            k = qkv[:, C + hh * D:C + (hh + 1) * D]
            v = qkv[:, 2 * C + hh * D:2 * C + (hh + 1) * D]
            s = jnp.where(mask > 0.5, mm(q, k.T), -1e30)
            s = s - jnp.max(s, axis=-1, keepdims=True)
            p_ = jnp.exp(s)
            p_ = p_ / jnp.sum(p_, axis=-1, keepdims=True)
            proj = proj + mm(mm(p_, v), lp['wo'][hh * D:(hh + 1) * D, :])
        h_attn = (proj + lp['bo'] + x_in) * lp['bn2s'] + lp['bn2b']
        out = h_local + h_attn
        f = mm(jnp.maximum(mm(out, lp['w3']) + lp['b3'], 0.0), lp['w4']) + lp['b4']
        h = (out + f) * lp['bn3s'] + lp['bn3b']
    return mm(batch_oh, h)


# ---------------------------------------------------------------------------------
if __name__ == "__main__":
    key = jax.random.PRNGKey(0)
    k_x, k_pe, k_ea, k_e0, k_e1, k_e2, k_e3, k_p = jax.random.split(key, 8)

    B_GRAPHS, N_PER, E_PER = 2, 12, 24
    N, E = B_GRAPHS * N_PER, B_GRAPHS * E_PER               # 24 nodes, 48 edges

    # data.x: 9 categorical-ish features (forward does .float())
    x = jax.random.randint(k_x, (N, 9), 0, 9).astype(jnp.float32)
    pe = jax.random.normal(k_pe, (N, 20), jnp.float32)
    edge_attr = jax.random.normal(k_ea, (E, 4), jnp.float32)

    # edges stay within their own graph
    src = jnp.concatenate([jax.random.randint(k_e0, (E_PER,), 0, N_PER),
                           jax.random.randint(k_e1, (E_PER,), 0, N_PER) + N_PER])
    dst = jnp.concatenate([jax.random.randint(k_e2, (E_PER,), 0, N_PER),
                           jax.random.randint(k_e3, (E_PER,), 0, N_PER) + N_PER])
    batch = jnp.concatenate([jnp.zeros(N_PER, jnp.int32),
                             jnp.ones(N_PER, jnp.int32)])            # [N]

    # index glue: dense selector matrices (exact 0/1, cast to bf16 inside the wrapper)
    src_oh = jax.nn.one_hot(src, N, dtype=jnp.float32)                # [E, N]
    dst_oh_t = jax.nn.one_hot(dst, N, dtype=jnp.float32).T            # [N, E]
    batch_oh = jax.nn.one_hot(batch, B_GRAPHS, dtype=jnp.float32).T   # [B, N]
    mask = (batch[:, None] == batch[None, :]).astype(jnp.float32)     # reference only

    params = init_params(k_p)

    out = gps_forward_jit(x, pe, edge_attr, src_oh, dst_oh_t, batch, batch_oh, params)
    out = jax.block_until_ready(out)

    # (1) structural check vs a reference using the same bf16-operand / f32-acc matmuls
    ref_bf16 = reference_forward(x, pe, edge_attr, src_oh, dst_oh_t, mask, batch_oh,
                                 params, matmul_dtype=jnp.bfloat16)
    np.testing.assert_allclose(np.asarray(out), np.asarray(ref_bf16), rtol=2e-2, atol=5e-1)

    # (2) sanity check vs the full-f32 reference (bounds the intentional bf16 / approx-
    #     reciprocal drift introduced for MXU efficiency)
    ref_f32 = reference_forward(x, pe, edge_attr, src_oh, dst_oh_t, mask, batch_oh,
                                params, matmul_dtype=jnp.float32)
    np.testing.assert_allclose(np.asarray(out), np.asarray(ref_f32), rtol=1.5e-1, atol=1.5)

    assert out.shape == (B_GRAPHS, CHANNELS) and bool(jnp.all(jnp.isfinite(out)))
    print("KERNEL_OK")
</pallas_src>

<mosaic_0001>
module attributes {stable_mosaic.version = 11 : i64} {
  func.func @gps_fused_kernel(%arg0: memref<24x29xbf16, #tpu.memory_space<vmem>>, %arg1: memref<48x4xf32, #tpu.memory_space<vmem>>, %arg2: memref<48x24xbf16, #tpu.memory_space<vmem>>, %arg3: memref<24x48xbf16, #tpu.memory_space<vmem>>, %arg4: memref<2x24xbf16, #tpu.memory_space<vmem>>, %arg5: memref<24x1xf32, #tpu.memory_space<vmem>>, %arg6: memref<1x24xf32, #tpu.memory_space<vmem>>, %arg7: memref<36x32xbf16, #tpu.memory_space<vmem>>, %arg8: memref<2x13x128xf32, #tpu.memory_space<vmem>>, %arg9: memref<2x160x32xbf16, #tpu.memory_space<vmem>>, %arg10: memref<2x64x96xbf16, #tpu.memory_space<vmem>>, %arg11: memref<2x32xf32, #tpu.memory_space<vmem>>) attributes {dimension_semantics = [], scalar_prefetch = 0 : i64, scratch_operands = 0 : i64, tpu.core_type = #tpu.core_type<tc>} {
    %c0 = arith.constant 0 : index
    %c0_0 = arith.constant 0 : index
    %0 = vector.load %arg7[%c0, %c0_0] : memref<36x32xbf16, #tpu.memory_space<vmem>>, vector<36x32xbf16>
    %1 = vector.extract_strided_slice %0 {offsets = [0, 0], sizes = [29, 32], strides = [1, 1]} : vector<36x32xbf16> to vector<29x32xbf16>
    %2 = vector.extract_strided_slice %0 {offsets = [32, 0], sizes = [4, 32], strides = [1, 1]} : vector<36x32xbf16> to vector<4x32xbf16>
    %c0_1 = arith.constant 0 : index
    %c0_2 = arith.constant 0 : index
    %c0_3 = arith.constant 0 : index
    %3 = vector.load %arg8[%c0_1, %c0_2, %c0_3] : memref<2x13x128xf32, #tpu.memory_space<vmem>>, vector<1x13x128xf32>
    %4 = vector.shape_cast %3 : vector<1x13x128xf32> to vector<13x128xf32>
    %5 = vector.extract_strided_slice %4 {offsets = [12, 0], sizes = [1, 32], strides = [1, 1]} : vector<13x128xf32> to vector<1x32xf32>
    %c0_4 = arith.constant 0 : index
    %c0_5 = arith.constant 0 : index
    %6 = vector.load %arg0[%c0_4, %c0_5] : memref<24x29xbf16, #tpu.memory_space<vmem>>, vector<24x29xbf16>
    %cst = arith.constant dense<0.000000e+00> : vector<24x32xf32>
    %7 = tpu.matmul %6, %1, %cst {dimension_numbers = #tpu.dot_dimension_numbers<[1], [0], [0], [1], [0, 0, 1, 1], [], []>} : vector<24x29xbf16>, vector<29x32xbf16>, vector<24x32xf32> -> vector<24x32xf32>
    %8 = vector.broadcast %5 : vector<1x32xf32> to vector<24x32xf32>
    %9 = arith.addf %7, %8 : vector<24x32xf32>
    %c0_6 = arith.constant 0 : index
    %c0_7 = arith.constant 0 : index
    %10 = vector.load %arg1[%c0_6, %c0_7] : memref<48x4xf32, #tpu.memory_space<vmem>>, vector<48x4xf32>
    %cst_8 = arith.constant dense<0xFF800000> : vector<48xf32>
    %11 = vector.multi_reduction <maximumf>, %10, %cst_8 [1] : vector<48x4xf32> to vector<48xf32>
    %12 = vector.shape_cast %11 : vector<48xf32> to vector<48x1xf32>
    %13 = tpu.iota {dimensions = array<i32: 1>} : vector<48x4xi32>
    %14 = vector.broadcast %12 : vector<48x1xf32> to vector<48x4xf32>
    %15 = arith.cmpf oge, %10, %14 : vector<48x4xf32>
    %c4_i32 = arith.constant 4 : i32
    %16 = vector.broadcast %c4_i32 : i32 to vector<48x4xi32>
    %17 = arith.select %15, %13, %16 : vector<48x4xi1>, vector<48x4xi32>
    %cst_9 = arith.constant dense<2147483647> : vector<48xi32>
    %18 = vector.multi_reduction <minsi>, %17, %cst_9 [1] : vector<48x4xi32> to vector<48xi32>
    %19 = vector.shape_cast %18 : vector<48xi32> to vector<48x1xi32>
    %20 = vector.broadcast %19 : vector<48x1xi32> to vector<48x4xi32>
    %21 = arith.cmpi eq, %13, %20 : vector<48x4xi32>
    %22 = arith.extui %21 : vector<48x4xi1> to vector<48x4xi32>
    %23 = arith.sitofp %22 : vector<48x4xi32> to vector<48x4xf32>
    %24 = arith.truncf %23 : vector<48x4xf32> to vector<48x4xbf16>
    %cst_10 = arith.constant dense<0.000000e+00> : vector<48x32xf32>
    %25 = tpu.matmul %24, %2, %cst_10 {dimension_numbers = #tpu.dot_dimension_numbers<[1], [0], [0], [1], [0, 0, 1, 1], [], []>} : vector<48x4xbf16>, vector<4x32xbf16>, vector<48x32xf32> -> vector<48x32xf32>
    %c0_11 = arith.constant 0 : index
    %c0_12 = arith.constant 0 : index
    %26 = vector.load %arg2[%c0_11, %c0_12] : memref<48x24xbf16, #tpu.memory_space<vmem>>, vector<48x24xbf16>
    %c0_13 = arith.constant 0 : index
    %c0_14 = arith.constant 0 : index
    %27 = vector.load %arg3[%c0_13, %c0_14] : memref<24x48xbf16, #tpu.memory_space<vmem>>, vector<24x48xbf16>
    %c0_15 = arith.constant 0 : index
    %c0_16 = arith.constant 0 : index
    %28 = vector.load %arg4[%c0_15, %c0_16] : memref<2x24xbf16, #tpu.memory_space<vmem>>, vector<2x24xbf16>
    %c0_17 = arith.constant 0 : index
    %c0_18 = arith.constant 0 : index
    %29 = vector.load %arg5[%c0_17, %c0_18] : memref<24x1xf32, #tpu.memory_space<vmem>>, vector<24x1xf32>
    %c0_19 = arith.constant 0 : index
    %c0_20 = arith.constant 0 : index
    %30 = vector.load %arg6[%c0_19, %c0_20] : memref<1x24xf32, #tpu.memory_space<vmem>>, vector<1x24xf32>
    %31 = vector.broadcast %29 : vector<24x1xf32> to vector<24x24xf32>
    %32 = vector.broadcast %30 : vector<1x24xf32> to vector<24x24xf32>
    %33 = arith.cmpf oeq, %31, %32 : vector<24x24xf32>
    %cst_21 = arith.constant 0.000000e+00 : f32
    %cst_22 = arith.constant -1.000000e+30 : f32
    %34 = vector.broadcast %cst_21 : f32 to vector<24x24xf32>
    %35 = vector.broadcast %cst_22 : f32 to vector<24x24xf32>
    %36 = arith.select %33, %34, %35 : vector<24x24xi1>, vector<24x24xf32>
    %c0_23 = arith.constant 0 : index
    %c0_24 = arith.constant 0 : index
    %c0_25 = arith.constant 0 : index
    %37 = vector.load %arg8[%c0_23, %c0_24, %c0_25] : memref<2x13x128xf32, #tpu.memory_space<vmem>>, vector<1x13x128xf32>
    %38 = vector.shape_cast %37 : vector<1x13x128xf32> to vector<13x128xf32>
    %c0_26 = arith.constant 0 : index
    %c0_27 = arith.constant 0 : index
    %c0_28 = arith.constant 0 : index
    %39 = vector.load %arg9[%c0_26, %c0_27, %c0_28] : memref<2x160x32xbf16, #tpu.memory_space<vmem>>, vector<1x160x32xbf16>
    %40 = vector.shape_cast %39 : vector<1x160x32xbf16> to vector<160x32xbf16>
    %c0_29 = arith.constant 0 : index
    %c0_30 = arith.constant 0 : index
    %c0_31 = arith.constant 0 : index
    %41 = vector.load %arg10[%c0_29, %c0_30, %c0_31] : memref<2x64x96xbf16, #tpu.memory_space<vmem>>, vector<1x64x96xbf16>
    %42 = vector.shape_cast %41 : vector<1x64x96xbf16> to vector<64x96xbf16>
    %43 = vector.extract_strided_slice %40 {offsets = [0, 0], sizes = [32, 32], strides = [1, 1]} : vector<160x32xbf16> to vector<32x32xbf16>
    %44 = vector.extract_strided_slice %40 {offsets = [32, 0], sizes = [32, 32], strides = [1, 1]} : vector<160x32xbf16> to vector<32x32xbf16>
    %45 = vector.extract_strided_slice %40 {offsets = [64, 0], sizes = [32, 32], strides = [1, 1]} : vector<160x32xbf16> to vector<32x32xbf16>
    %46 = vector.extract_strided_slice %40 {offsets = [96, 0], sizes = [64, 32], strides = [1, 1]} : vector<160x32xbf16> to vector<64x32xbf16>
    %47 = vector.extract_strided_slice %42 {offsets = [0, 0], sizes = [32, 96], strides = [1, 1]} : vector<64x96xbf16> to vector<32x96xbf16>
    %48 = vector.extract_strided_slice %42 {offsets = [32, 0], sizes = [32, 64], strides = [1, 1]} : vector<64x96xbf16> to vector<32x64xbf16>
    %49 = vector.extract_strided_slice %38 {offsets = [0, 0], sizes = [1, 32], strides = [1, 1]} : vector<13x128xf32> to vector<1x32xf32>
    %50 = vector.extract_strided_slice %38 {offsets = [1, 0], sizes = [1, 32], strides = [1, 1]} : vector<13x128xf32> to vector<1x32xf32>
    %51 = vector.extract_strided_slice %38 {offsets = [2, 0], sizes = [1, 96], strides = [1, 1]} : vector<13x128xf32> to vector<1x96xf32>
    %52 = vector.extract_strided_slice %38 {offsets = [3, 0], sizes = [1, 32], strides = [1, 1]} : vector<13x128xf32> to vector<1x32xf32>
    %53 = vector.extract_strided_slice %38 {offsets = [4, 0], sizes = [1, 32], strides = [1, 1]} : vector<13x128xf32> to vector<1x32xf32>
    %54 = vector.extract_strided_slice %38 {offsets = [5, 0], sizes = [1, 32], strides = [1, 1]} : vector<13x128xf32> to vector<1x32xf32>
    %55 = vector.extract_strided_slice %38 {offsets = [6, 0], sizes = [1, 32], strides = [1, 1]} : vector<13x128xf32> to vector<1x32xf32>
    %56 = vector.extract_strided_slice %38 {offsets = [7, 0], sizes = [1, 32], strides = [1, 1]} : vector<13x128xf32> to vector<1x32xf32>
    %57 = vector.extract_strided_slice %38 {offsets = [8, 0], sizes = [1, 64], strides = [1, 1]} : vector<13x128xf32> to vector<1x64xf32>
    %58 = vector.extract_strided_slice %38 {offsets = [9, 0], sizes = [1, 32], strides = [1, 1]} : vector<13x128xf32> to vector<1x32xf32>
    %59 = vector.extract_strided_slice %38 {offsets = [10, 0], sizes = [1, 32], strides = [1, 1]} : vector<13x128xf32> to vector<1x32xf32>
    %60 = vector.extract_strided_slice %38 {offsets = [11, 0], sizes = [1, 32], strides = [1, 1]} : vector<13x128xf32> to vector<1x32xf32>
    %61 = arith.truncf %9 : vector<24x32xf32> to vector<24x32xbf16>
    %cst_32 = arith.constant dense<0.000000e+00> : vector<48x32xf32>
    %62 = tpu.matmul %26, %61, %cst_32 {dimension_numbers = #tpu.dot_dimension_numbers<[1], [0], [0], [1], [0, 0, 1, 1], [], []>} : vector<48x24xbf16>, vector<24x32xbf16>, vector<48x32xf32> -> vector<48x32xf32>
    %63 = arith.addf %62, %25 : vector<48x32xf32>
    %cst_33 = arith.constant 0.000000e+00 : f32
    %64 = vector.broadcast %cst_33 : f32 to vector<48x32xf32>
    %65 = arith.maximumf %63, %64 : vector<48x32xf32>
    %66 = arith.truncf %65 : vector<48x32xf32> to vector<48x32xbf16>
    %cst_34 = arith.constant dense<0.000000e+00> : vector<24x32xf32>
    %67 = tpu.matmul %27, %66, %cst_34 {dimension_numbers = #tpu.dot_dimension_numbers<[1], [0], [0], [1], [0, 0, 1, 1], [], []>} : vector<24x48xbf16>, vector<48x32xbf16>, vector<24x32xf32> -> vector<24x32xf32>
    %68 = arith.addf %67, %9 : vector<24x32xf32>
    %69 = arith.truncf %68 : vector<24x32xf32> to vector<24x32xbf16>
    %cst_35 = arith.constant dense<0.000000e+00> : vector<24x32xf32>
    %70 = tpu.matmul %69, %43, %cst_35 {dimension_numbers = #tpu.dot_dimension_numbers<[1], [0], [0], [1], [0, 0, 1, 1], [], []>} : vector<24x32xbf16>, vector<32x32xbf16>, vector<24x32xf32> -> vector<24x32xf32>
    %71 = vector.broadcast %49 : vector<1x32xf32> to vector<24x32xf32>
    %72 = arith.addf %70, %71 : vector<24x32xf32>
    %cst_36 = arith.constant 0.000000e+00 : f32
    %73 = vector.broadcast %cst_36 : f32 to vector<24x32xf32>
    %74 = arith.maximumf %72, %73 : vector<24x32xf32>
    %75 = arith.truncf %74 : vector<24x32xf32> to vector<24x32xbf16>
    %cst_37 = arith.constant dense<0.000000e+00> : vector<24x32xf32>
    %76 = tpu.matmul %75, %44, %cst_37 {dimension_numbers = #tpu.dot_dimension_numbers<[1], [0], [0], [1], [0, 0, 1, 1], [], []>} : vector<24x32xbf16>, vector<32x32xbf16>, vector<24x32xf32> -> vector<24x32xf32>
    %77 = vector.broadcast %50 : vector<1x32xf32> to vector<24x32xf32>
    %78 = arith.addf %76, %77 : vector<24x32xf32>
    %79 = arith.addf %78, %9 : vector<24x32xf32>
    %80 = vector.broadcast %53 : vector<1x32xf32> to vector<24x32xf32>
    %81 = arith.mulf %79, %80 : vector<24x32xf32>
    %82 = vector.broadcast %54 : vector<1x32xf32> to vector<24x32xf32>
    %83 = arith.addf %81, %82 : vector<24x32xf32>
    %cst_38 = arith.constant dense<0.000000e+00> : vector<24x96xf32>
    %84 = tpu.matmul %61, %47, %cst_38 {dimension_numbers = #tpu.dot_dimension_numbers<[1], [0], [0], [1], [0, 0, 1, 1], [], []>} : vector<24x32xbf16>, vector<32x96xbf16>, vector<24x96xf32> -> vector<24x96xf32>
    %85 = vector.broadcast %51 : vector<1x96xf32> to vector<24x96xf32>
    %86 = arith.addf %84, %85 : vector<24x96xf32>
    %cst_39 = arith.constant 0.000000e+00 : f32
    %87 = vector.broadcast %cst_39 : f32 to vector<24x32xf32>
    %88 = vector.extract_strided_slice %86 {offsets = [0, 0], sizes = [24, 8], strides = [1, 1]} : vector<24x96xf32> to vector<24x8xf32>
    %89 = arith.truncf %88 : vector<24x8xf32> to vector<24x8xbf16>
    %90 = vector.extract_strided_slice %86 {offsets = [0, 32], sizes = [24, 8], strides = [1, 1]} : vector<24x96xf32> to vector<24x8xf32>
    %91 = arith.truncf %90 : vector<24x8xf32> to vector<24x8xbf16>
    %92 = vector.extract_strided_slice %86 {offsets = [0, 64], sizes = [24, 8], strides = [1, 1]} : vector<24x96xf32> to vector<24x8xf32>
    %93 = arith.truncf %92 : vector<24x8xf32> to vector<24x8xbf16>
    %cst_40 = arith.constant dense<0.000000e+00> : vector<24x24xf32>
    %94 = tpu.matmul %89, %91, %cst_40 {dimension_numbers = #tpu.dot_dimension_numbers<[1], [1], [0], [0], [0, 0, 1, 0], [], []>} : vector<24x8xbf16>, vector<24x8xbf16>, vector<24x24xf32> -> vector<24x24xf32>
    %95 = arith.addf %94, %36 : vector<24x24xf32>
    %cst_41 = arith.constant dense<0xFF800000> : vector<24xf32>
    %96 = vector.multi_reduction <maximumf>, %95, %cst_41 [1] : vector<24x24xf32> to vector<24xf32>
    %97 = vector.shape_cast %96 : vector<24xf32> to vector<24x1xf32>
    %98 = vector.broadcast %97 : vector<24x1xf32> to vector<24x24xf32>
    %99 = arith.subf %95, %98 : vector<24x24xf32>
    %100 = math.exp %99 : vector<24x24xf32>
    %cst_42 = arith.constant dense<0.000000e+00> : vector<24xf32>
    %101 = vector.multi_reduction <add>, %100, %cst_42 [1] : vector<24x24xf32> to vector<24xf32>
    %102 = vector.shape_cast %101 : vector<24xf32> to vector<24x1xf32>
    %103 = tpu.reciprocal %102 {approx = true} : vector<24x1xf32> -> vector<24x1xf32>
    %104 = vector.broadcast %103 : vector<24x1xf32> to vector<24x24xf32>
    %105 = arith.mulf %100, %104 : vector<24x24xf32>
    %106 = arith.truncf %105 : vector<24x24xf32> to vector<24x24xbf16>
    %cst_43 = arith.constant dense<0.000000e+00> : vector<24x8xf32>
    %107 = tpu.matmul %106, %93, %cst_43 {dimension_numbers = #tpu.dot_dimension_numbers<[1], [0], [0], [1], [0, 0, 1, 1], [], []>} : vector<24x24xbf16>, vector<24x8xbf16>, vector<24x8xf32> -> vector<24x8xf32>
    %108 = arith.truncf %107 : vector<24x8xf32> to vector<24x8xbf16>
    %109 = vector.extract_strided_slice %45 {offsets = [0, 0], sizes = [8, 32], strides = [1, 1]} : vector<32x32xbf16> to vector<8x32xbf16>
    %cst_44 = arith.constant dense<0.000000e+00> : vector<24x32xf32>
    %110 = tpu.matmul %108, %109, %cst_44 {dimension_numbers = #tpu.dot_dimension_numbers<[1], [0], [0], [1], [0, 0, 1, 1], [], []>} : vector<24x8xbf16>, vector<8x32xbf16>, vector<24x32xf32> -> vector<24x32xf32>
    %111 = arith.addf %87, %110 : vector<24x32xf32>
    %112 = vector.extract_strided_slice %86 {offsets = [0, 8], sizes = [24, 8], strides = [1, 1]} : vector<24x96xf32> to vector<24x8xf32>
    %113 = arith.truncf %112 : vector<24x8xf32> to vector<24x8xbf16>
    %114 = vector.extract_strided_slice %86 {offsets = [0, 40], sizes = [24, 8], strides = [1, 1]} : vector<24x96xf32> to vector<24x8xf32>
    %115 = arith.truncf %114 : vector<24x8xf32> to vector<24x8xbf16>
    %116 = vector.extract_strided_slice %86 {offsets = [0, 72], sizes = [24, 8], strides = [1, 1]} : vector<24x96xf32> to vector<24x8xf32>
    %117 = arith.truncf %116 : vector<24x8xf32> to vector<24x8xbf16>
    %cst_45 = arith.constant dense<0.000000e+00> : vector<24x24xf32>
    %118 = tpu.matmul %113, %115, %cst_45 {dimension_numbers = #tpu.dot_dimension_numbers<[1], [1], [0], [0], [0, 0, 1, 0], [], []>} : vector<24x8xbf16>, vector<24x8xbf16>, vector<24x24xf32> -> vector<24x24xf32>
    %119 = arith.addf %118, %36 : vector<24x24xf32>
    %cst_46 = arith.constant dense<0xFF800000> : vector<24xf32>
    %120 = vector.multi_reduction <maximumf>, %119, %cst_46 [1] : vector<24x24xf32> to vector<24xf32>
    %121 = vector.shape_cast %120 : vector<24xf32> to vector<24x1xf32>
    %122 = vector.broadcast %121 : vector<24x1xf32> to vector<24x24xf32>
    %123 = arith.subf %119, %122 : vector<24x24xf32>
    %124 = math.exp %123 : vector<24x24xf32>
    %cst_47 = arith.constant dense<0.000000e+00> : vector<24xf32>
    %125 = vector.multi_reduction <add>, %124, %cst_47 [1] : vector<24x24xf32> to vector<24xf32>
    %126 = vector.shape_cast %125 : vector<24xf32> to vector<24x1xf32>
    %127 = tpu.reciprocal %126 {approx = true} : vector<24x1xf32> -> vector<24x1xf32>
    %128 = vector.broadcast %127 : vector<24x1xf32> to vector<24x24xf32>
    %129 = arith.mulf %124, %128 : vector<24x24xf32>
    %130 = arith.truncf %129 : vector<24x24xf32> to vector<24x24xbf16>
    %cst_48 = arith.constant dense<0.000000e+00> : vector<24x8xf32>
    %131 = tpu.matmul %130, %117, %cst_48 {dimension_numbers = #tpu.dot_dimension_numbers<[1], [0], [0], [1], [0, 0, 1, 1], [], []>} : vector<24x24xbf16>, vector<24x8xbf16>, vector<24x8xf32> -> vector<24x8xf32>
    %132 = arith.truncf %131 : vector<24x8xf32> to vector<24x8xbf16>
    %133 = vector.extract_strided_slice %45 {offsets = [8, 0], sizes = [8, 32], strides = [1, 1]} : vector<32x32xbf16> to vector<8x32xbf16>
    %cst_49 = arith.constant dense<0.000000e+00> : vector<24x32xf32>
    %134 = tpu.matmul %132, %133, %cst_49 {dimension_numbers = #tpu.dot_dimension_numbers<[1], [0], [0], [1], [0, 0, 1, 1], [], []>} : vector<24x8xbf16>, vector<8x32xbf16>, vector<24x32xf32> -> vector<24x32xf32>
    %135 = arith.addf %111, %134 : vector<24x32xf32>
    %136 = vector.extract_strided_slice %86 {offsets = [0, 16], sizes = [24, 8], strides = [1, 1]} : vector<24x96xf32> to vector<24x8xf32>
    %137 = arith.truncf %136 : vector<24x8xf32> to vector<24x8xbf16>
    %138 = vector.extract_strided_slice %86 {offsets = [0, 48], sizes = [24, 8], strides = [1, 1]} : vector<24x96xf32> to vector<24x8xf32>
    %139 = arith.truncf %138 : vector<24x8xf32> to vector<24x8xbf16>
    %140 = vector.extract_strided_slice %86 {offsets = [0, 80], sizes = [24, 8], strides = [1, 1]} : vector<24x96xf32> to vector<24x8xf32>
    %141 = arith.truncf %140 : vector<24x8xf32> to vector<24x8xbf16>
    %cst_50 = arith.constant dense<0.000000e+00> : vector<24x24xf32>
    %142 = tpu.matmul %137, %139, %cst_50 {dimension_numbers = #tpu.dot_dimension_numbers<[1], [1], [0], [0], [0, 0, 1, 0], [], []>} : vector<24x8xbf16>, vector<24x8xbf16>, vector<24x24xf32> -> vector<24x24xf32>
    %143 = arith.addf %142, %36 : vector<24x24xf32>
    %cst_51 = arith.constant dense<0xFF800000> : vector<24xf32>
    %144 = vector.multi_reduction <maximumf>, %143, %cst_51 [1] : vector<24x24xf32> to vector<24xf32>
    %145 = vector.shape_cast %144 : vector<24xf32> to vector<24x1xf32>
    %146 = vector.broadcast %145 : vector<24x1xf32> to vector<24x24xf32>
    %147 = arith.subf %143, %146 : vector<24x24xf32>
    %148 = math.exp %147 : vector<24x24xf32>
    %cst_52 = arith.constant dense<0.000000e+00> : vector<24xf32>
    %149 = vector.multi_reduction <add>, %148, %cst_52 [1] : vector<24x24xf32> to vector<24xf32>
    %150 = vector.shape_cast %149 : vector<24xf32> to vector<24x1xf32>
    %151 = tpu.reciprocal %150 {approx = true} : vector<24x1xf32> -> vector<24x1xf32>
    %152 = vector.broadcast %151 : vector<24x1xf32> to vector<24x24xf32>
    %153 = arith.mulf %148, %152 : vector<24x24xf32>
    %154 = arith.truncf %153 : vector<24x24xf32> to vector<24x24xbf16>
    %cst_53 = arith.constant dense<0.000000e+00> : vector<24x8xf32>
    %155 = tpu.matmul %154, %141, %cst_53 {dimension_numbers = #tpu.dot_dimension_numbers<[1], [0], [0], [1], [0, 0, 1, 1], [], []>} : vector<24x24xbf16>, vector<24x8xbf16>, vector<24x8xf32> -> vector<24x8xf32>
    %156 = arith.truncf %155 : vector<24x8xf32> to vector<24x8xbf16>
    %157 = vector.extract_strided_slice %45 {offsets = [16, 0], sizes = [8, 32], strides = [1, 1]} : vector<32x32xbf16> to vector<8x32xbf16>
    %cst_54 = arith.constant dense<0.000000e+00> : vector<24x32xf32>
    %158 = tpu.matmul %156, %157, %cst_54 {dimension_numbers = #tpu.dot_dimension_numbers<[1], [0], [0], [1], [0, 0, 1, 1], [], []>} : vector<24x8xbf16>, vector<8x32xbf16>, vector<24x32xf32> -> vector<24x32xf32>
    %159 = arith.addf %135, %158 : vector<24x32xf32>
    %160 = vector.extract_strided_slice %86 {offsets = [0, 24], sizes = [24, 8], strides = [1, 1]} : vector<24x96xf32> to vector<24x8xf32>
    %161 = arith.truncf %160 : vector<24x8xf32> to vector<24x8xbf16>
    %162 = vector.extract_strided_slice %86 {offsets = [0, 56], sizes = [24, 8], strides = [1, 1]} : vector<24x96xf32> to vector<24x8xf32>
    %163 = arith.truncf %162 : vector<24x8xf32> to vector<24x8xbf16>
    %164 = vector.extract_strided_slice %86 {offsets = [0, 88], sizes = [24, 8], strides = [1, 1]} : vector<24x96xf32> to vector<24x8xf32>
    %165 = arith.truncf %164 : vector<24x8xf32> to vector<24x8xbf16>
    %cst_55 = arith.constant dense<0.000000e+00> : vector<24x24xf32>
    %166 = tpu.matmul %161, %163, %cst_55 {dimension_numbers = #tpu.dot_dimension_numbers<[1], [1], [0], [0], [0, 0, 1, 0], [], []>} : vector<24x8xbf16>, vector<24x8xbf16>, vector<24x24xf32> -> vector<24x24xf32>
    %167 = arith.addf %166, %36 : vector<24x24xf32>
    %cst_56 = arith.constant dense<0xFF800000> : vector<24xf32>
    %168 = vector.multi_reduction <maximumf>, %167, %cst_56 [1] : vector<24x24xf32> to vector<24xf32>
    %169 = vector.shape_cast %168 : vector<24xf32> to vector<24x1xf32>
    %170 = vector.broadcast %169 : vector<24x1xf32> to vector<24x24xf32>
    %171 = arith.subf %167, %170 : vector<24x24xf32>
    %172 = math.exp %171 : vector<24x24xf32>
    %cst_57 = arith.constant dense<0.000000e+00> : vector<24xf32>
    %173 = vector.multi_reduction <add>, %172, %cst_57 [1] : vector<24x24xf32> to vector<24xf32>
    %174 = vector.shape_cast %173 : vector<24xf32> to vector<24x1xf32>
    %175 = tpu.reciprocal %174 {approx = true} : vector<24x1xf32> -> vector<24x1xf32>
    %176 = vector.broadcast %175 : vector<24x1xf32> to vector<24x24xf32>
    %177 = arith.mulf %172, %176 : vector<24x24xf32>
    %178 = arith.truncf %177 : vector<24x24xf32> to vector<24x24xbf16>
    %cst_58 = arith.constant dense<0.000000e+00> : vector<24x8xf32>
    %179 = tpu.matmul %178, %165, %cst_58 {dimension_numbers = #tpu.dot_dimension_numbers<[1], [0], [0], [1], [0, 0, 1, 1], [], []>} : vector<24x24xbf16>, vector<24x8xbf16>, vector<24x8xf32> -> vector<24x8xf32>
    %180 = arith.truncf %179 : vector<24x8xf32> to vector<24x8xbf16>
    %181 = vector.extract_strided_slice %45 {offsets = [24, 0], sizes = [8, 32], strides = [1, 1]} : vector<32x32xbf16> to vector<8x32xbf16>
    %cst_59 = arith.constant dense<0.000000e+00> : vector<24x32xf32>
    %182 = tpu.matmul %180, %181, %cst_59 {dimension_numbers = #tpu.dot_dimension_numbers<[1], [0], [0], [1], [0, 0, 1, 1], [], []>} : vector<24x8xbf16>, vector<8x32xbf16>, vector<24x32xf32> -> vector<24x32xf32>
    %183 = arith.addf %159, %182 : vector<24x32xf32>
    %184 = vector.broadcast %52 : vector<1x32xf32> to vector<24x32xf32>
    %185 = arith.addf %183, %184 : vector<24x32xf32>
    %186 = arith.addf %185, %9 : vector<24x32xf32>
    %187 = vector.broadcast %55 : vector<1x32xf32> to vector<24x32xf32>
    %188 = arith.mulf %186, %187 : vector<24x32xf32>
    %189 = vector.broadcast %56 : vector<1x32xf32> to vector<24x32xf32>
    %190 = arith.addf %188, %189 : vector<24x32xf32>
    %191 = arith.addf %83, %190 : vector<24x32xf32>
    %192 = arith.truncf %191 : vector<24x32xf32> to vector<24x32xbf16>
    %cst_60 = arith.constant dense<0.000000e+00> : vector<24x64xf32>
    %193 = tpu.matmul %192, %48, %cst_60 {dimension_numbers = #tpu.dot_dimension_numbers<[1], [0], [0], [1], [0, 0, 1, 1], [], []>} : vector<24x32xbf16>, vector<32x64xbf16>, vector<24x64xf32> -> vector<24x64xf32>
    %194 = vector.broadcast %57 : vector<1x64xf32> to vector<24x64xf32>
    %195 = arith.addf %193, %194 : vector<24x64xf32>
    %cst_61 = arith.constant 0.000000e+00 : f32
    %196 = vector.broadcast %cst_61 : f32 to vector<24x64xf32>
    %197 = arith.maximumf %195, %196 : vector<24x64xf32>
    %198 = arith.truncf %197 : vector<24x64xf32> to vector<24x64xbf16>
    %cst_62 = arith.constant dense<0.000000e+00> : vector<24x32xf32>
    %199 = tpu.matmul %198, %46, %cst_62 {dimension_numbers = #tpu.dot_dimension_numbers<[1], [0], [0], [1], [0, 0, 1, 1], [], []>} : vector<24x64xbf16>, vector<64x32xbf16>, vector<24x32xf32> -> vector<24x32xf32>
    %200 = vector.broadcast %58 : vector<1x32xf32> to vector<24x32xf32>
    %201 = arith.addf %199, %200 : vector<24x32xf32>
    %202 = arith.addf %191, %201 : vector<24x32xf32>
    %203 = vector.broadcast %59 : vector<1x32xf32> to vector<24x32xf32>
    %204 = arith.mulf %202, %203 : vector<24x32xf32>
    %205 = vector.broadcast %60 : vector<1x32xf32> to vector<24x32xf32>
    %206 = arith.addf %204, %205 : vector<24x32xf32>
    %c1 = arith.constant 1 : index
    %c0_63 = arith.constant 0 : index
    %c0_64 = arith.constant 0 : index
    %207 = vector.load %arg8[%c1, %c0_63, %c0_64] : memref<2x13x128xf32, #tpu.memory_space<vmem>>, vector<1x13x128xf32>
    %208 = vector.shape_cast %207 : vector<1x13x128xf32> to vector<13x128xf32>
    %c1_65 = arith.constant 1 : index
    %c0_66 = arith.constant 0 : index
    %c0_67 = arith.constant 0 : index
    %209 = vector.load %arg9[%c1_65, %c0_66, %c0_67] : memref<2x160x32xbf16, #tpu.memory_space<vmem>>, vector<1x160x32xbf16>
    %210 = vector.shape_cast %209 : vector<1x160x32xbf16> to vector<160x32xbf16>
    %c1_68 = arith.constant 1 : index
    %c0_69 = arith.constant 0 : index
    %c0_70 = arith.constant 0 : index
    %211 = vector.load %arg10[%c1_68, %c0_69, %c0_70] : memref<2x64x96xbf16, #tpu.memory_space<vmem>>, vector<1x64x96xbf16>
    %212 = vector.shape_cast %211 : vector<1x64x96xbf16> to vector<64x96xbf16>
    %213 = vector.extract_strided_slice %210 {offsets = [0, 0], sizes = [32, 32], strides = [1, 1]} : vector<160x32xbf16> to vector<32x32xbf16>
    %214 = vector.extract_strided_slice %210 {offsets = [32, 0], sizes = [32, 32], strides = [1, 1]} : vector<160x32xbf16> to vector<32x32xbf16>
    %215 = vector.extract_strided_slice %210 {offsets = [64, 0], sizes = [32, 32], strides = [1, 1]} : vector<160x32xbf16> to vector<32x32xbf16>
    %216 = vector.extract_strided_slice %210 {offsets = [96, 0], sizes = [64, 32], strides = [1, 1]} : vector<160x32xbf16> to vector<64x32xbf16>
    %217 = vector.extract_strided_slice %212 {offsets = [0, 0], sizes = [32, 96], strides = [1, 1]} : vector<64x96xbf16> to vector<32x96xbf16>
    %218 = vector.extract_strided_slice %212 {offsets = [32, 0], sizes = [32, 64], strides = [1, 1]} : vector<64x96xbf16> to vector<32x64xbf16>
    %219 = vector.extract_strided_slice %208 {offsets = [0, 0], sizes = [1, 32], strides = [1, 1]} : vector<13x128xf32> to vector<1x32xf32>
    %220 = vector.extract_strided_slice %208 {offsets = [1, 0], sizes = [1, 32], strides = [1, 1]} : vector<13x128xf32> to vector<1x32xf32>
    %221 = vector.extract_strided_slice %208 {offsets = [2, 0], sizes = [1, 96], strides = [1, 1]} : vector<13x128xf32> to vector<1x96xf32>
    %222 = vector.extract_strided_slice %208 {offsets = [3, 0], sizes = [1, 32], strides = [1, 1]} : vector<13x128xf32> to vector<1x32xf32>
    %223 = vector.extract_strided_slice %208 {offsets = [4, 0], sizes = [1, 32], strides = [1, 1]} : vector<13x128xf32> to vector<1x32xf32>
    %224 = vector.extract_strided_slice %208 {offsets = [5, 0], sizes = [1, 32], strides = [1, 1]} : vector<13x128xf32> to vector<1x32xf32>
    %225 = vector.extract_strided_slice %208 {offsets = [6, 0], sizes = [1, 32], strides = [1, 1]} : vector<13x128xf32> to vector<1x32xf32>
    %226 = vector.extract_strided_slice %208 {offsets = [7, 0], sizes = [1, 32], strides = [1, 1]} : vector<13x128xf32> to vector<1x32xf32>
    %227 = vector.extract_strided_slice %208 {offsets = [8, 0], sizes = [1, 64], strides = [1, 1]} : vector<13x128xf32> to vector<1x64xf32>
    %228 = vector.extract_strided_slice %208 {offsets = [9, 0], sizes = [1, 32], strides = [1, 1]} : vector<13x128xf32> to vector<1x32xf32>
    %229 = vector.extract_strided_slice %208 {offsets = [10, 0], sizes = [1, 32], strides = [1, 1]} : vector<13x128xf32> to vector<1x32xf32>
    %230 = vector.extract_strided_slice %208 {offsets = [11, 0], sizes = [1, 32], strides = [1, 1]} : vector<13x128xf32> to vector<1x32xf32>
    %231 = arith.truncf %206 : vector<24x32xf32> to vector<24x32xbf16>
    %cst_71 = arith.constant dense<0.000000e+00> : vector<48x32xf32>
    %232 = tpu.matmul %26, %231, %cst_71 {dimension_numbers = #tpu.dot_dimension_numbers<[1], [0], [0], [1], [0, 0, 1, 1], [], []>} : vector<48x24xbf16>, vector<24x32xbf16>, vector<48x32xf32> -> vector<48x32xf32>
    %233 = arith.addf %232, %25 : vector<48x32xf32>
    %cst_72 = arith.constant 0.000000e+00 : f32
    %234 = vector.broadcast %cst_72 : f32 to vector<48x32xf32>
    %235 = arith.maximumf %233, %234 : vector<48x32xf32>
    %236 = arith.truncf %235 : vector<48x32xf32> to vector<48x32xbf16>
    %cst_73 = arith.constant dense<0.000000e+00> : vector<24x32xf32>
    %237 = tpu.matmul %27, %236, %cst_73 {dimension_numbers = #tpu.dot_dimension_numbers<[1], [0], [0], [1], [0, 0, 1, 1], [], []>} : vector<24x48xbf16>, vector<48x32xbf16>, vector<24x32xf32> -> vector<24x32xf32>
    %238 = arith.addf %237, %206 : vector<24x32xf32>
    %239 = arith.truncf %238 : vector<24x32xf32> to vector<24x32xbf16>
    %cst_74 = arith.constant dense<0.000000e+00> : vector<24x32xf32>
    %240 = tpu.matmul %239, %213, %cst_74 {dimension_numbers = #tpu.dot_dimension_numbers<[1], [0], [0], [1], [0, 0, 1, 1], [], []>} : vector<24x32xbf16>, vector<32x32xbf16>, vector<24x32xf32> -> vector<24x32xf32>
    %241 = vector.broadcast %219 : vector<1x32xf32> to vector<24x32xf32>
    %242 = arith.addf %240, %241 : vector<24x32xf32>
    %cst_75 = arith.constant 0.000000e+00 : f32
    %243 = vector.broadcast %cst_75 : f32 to vector<24x32xf32>
    %244 = arith.maximumf %242, %243 : vector<24x32xf32>
    %245 = arith.truncf %244 : vector<24x32xf32> to vector<24x32xbf16>
    %cst_76 = arith.constant dense<0.000000e+00> : vector<24x32xf32>
    %246 = tpu.matmul %245, %214, %cst_76 {dimension_numbers = #tpu.dot_dimension_numbers<[1], [0], [0], [1], [0, 0, 1, 1], [], []>} : vector<24x32xbf16>, vector<32x32xbf16>, vector<24x32xf32> -> vector<24x32xf32>
    %247 = vector.broadcast %220 : vector<1x32xf32> to vector<24x32xf32>
    %248 = arith.addf %246, %247 : vector<24x32xf32>
    %249 = arith.addf %248, %206 : vector<24x32xf32>
    %250 = vector.broadcast %223 : vector<1x32xf32> to vector<24x32xf32>
    %251 = arith.mulf %249, %250 : vector<24x32xf32>
    %252 = vector.broadcast %224 : vector<1x32xf32> to vector<24x32xf32>
    %253 = arith.addf %251, %252 : vector<24x32xf32>
    %cst_77 = arith.constant dense<0.000000e+00> : vector<24x96xf32>
    %254 = tpu.matmul %231, %217, %cst_77 {dimension_numbers = #tpu.dot_dimension_numbers<[1], [0], [0], [1], [0, 0, 1, 1], [], []>} : vector<24x32xbf16>, vector<32x96xbf16>, vector<24x96xf32> -> vector<24x96xf32>
    %255 = vector.broadcast %221 : vector<1x96xf32> to vector<24x96xf32>
    %256 = arith.addf %254, %255 : vector<24x96xf32>
    %cst_78 = arith.constant 0.000000e+00 : f32
    %257 = vector.broadcast %cst_78 : f32 to vector<24x32xf32>
    %258 = vector.extract_strided_slice %256 {offsets = [0, 0], sizes = [24, 8], strides = [1, 1]} : vector<24x96xf32> to vector<24x8xf32>
    %259 = arith.truncf %258 : vector<24x8xf32> to vector<24x8xbf16>
    %260 = vector.extract_strided_slice %256 {offsets = [0, 32], sizes = [24, 8], strides = [1, 1]} : vector<24x96xf32> to vector<24x8xf32>
    %261 = arith.truncf %260 : vector<24x8xf32> to vector<24x8xbf16>
    %262 = vector.extract_strided_slice %256 {offsets = [0, 64], sizes = [24, 8], strides = [1, 1]} : vector<24x96xf32> to vector<24x8xf32>
    %263 = arith.truncf %262 : vector<24x8xf32> to vector<24x8xbf16>
    %cst_79 = arith.constant dense<0.000000e+00> : vector<24x24xf32>
    %264 = tpu.matmul %259, %261, %cst_79 {dimension_numbers = #tpu.dot_dimension_numbers<[1], [1], [0], [0], [0, 0, 1, 0], [], []>} : vector<24x8xbf16>, vector<24x8xbf16>, vector<24x24xf32> -> vector<24x24xf32>
    %265 = arith.addf %264, %36 : vector<24x24xf32>
    %cst_80 = arith.constant dense<0xFF800000> : vector<24xf32>
    %266 = vector.multi_reduction <maximumf>, %265, %cst_80 [1] : vector<24x24xf32> to vector<24xf32>
    %267 = vector.shape_cast %266 : vector<24xf32> to vector<24x1xf32>
    %268 = vector.broadcast %267 : vector<24x1xf32> to vector<24x24xf32>
    %269 = arith.subf %265, %268 : vector<24x24xf32>
    %270 = math.exp %269 : vector<24x24xf32>
    %cst_81 = arith.constant dense<0.000000e+00> : vector<24xf32>
    %271 = vector.multi_reduction <add>, %270, %cst_81 [1] : vector<24x24xf32> to vector<24xf32>
    %272 = vector.shape_cast %271 : vector<24xf32> to vector<24x1xf32>
    %273 = tpu.reciprocal %272 {approx = true} : vector<24x1xf32> -> vector<24x1xf32>
    %274 = vector.broadcast %273 : vector<24x1xf32> to vector<24x24xf32>
    %275 = arith.mulf %270, %274 : vector<24x24xf32>
    %276 = arith.truncf %275 : vector<24x24xf32> to vector<24x24xbf16>
    %cst_82 = arith.constant dense<0.000000e+00> : vector<24x8xf32>
    %277 = tpu.matmul %276, %263, %cst_82 {dimension_numbers = #tpu.dot_dimension_numbers<[1], [0], [0], [1], [0, 0, 1, 1], [], []>} : vector<24x24xbf16>, vector<24x8xbf16>, vector<24x8xf32> -> vector<24x8xf32>
    %278 = arith.truncf %277 : vector<24x8xf32> to vector<24x8xbf16>
    %279 = vector.extract_strided_slice %215 {offsets = [0, 0], sizes = [8, 32], strides = [1, 1]} : vector<32x32xbf16> to vector<8x32xbf16>
    %cst_83 = arith.constant dense<0.000000e+00> : vector<24x32xf32>
    %280 = tpu.matmul %278, %279, %cst_83 {dimension_numbers = #tpu.dot_dimension_numbers<[1], [0], [0], [1], [0, 0, 1, 1], [], []>} : vector<24x8xbf16>, vector<8x32xbf16>, vector<24x32xf32> -> vector<24x32xf32>
    %281 = arith.addf %257, %280 : vector<24x32xf32>
    %282 = vector.extract_strided_slice %256 {offsets = [0, 8], sizes = [24, 8], strides = [1, 1]} : vector<24x96xf32> to vector<24x8xf32>
    %283 = arith.truncf %282 : vector<24x8xf32> to vector<24x8xbf16>
    %284 = vector.extract_strided_slice %256 {offsets = [0, 40], sizes = [24, 8], strides = [1, 1]} : vector<24x96xf32> to vector<24x8xf32>
    %285 = arith.truncf %284 : vector<24x8xf32> to vector<24x8xbf16>
    %286 = vector.extract_strided_slice %256 {offsets = [0, 72], sizes = [24, 8], strides = [1, 1]} : vector<24x96xf32> to vector<24x8xf32>
    %287 = arith.truncf %286 : vector<24x8xf32> to vector<24x8xbf16>
    %cst_84 = arith.constant dense<0.000000e+00> : vector<24x24xf32>
    %288 = tpu.matmul %283, %285, %cst_84 {dimension_numbers = #tpu.dot_dimension_numbers<[1], [1], [0], [0], [0, 0, 1, 0], [], []>} : vector<24x8xbf16>, vector<24x8xbf16>, vector<24x24xf32> -> vector<24x24xf32>
    %289 = arith.addf %288, %36 : vector<24x24xf32>
    %cst_85 = arith.constant dense<0xFF800000> : vector<24xf32>
    %290 = vector.multi_reduction <maximumf>, %289, %cst_85 [1] : vector<24x24xf32> to vector<24xf32>
    %291 = vector.shape_cast %290 : vector<24xf32> to vector<24x1xf32>
    %292 = vector.broadcast %291 : vector<24x1xf32> to vector<24x24xf32>
    %293 = arith.subf %289, %292 : vector<24x24xf32>
    %294 = math.exp %293 : vector<24x24xf32>
    %cst_86 = arith.constant dense<0.000000e+00> : vector<24xf32>
    %295 = vector.multi_reduction <add>, %294, %cst_86 [1] : vector<24x24xf32> to vector<24xf32>
    %296 = vector.shape_cast %295 : vector<24xf32> to vector<24x1xf32>
    %297 = tpu.reciprocal %296 {approx = true} : vector<24x1xf32> -> vector<24x1xf32>
    %298 = vector.broadcast %297 : vector<24x1xf32> to vector<24x24xf32>
    %299 = arith.mulf %294, %298 : vector<24x24xf32>
    %300 = arith.truncf %299 : vector<24x24xf32> to vector<24x24xbf16>
    %cst_87 = arith.constant dense<0.000000e+00> : vector<24x8xf32>
    %301 = tpu.matmul %300, %287, %cst_87 {dimension_numbers = #tpu.dot_dimension_numbers<[1], [0], [0], [1], [0, 0, 1, 1], [], []>} : vector<24x24xbf16>, vector<24x8xbf16>, vector<24x8xf32> -> vector<24x8xf32>
    %302 = arith.truncf %301 : vector<24x8xf32> to vector<24x8xbf16>
    %303 = vector.extract_strided_slice %215 {offsets = [8, 0], sizes = [8, 32], strides = [1, 1]} : vector<32x32xbf16> to vector<8x32xbf16>
    %cst_88 = arith.constant dense<0.000000e+00> : vector<24x32xf32>
    %304 = tpu.matmul %302, %303, %cst_88 {dimension_numbers = #tpu.dot_dimension_numbers<[1], [0], [0], [1], [0, 0, 1, 1], [], []>} : vector<24x8xbf16>, vector<8x32xbf16>, vector<24x32xf32> -> vector<24x32xf32>
    %305 = arith.addf %281, %304 : vector<24x32xf32>
    %306 = vector.extract_strided_slice %256 {offsets = [0, 16], sizes = [24, 8], strides = [1, 1]} : vector<24x96xf32> to vector<24x8xf32>
    %307 = arith.truncf %306 : vector<24x8xf32> to vector<24x8xbf16>
    %308 = vector.extract_strided_slice %256 {offsets = [0, 48], sizes = [24, 8], strides = [1, 1]} : vector<24x96xf32> to vector<24x8xf32>
    %309 = arith.truncf %308 : vector<24x8xf32> to vector<24x8xbf16>
    %310 = vector.extract_strided_slice %256 {offsets = [0, 80], sizes = [24, 8], strides = [1, 1]} : vector<24x96xf32> to vector<24x8xf32>
    %311 = arith.truncf %310 : vector<24x8xf32> to vector<24x8xbf16>
    %cst_89 = arith.constant dense<0.000000e+00> : vector<24x24xf32>
    %312 = tpu.matmul %307, %309, %cst_89 {dimension_numbers = #tpu.dot_dimension_numbers<[1], [1], [0], [0], [0, 0, 1, 0], [], []>} : vector<24x8xbf16>, vector<24x8xbf16>, vector<24x24xf32> -> vector<24x24xf32>
    %313 = arith.addf %312, %36 : vector<24x24xf32>
    %cst_90 = arith.constant dense<0xFF800000> : vector<24xf32>
    %314 = vector.multi_reduction <maximumf>, %313, %cst_90 [1] : vector<24x24xf32> to vector<24xf32>
    %315 = vector.shape_cast %314 : vector<24xf32> to vector<24x1xf32>
    %316 = vector.broadcast %315 : vector<24x1xf32> to vector<24x24xf32>
    %317 = arith.subf %313, %316 : vector<24x24xf32>
    %318 = math.exp %317 : vector<24x24xf32>
    %cst_91 = arith.constant dense<0.000000e+00> : vector<24xf32>
    %319 = vector.multi_reduction <add>, %318, %cst_91 [1] : vector<24x24xf32> to vector<24xf32>
    %320 = vector.shape_cast %319 : vector<24xf32> to vector<24x1xf32>
    %321 = tpu.reciprocal %320 {approx = true} : vector<24x1xf32> -> vector<24x1xf32>
    %322 = vector.broadcast %321 : vector<24x1xf32> to vector<24x24xf32>
    %323 = arith.mulf %318, %322 : vector<24x24xf32>
    %324 = arith.truncf %323 : vector<24x24xf32> to vector<24x24xbf16>
    %cst_92 = arith.constant dense<0.000000e+00> : vector<24x8xf32>
    %325 = tpu.matmul %324, %311, %cst_92 {dimension_numbers = #tpu.dot_dimension_numbers<[1], [0], [0], [1], [0, 0, 1, 1], [], []>} : vector<24x24xbf16>, vector<24x8xbf16>, vector<24x8xf32> -> vector<24x8xf32>
    %326 = arith.truncf %325 : vector<24x8xf32> to vector<24x8xbf16>
    %327 = vector.extract_strided_slice %215 {offsets = [16, 0], sizes = [8, 32], strides = [1, 1]} : vector<32x32xbf16> to vector<8x32xbf16>
    %cst_93 = arith.constant dense<0.000000e+00> : vector<24x32xf32>
    %328 = tpu.matmul %326, %327, %cst_93 {dimension_numbers = #tpu.dot_dimension_numbers<[1], [0], [0], [1], [0, 0, 1, 1], [], []>} : vector<24x8xbf16>, vector<8x32xbf16>, vector<24x32xf32> -> vector<24x32xf32>
    %329 = arith.addf %305, %328 : vector<24x32xf32>
    %330 = vector.extract_strided_slice %256 {offsets = [0, 24], sizes = [24, 8], strides = [1, 1]} : vector<24x96xf32> to vector<24x8xf32>
    %331 = arith.truncf %330 : vector<24x8xf32> to vector<24x8xbf16>
    %332 = vector.extract_strided_slice %256 {offsets = [0, 56], sizes = [24, 8], strides = [1, 1]} : vector<24x96xf32> to vector<24x8xf32>
    %333 = arith.truncf %332 : vector<24x8xf32> to vector<24x8xbf16>
    %334 = vector.extract_strided_slice %256 {offsets = [0, 88], sizes = [24, 8], strides = [1, 1]} : vector<24x96xf32> to vector<24x8xf32>
    %335 = arith.truncf %334 : vector<24x8xf32> to vector<24x8xbf16>
    %cst_94 = arith.constant dense<0.000000e+00> : vector<24x24xf32>
    %336 = tpu.matmul %331, %333, %cst_94 {dimension_numbers = #tpu.dot_dimension_numbers<[1], [1], [0], [0], [0, 0, 1, 0], [], []>} : vector<24x8xbf16>, vector<24x8xbf16>, vector<24x24xf32> -> vector<24x24xf32>
    %337 = arith.addf %336, %36 : vector<24x24xf32>
    %cst_95 = arith.constant dense<0xFF800000> : vector<24xf32>
    %338 = vector.multi_reduction <maximumf>, %337, %cst_95 [1] : vector<24x24xf32> to vector<24xf32>
    %339 = vector.shape_cast %338 : vector<24xf32> to vector<24x1xf32>
    %340 = vector.broadcast %339 : vector<24x1xf32> to vector<24x24xf32>
    %341 = arith.subf %337, %340 : vector<24x24xf32>
    %342 = math.exp %341 : vector<24x24xf32>
    %cst_96 = arith.constant dense<0.000000e+00> : vector<24xf32>
    %343 = vector.multi_reduction <add>, %342, %cst_96 [1] : vector<24x24xf32> to vector<24xf32>
    %344 = vector.shape_cast %343 : vector<24xf32> to vector<24x1xf32>
    %345 = tpu.reciprocal %344 {approx = true} : vector<24x1xf32> -> vector<24x1xf32>
    %346 = vector.broadcast %345 : vector<24x1xf32> to vector<24x24xf32>
    %347 = arith.mulf %342, %346 : vector<24x24xf32>
    %348 = arith.truncf %347 : vector<24x24xf32> to vector<24x24xbf16>
    %cst_97 = arith.constant dense<0.000000e+00> : vector<24x8xf32>
    %349 = tpu.matmul %348, %335, %cst_97 {dimension_numbers = #tpu.dot_dimension_numbers<[1], [0], [0], [1], [0, 0, 1, 1], [], []>} : vector<24x24xbf16>, vector<24x8xbf16>, vector<24x8xf32> -> vector<24x8xf32>
    %350 = arith.truncf %349 : vector<24x8xf32> to vector<24x8xbf16>
    %351 = vector.extract_strided_slice %215 {offsets = [24, 0], sizes = [8, 32], strides = [1, 1]} : vector<32x32xbf16> to vector<8x32xbf16>
    %cst_98 = arith.constant dense<0.000000e+00> : vector<24x32xf32>
    %352 = tpu.matmul %350, %351, %cst_98 {dimension_numbers = #tpu.dot_dimension_numbers<[1], [0], [0], [1], [0, 0, 1, 1], [], []>} : vector<24x8xbf16>, vector<8x32xbf16>, vector<24x32xf32> -> vector<24x32xf32>
    %353 = arith.addf %329, %352 : vector<24x32xf32>
    %354 = vector.broadcast %222 : vector<1x32xf32> to vector<24x32xf32>
    %355 = arith.addf %353, %354 : vector<24x32xf32>
    %356 = arith.addf %355, %206 : vector<24x32xf32>
    %357 = vector.broadcast %225 : vector<1x32xf32> to vector<24x32xf32>
    %358 = arith.mulf %356, %357 : vector<24x32xf32>
    %359 = vector.broadcast %226 : vector<1x32xf32> to vector<24x32xf32>
    %360 = arith.addf %358, %359 : vector<24x32xf32>
    %361 = arith.addf %253, %360 : vector<24x32xf32>
    %362 = arith.truncf %361 : vector<24x32xf32> to vector<24x32xbf16>
    %cst_99 = arith.constant dense<0.000000e+00> : vector<24x64xf32>
    %363 = tpu.matmul %362, %218, %cst_99 {dimension_numbers = #tpu.dot_dimension_numbers<[1], [0], [0], [1], [0, 0, 1, 1], [], []>} : vector<24x32xbf16>, vector<32x64xbf16>, vector<24x64xf32> -> vector<24x64xf32>
    %364 = vector.broadcast %227 : vector<1x64xf32> to vector<24x64xf32>
    %365 = arith.addf %363, %364 : vector<24x64xf32>
    %cst_100 = arith.constant 0.000000e+00 : f32
    %366 = vector.broadcast %cst_100 : f32 to vector<24x64xf32>
    %367 = arith.maximumf %365, %366 : vector<24x64xf32>
    %368 = arith.truncf %367 : vector<24x64xf32> to vector<24x64xbf16>
    %cst_101 = arith.constant dense<0.000000e+00> : vector<24x32xf32>
    %369 = tpu.matmul %368, %216, %cst_101 {dimension_numbers = #tpu.dot_dimension_numbers<[1], [0], [0], [1], [0, 0, 1, 1], [], []>} : vector<24x64xbf16>, vector<64x32xbf16>, vector<24x32xf32> -> vector<24x32xf32>
    %370 = vector.broadcast %228 : vector<1x32xf32> to vector<24x32xf32>
    %371 = arith.addf %369, %370 : vector<24x32xf32>
    %372 = arith.addf %361, %371 : vector<24x32xf32>
    %373 = vector.broadcast %229 : vector<1x32xf32> to vector<24x32xf32>
    %374 = arith.mulf %372, %373 : vector<24x32xf32>
    %375 = vector.broadcast %230 : vector<1x32xf32> to vector<24x32xf32>
    %376 = arith.addf %374, %375 : vector<24x32xf32>
    %377 = arith.truncf %376 : vector<24x32xf32> to vector<24x32xbf16>
    %cst_102 = arith.constant dense<0.000000e+00> : vector<2x32xf32>
    %378 = tpu.matmul %28, %377, %cst_102 {dimension_numbers = #tpu.dot_dimension_numbers<[1], [0], [0], [1], [0, 0, 1, 1], [], []>} : vector<2x24xbf16>, vector<24x32xbf16>, vector<2x32xf32> -> vector<2x32xf32>
    %c0_103 = arith.constant 0 : index
    %c0_104 = arith.constant 0 : index
    %379 = vector.load %arg11[%c0_103, %c0_104] : memref<2x32xf32, #tpu.memory_space<vmem>>, vector<2x32xf32>
    tpu.vector_store %arg11[%c0_103, %c0_104], %378 {strides = array<i32>} : memref<2x32xf32, #tpu.memory_space<vmem>>, vector<2x32xf32>,
    return
  }
}

</mosaic_0001>

<bundles_post_ra>
// kernel: gps_forward.1
= control target key start
LH: loop header
LB: loop body
LE: loop exit
PB: predicated region body
PF: predicated region fallthrough
CT: control target
= control target key end

     0   :  { %vm141_vm0 = vcmask 31744   ;;  %s5218_s0 = inlined_call_operand.vmem [shape: bf16[24,29], index: 0, kind: input, shape index: {}]   ;;  %s5219_s1 = inlined_call_operand.vmem [shape: f32[48,4], index: 1, kind: input, shape index: {}]   ;;  %s5220_s2 = inlined_call_operand.vmem [shape: bf16[48,24], index: 2, kind: input, shape index: {}]   ;;  %s5221_s3 = inlined_call_operand.vmem [shape: bf16[24,48], index: 3, kind: input, shape index: {}]   ;;  %s5222_s4 = inlined_call_operand.vmem [shape: bf16[2,24], index: 4, kind: input, shape index: {}]   ;;  %s5223_s5 = inlined_call_operand.vmem [shape: f32[24,1], index: 5, kind: input, shape index: {}]   ;;  %s5224_s6 = inlined_call_operand.vmem [shape: f32[1,24], index: 6, kind: input, shape index: {}]   ;;  %s5225_s7 = inlined_call_operand.vmem [shape: bf16[36,32], index: 7, kind: input, shape index: {}]   ;;  %s5226_s8 = inlined_call_operand.vmem [shape: f32[2,13,128], index: 8, kind: input, shape index: {}]   ;;  %s5227_s9 = inlined_call_operand.vmem [shape: bf16[2,160,32], index: 9, kind: input, shape index: {}]   ;;  %s5228_s10 = inlined_call_operand.vmem [shape: bf16[2,64,96], index: 10, kind: input, shape index: {}]   ;;  %s5229_s11 = inlined_call_operand.hbm [shape: f32[2,32], index: 11, kind: output, shape index: {}]  }
   0x1   :  { %v135_v0 = vld [vmem:[%s5219_s1] sm:$0xff]  ;;  %v137_v1 = vld [vmem:[%s5219_s1 + $0x10] sm:$0xff]  ;;  %v136_v2 = vld [vmem:[%s5219_s1 + $0x8] sm:$0xff] }
   0x2   :  { %v142_v3 = vsel %vm141_vm0, %v135_v0, -inf  ;;  %v148_v4 = vsel %vm141_vm0, %v137_v1, -inf  ;;  %v138_v5 = vld [vmem:[%s5219_s1 + $0x18] sm:$0xff]  ;;  %v139_v6 = vld [vmem:[%s5219_s1 + $0x20] sm:$0xff]  ;;  %v140_v7 = vld [vmem:[%s5219_s1 + $0x28] sm:$0xff]  ;;  %v145_v8 = vsel %vm141_vm0, %v136_v2, -inf }
   0x3   :  { %143 = vmax.xlane.f32.xlu0 %v142_v3  ;;  %149 = vmax.xlane.f32.xlu1 %v148_v4  ;;  %v151_v9 = vsel %vm141_vm0, %v138_v5, -inf  ;;  %v154_v10 = vsel %vm141_vm0, %v139_v6, -inf  ;;  %v157_v11 = vsel %vm141_vm0, %v140_v7, -inf }
   0x7   :  { %146 = vmax.xlane.f32.xlu0 %v145_v8  ;;  %152 = vmax.xlane.f32.xlu1 %v151_v9 }
   0xb   :  { %155 = vmax.xlane.f32.xlu0 %v154_v10  ;;  %158 = vmax.xlane.f32.xlu1 %v157_v11 }
   0xc   :  { %16 = vsyncpa [#allocation3], 0  ;;  %v4193_v12 = vld [vmem:[%s5225_s7 + $0x8] sm:$0xff]   ;;  %vm80_vm1 = vcmask 1045504   ;;  %vm81_vm2 = vcmask 1046528   ;;  %v4195_v13 = vld [vmem:[%s5218_s0] sm:$0xff]   ;;  %v50_v20 = vlaneseq }
   0xd   :  { %v4350_v14 = vmov 65535   ;;  %vm73_vm3 = vcmask 236544   ;;  %v4194_v18 = vld [vmem:[%s5225_s7] sm:$0xff]   ;;  %v4196_v19 = vld [vmem:[%s5218_s0 + $0x8] ss:$0 sps:$4 sm:$0xff]   ;;  %v4351_v52 = vmov 0.0  }
   0xe   :  { %v82_v15 = vsel %vm80_vm1, 4294967295, %v4350_v14  ;;  %3800 = vmatprep.mubr.msk.bf16.mxu0 %vm73_vm3, %v4195_v13  ;;  %v4463_v21 = vand.u32 127, %v50_v20  ;;  %3804 = vmatprep.subr.bf16.mxu1 %v4351_v52  ;;  %v4479_v56 = vshrl.u32 %v50_v20, 7  ;;  %v46_v59 = vld [vmem:[%s5226_s8 + $0x8] sm:$0x1f]  ;;  %vm451_vm15 = vcmask 1043456  }
   0xf   :  { %v83_v16 = vsel %vm81_vm2, %v82_v15, 0  ;;  %vm4352_vm2 = vmmov 0   ;;  %s4353_s22 = smov 96   ;;  %s4357_s29 = smov 120  }
  0x10   :  { %v85_v17 = vand.u32 %v4193_v12, %v83_v16  ;;  %v4482_v58 = vsub.s32 4, %v4479_v56  ;;  %3806 = vmatprep.mubr.msk.bf16.mxu1 %vm4352_vm2, %v4351_v52  ;;  %s4358_s30 = smov 88   ;;  %s4359_s13 = smov 56  }
  0x11   :  { %s4360_s14 = smov 80   ;;  %s4361_s15 = smov 112  }
  0x12   :  { %3796 = vmatprep.subr.bf16.mxu0 %v85_v17  ;;  %s4362_s16 = smov 72   ;;  %s4363_s0 = smov 104  }
  0x13   :  { %3797 = vmatpush3.bf16.msra.mxu0 %v85_v17  ;;  %s4364_s19 = smov 48   ;;  %s4365_s23 = smov 40  }
  0x14   :  { %3798 = vmatprep.subr.bf16.mxu0 %v4194_v18  ;;  %s4366_s1 = smov [#allocation2]  }
  0x15   :  { %s3471_s12 = sshll.u32 %s4366_s1, 4  ;;  %s3472_s12 = int_to_ptr.vmem [resolvable:$true] %s3471_s12 }
  0x16   :  { %s4328_s17 = scalar_lea.vmem %s3472_s12, 32  ;;  %p4333_p1 = scmp.lt.s32.totalorder %s3472_s12, %s3472_s12 }
  0x17   :  { %3799 = vmatpush3.bf16.msra.mxu0 %v4194_v18  ;;  %p4329_p0 = scmp.ne.s32.totalorder %s3472_s12, %s4328_s17  ;;  %p4334_p2 = scmp.lt.s32.totalorder %s4328_s17, %s4328_s17 }
  0x18   :  { %3818 = vmatprep.subr.bf16.mxu0 %v4351_v52 }
  0x19   :  { %p4335_p3 = por %p4334_p2, %p4333_p1 }
  0x1a   :  { %3801 = vmatmul.mubr.msk.bf16.vlgmr.msra.gmra.mxu0 %vm73_vm3, %v4196_v19  ;;  %vm441_vm3 = vcmask 195584  }
  0x1b   :  { %3822 = vmatprep.mubr.msk.bf16.mxu0 %vm4352_vm2, %v4351_v52  ;;  %p4336_p4 = pnand %p4335_p3, %p4329_p0 }
  0x8c   :  { %v144_v22 = vpop.xlane.xlu0 %143  ;;  %v150_v23 = vpop.xlane.xlu1 %149 }
  0x8d   :  { %vm162_vm4 = vcmp.ge.f32.partialorder %v135_v0, %v144_v22  ;;  %vm164_vm5 = vcmp.ge.f32.partialorder %v137_v1, %v150_v23  ;;  %v53_v1 = vrot.slane %v46_v59, %v4482_v58 }
  0x8e   :  { %v168_v24 = vsel %vm162_vm4, %v4463_v21, 4  ;;  %v170_v25 = vsel %vm164_vm5, %v4463_v21, 4  ;;  %vm294_vm4 = vcmask 1041408  }
  0x8f   :  { %v174_v26 = vsel %vm141_vm0, %v168_v24, 2147483647  ;;  %v204_v27 = vsel %vm141_vm0, %v170_v25, 2147483647 }
  0x90   :  { %v147_v28 = vpop.xlane.xlu0 %146  ;;  %v153_v29 = vpop.xlane.xlu1 %152  ;;  %v176_v30 = vshra.s32 %v174_v26, 16  ;;  %v206_v31 = vshra.s32 %v204_v27, 16  ;;  %v175_v57 = vand.u32 65535, %v174_v26  ;;  %v205_v63 = vand.u32 65535, %v204_v27 }
  0x91   :  { %vm163_vm6 = vcmp.ge.f32.partialorder %v136_v2, %v147_v28  ;;  %vm165_vm7 = vcmp.ge.f32.partialorder %v138_v5, %v153_v29  ;;  %v4197_v28 = vld [vmem:[%s5220_s2] sm:$0xff]   ;;  %v44_v29 = vld [vmem:[%s5225_s7 + $0x10] sm:$0x3] }
  0x92   :  { %v169_v32 = vsel %vm163_vm6, %v4463_v21, 4  ;;  %v171_v33 = vsel %vm165_vm7, %v4463_v21, 4  ;;  %v178_v34 = vcvt.s32.f32 %v176_v30  ;;  %v208_v40 = vcvt.s32.f32 %v206_v31  ;;  %v4198_v31 = vld [vmem:[%s5220_s2 + $0x8] sm:$0xff]  }
  0x93   :  { %v189_v35 = vsel %vm141_vm0, %v169_v32, 2147483647  ;;  %v219_v36 = vsel %vm141_vm0, %v171_v33, 2147483647  ;;  %v177_v61 = vcvt.s32.f32 %v175_v57  ;;  %v207_v5 = vcvt.s32.f32 %v205_v63  ;;  %v4199_v32 = vld [vmem:[%s5220_s2 + $0x10] sm:$0xff]  }
  0x94   :  { %v156_v37 = vpop.xlane.xlu0 %155  ;;  %179 = vmin.xlane.f32.xlu0 %v178_v34  ;;  %v159_v38 = vpop.xlane.xlu1 %158  ;;  %v191_v39 = vshra.s32 %v189_v35, 16  ;;  %v221_v41 = vshra.s32 %v219_v36, 16  ;;  %v190_v62 = vand.u32 65535, %v189_v35  ;;  %v296_v30 = vsel %vm294_vm4, %v44_v29, 0 }
  0x95   :  { %vm166_vm8 = vcmp.ge.f32.partialorder %v139_v6, %v156_v37  ;;  %vm167_vm9 = vcmp.ge.f32.partialorder %v140_v7, %v159_v38  ;;  %v220_v6 = vand.u32 65535, %v219_v36  ;;  %3805 = vmatpush3.bf16.msra.mxu1 %v296_v30  ;;  %vm1853_vm4 = vcmask 523264  }
  0x96   :  { %v172_v42 = vsel %vm166_vm8, %v4463_v21, 4  ;;  %v173_v43 = vsel %vm167_vm9, %v4463_v21, 4  ;;  %v193_v44 = vcvt.s32.f32 %v191_v39  ;;  %v223_v47 = vcvt.s32.f32 %v221_v41 }
  0x97   :  { %v234_v45 = vsel %vm141_vm0, %v172_v42, 2147483647  ;;  %v249_v46 = vsel %vm141_vm0, %v173_v43, 2147483647  ;;  %v192_v4 = vcvt.s32.f32 %v190_v62  ;;  %v222_v14 = vcvt.s32.f32 %v220_v6 }
  0x98   :  { %194 = vmin.xlane.f32.xlu1 %v193_v44  ;;  %209 = vmin.xlane.f32.xlu0 %v208_v40  ;;  %v236_v48 = vshra.s32 %v234_v45, 16  ;;  %v251_v49 = vshra.s32 %v249_v46, 16  ;;  %v235_v7 = vand.u32 65535, %v234_v45  ;;  %v250_v16 = vand.u32 65535, %v249_v46 }
  0x9a   :  { %v238_v50 = vcvt.s32.f32 %v236_v48  ;;  %v253_v51 = vcvt.s32.f32 %v251_v49  ;;  %v237_v15 = vcvt.s32.f32 %v235_v7  ;;  %v252_v24 = vcvt.s32.f32 %v250_v16 }
  0x9c   :  { %224 = vmin.xlane.f32.xlu1 %v223_v47  ;;  %239 = vmin.xlane.f32.xlu0 %v238_v50 }
  0xa0   :  { %254 = vmin.xlane.f32.xlu1 %v253_v51 }
  0xda   :  { %v3802_v53 = vpop.f32.mrf.mxu0 }
  0xdb   :  { %v4497_v10 = vadd.f32 %v3802_v53, %v53_v1 }
  0xdc   :  { %v121_v54 = vpop.f32.mrf.mxu0 }
  0xdd   :  { %v4504_v19 = vpack.c.bf16 %v4497_v10, %v4497_v10  ;;  %v4506_v20 = vadd.f32 %v121_v54, %v53_v1 }
  0xde   :  { %v3803_v55 = vpop.f32.mrf.mxu0 }
  0xdf   :  { %v453_v25 = vsel %vm451_vm15, %v4504_v19, 0 }
  0xe0   :  { %v124_v11 = vpop.f32.mrf.mxu0  ;;  %3819 = vmatpush3.bf16.msra.mxu0 %v453_v25 }
  0xe1   :  { %v4508_v22 = vadd.f32 %v124_v11, %v53_v1  ;;  %3820 = vmatprep.subr.bf16.mxu0 %v4351_v52 }
  0xe3   :  { %v4515_v27 = vpack.c.bf16 %v4508_v22, %v4506_v20 }
  0xe5   :  { %3821 = vmatpush3.bf16.msra.mxu0 %v4515_v27 }
  0xe8   :  { %3823 = vmatmul.mubr.msk.bf16.vlgmr.msra.gmra.mxu0 %vm441_vm3, %v4197_v28 }
  0xe9   :  { %3826 = vmatprep.mubr.msk.bf16.mxu0 %vm4352_vm2, %v4351_v52 }
  0xf0   :  { %3827 = vmatmul.mubr.msk.bf16.gmra.mxu0 %vm441_vm3, %v4198_v31 }
  0xf1   :  { %3830 = vmatprep.mubr.msk.bf16.mxu0 %vm4352_vm2, %v4351_v52 }
  0xf8   :  { %3831 = vmatmul.mubr.msk.bf16.gmra.mxu0 %vm441_vm3, %v4199_v32 }
 0x11d   :  { %v4487_v60 = vpop.xlane.xlu0 %179 }
 0x11e   :  { %vm181_vm10 = vcmp.eq.f32.partialorder %v178_v34, %v4487_v60  ;;  %v186_v33 = vcvt.f32.s32 %v4487_v60 }
 0x11f   :  { %v182_v0 = vsel %vm181_vm10, %v177_v61, inf }
 0x120   :  { %183 = vmin.xlane.f32.xlu0 %v182_v0  ;;  %v187_v35 = vshll.u32 %v186_v33, 16 }
 0x121   :  { %v4491_v2 = vpop.xlane.xlu1 %194  ;;  %v4493_v3 = vpop.xlane.xlu0 %209 }
 0x122   :  { %vm196_vm11 = vcmp.eq.f32.partialorder %v193_v44, %v4491_v2  ;;  %vm211_vm12 = vcmp.eq.f32.partialorder %v208_v40, %v4493_v3  ;;  %v201_v36 = vcvt.f32.s32 %v4491_v2  ;;  %v216_v42 = vcvt.f32.s32 %v4493_v3 }
 0x123   :  { %v197_v8 = vsel %vm196_vm11, %v192_v4, inf  ;;  %v212_v9 = vsel %vm211_vm12, %v207_v5, inf  ;;  %vm529_vm11 = vcmask 392192   ;;  %vm826_vm12 = vcmask 64512  }
 0x124   :  { %198 = vmin.xlane.f32.xlu1 %v197_v8  ;;  %213 = vmin.xlane.f32.xlu0 %v212_v9  ;;  %v202_v41 = vshll.u32 %v201_v36, 16  ;;  %v217_v48 = vshll.u32 %v216_v42, 16 }
 0x125   :  { %v225_v12 = vpop.xlane.xlu1 %224  ;;  %v4499_v13 = vpop.xlane.xlu0 %239 }
 0x126   :  { %vm226_vm13 = vcmp.eq.f32.partialorder %v223_v47, %v225_v12  ;;  %vm241_vm14 = vcmp.eq.f32.partialorder %v238_v50, %v4499_v13  ;;  %v231_v43 = vcvt.f32.s32 %v225_v12  ;;  %v246_v62 = vcvt.f32.s32 %v4499_v13 }
 0x127   :  { %v227_v17 = vsel %vm226_vm13, %v222_v14, inf  ;;  %v242_v18 = vsel %vm241_vm14, %v237_v15, inf }
 0x128   :  { %228 = vmin.xlane.f32.xlu1 %v227_v17  ;;  %243 = vmin.xlane.f32.xlu0 %v242_v18  ;;  %v232_v49 = vshll.u32 %v231_v43, 16  ;;  %v247_v3 = vshll.u32 %v246_v62, 16  ;;  %v4204_v62 = vld [vmem:[%s5228_s10 + $0x8] sm:$0xff]  }
 0x129   :  { %v255_v23 = vpop.xlane.xlu1 %254 }
 0x12a   :  { %vm256_vm1 = vcmp.eq.f32.partialorder %v253_v51, %v255_v23  ;;  %v261_v54 = vcvt.f32.s32 %v255_v23 }
 0x12b   :  { %v257_v26 = vsel %vm256_vm1, %v252_v24, inf }
 0x12c   :  { %258 = vmin.xlane.f32.xlu1 %v257_v26  ;;  %v262_v0 = vshll.u32 %v261_v54, 16 }
 0x1a8   :  { %v489_v12 = vpop.f32.mrf.mxu0 }
 0x1a9   :  { %v184_v34 = vpop.xlane.xlu0 %183 }
 0x1aa   :  { %v185_v37 = vcvt.f32.s32 %v184_v34  ;;  %v3824_v13 = vpop.f32.mrf.mxu0 }
 0x1ac   :  { %v188_v38 = vadd.s32 %v187_v35, %v185_v37  ;;  %v492_v14 = vpop.f32.mrf.mxu0 }
 0x1ad   :  { %v199_v39 = vpop.xlane.xlu1 %198  ;;  %v214_v40 = vpop.xlane.xlu0 %213 }
 0x1ae   :  { %v200_v44 = vcvt.f32.s32 %v199_v39  ;;  %vm264_vm5 = vcmp.eq.s32.totalorder %v4463_v21, %v188_v38  ;;  %v215_v46 = vcvt.f32.s32 %v214_v40  ;;  %v3825_v15 = vpop.f32.mrf.mxu0 }
 0x1af   :  { %v3485_v51 = vsel %vm264_vm5, 1.0, %v4351_v52 }
 0x1b0   :  { %v203_v45 = vadd.s32 %v202_v41, %v200_v44  ;;  %v218_v55 = vadd.s32 %v217_v48, %v215_v46  ;;  %v497_v16 = vpop.f32.mrf.mxu0 }
 0x1b1   :  { %v229_v47 = vpop.xlane.xlu1 %228  ;;  %v244_v60 = vpop.xlane.xlu0 %243 }
 0x1b2   :  { %vm265_vm6 = vcmp.eq.s32.totalorder %v4463_v21, %v203_v45  ;;  %v230_v50 = vcvt.f32.s32 %v229_v47  ;;  %vm266_vm8 = vcmp.eq.s32.totalorder %v4463_v21, %v218_v55  ;;  %v245_v1 = vcvt.f32.s32 %v244_v60  ;;  %v3828_v17 = vpop.f32.mrf.mxu0  ;;  %v4202_v60 = vld [vmem:[%s5227_s9 + $0x8] sm:$0xff]  }
 0x1b3   :  { %v3486_v53 = vsel %vm265_vm6, 1.0, %v4351_v52  ;;  %v3487_v5 = vsel %vm266_vm8, 1.0, %v4351_v52 }
 0x1b4   :  { %v233_v57 = vadd.s32 %v232_v49, %v230_v50  ;;  %v282_v59 = vpack.c.bf16 %v3486_v53, %v3485_v51  ;;  %v248_v6 = vadd.s32 %v247_v3, %v245_v1  ;;  %v500_v18 = vpop.f32.mrf.mxu0 }
 0x1b5   :  { %v259_v61 = vpop.xlane.xlu1 %258 }
 0x1b6   :  { %vm267_vm7 = vcmp.eq.s32.totalorder %v4463_v21, %v233_v57  ;;  %v260_v63 = vcvt.f32.s32 %v259_v61  ;;  %3807 = vmatmul.mubr.msk.bf16.vlgmr.msra.gmra.mxu1 %vm141_vm0, %v282_v59  ;;  %vm268_vm10 = vcmp.eq.s32.totalorder %v4463_v21, %v248_v6  ;;  %v3829_v23 = vpop.f32.mrf.mxu0  ;;  %v4201_v59 = vld [vmem:[%s5221_s3 + $0x8] ss:$0 sps:$4 sm:$0xff]   ;;  %v4203_v61 = vld [vmem:[%s5227_s9] sm:$0xff]  }
 0x1b7   :  { %3810 = vmatprep.mubr.msk.bf16.mxu1 %vm4352_vm2, %v4351_v52  ;;  %v3488_v2 = vsel %vm267_vm7, 1.0, %v4351_v52  ;;  %v3489_v9 = vsel %vm268_vm10, 1.0, %v4351_v52 }
 0x1b8   :  { %v263_v4 = vadd.s32 %v262_v0, %v260_v63  ;;  %v283_v7 = vpack.c.bf16 %v3488_v2, %v3487_v5  ;;  %v505_v24 = vpop.f32.mrf.mxu0 }
 0x1ba   :  { %vm269_vm9 = vcmp.eq.s32.totalorder %v4463_v21, %v263_v4  ;;  %v3832_v25 = vpop.f32.mrf.mxu0  ;;  %v4200_v21 = vld [vmem:[%s5221_s3] sm:$0xff]  }
 0x1bb   :  { %v3490_v8 = vsel %vm269_vm9, 1.0, %v4351_v52 }
 0x1bc   :  { %v284_v11 = vpack.c.bf16 %v3490_v8, %v3489_v9  ;;  %v508_v26 = vpop.f32.mrf.mxu0  ;;  %v4205_v8 = vld [vmem:[%s5228_s10] sm:$0xff]   ;;  %v4206_v9 = vld [vmem:[%s5227_s9 + $0x18] sm:$0xff]  }
 0x1bd   :  { %3852 = vmatprep.subr.bf16.mxu0 %v4206_v9 }
 0x1be   :  { %3811 = vmatmul.mubr.msk.bf16.gmra.mxu1 %vm141_vm0, %v283_v7  ;;  %v3833_v28 = vpop.f32.mrf.mxu0  ;;  %3853 = vmatpush3.bf16.msra.mxu0 %v4206_v9 }
 0x1bf   :  { %3814 = vmatprep.mubr.msk.bf16.mxu1 %vm4352_vm2, %v4351_v52 }
 0x1c6   :  { %3815 = vmatmul.mubr.msk.bf16.gmra.mxu1 %vm141_vm0, %v284_v11  ;;  %vm602_vm0 = vcmask 261120   ;;  %v4207_v11 = vld [vmem:[%s5227_s9 + $0x10] sm:$0xff]  }
 0x1c7   :  { %3840 = vmatprep.mubr.msk.bf16.mxu1 %vm529_vm11, %v4200_v21  ;;  %3854 = vmatprep.subr.bf16.mxu0 %v4207_v11 }
 0x1c8   :  { %3855 = vmatpush3.bf16.msra.mxu0 %v4207_v11 }
 0x276   :  { %v4568_v29 = vpop.f32.mrf.mxu1 }
 0x277   :  { %v490_v49 = vadd.f32 %v489_v12, %v4568_v29  ;;  %v4618_v12 = vsub.s32 0, %v4479_v56 }
 0x278   :  { %v3808_v30 = vpop.f32.mrf.mxu1 }
 0x279   :  { %v512_v55 = vmax.f32 %v490_v49, 0.0  ;;  %v366_v49 = vld [vmem:[%s5223_s5 + $0x8] sm:$0xff] }
 0x27a   :  { %v4570_v31 = vpop.f32.mrf.mxu1 }
 0x27b   :  { %v493_v45 = vadd.f32 %v492_v14, %v4570_v31  ;;  %v4628_v14 = vsub.s32 2, %v4479_v56 }
 0x27c   :  { %v3809_v32 = vpop.f32.mrf.mxu1 }
 0x27d   :  { %v513_v53 = vmax.f32 %v493_v45, 0.0 }
 0x27e   :  { %v4572_v33 = vpop.f32.mrf.mxu1 }
 0x27f   :  { %v498_v42 = vadd.f32 %v497_v16, %v4572_v33  ;;  %v518_v57 = vpack.c.bf16 %v513_v53, %v512_v55 }
 0x280   :  { %v3812_v34 = vpop.f32.mrf.mxu1 }
 0x281   :  { %v514_v50 = vmax.f32 %v498_v42, 0.0 }
 0x282   :  { %v4574_v35 = vpop.f32.mrf.mxu1 }
 0x283   :  { %v501_v39 = vadd.f32 %v500_v18, %v4574_v35 }
 0x284   :  { %v3813_v36 = vpop.f32.mrf.mxu1 }
 0x285   :  { %v515_v46 = vmax.f32 %v501_v39, 0.0 }
 0x286   :  { %v4576_v37 = vpop.f32.mrf.mxu1 }
 0x287   :  { %v506_v40 = vadd.f32 %v505_v24, %v4576_v37  ;;  %v519_v54 = vpack.c.bf16 %v515_v46, %v514_v50  ;;  %v4354_v46 = vmov 0  }
 0x288   :  { %v3816_v38 = vpop.f32.mrf.mxu1  ;;  %4192 = vset.pattern.permute.xlu0 %v4354_v46  ;;  %4191 = vset.pattern.permute.xlu1 %v4354_v46 }
 0x289   :  { %v516_v47 = vmax.f32 %v506_v40, 0.0 }
 0x28a   :  { %v4580_v41 = vpop.f32.mrf.mxu1 }
 0x28b   :  { %v509_v43 = vadd.f32 %v508_v26, %v4580_v41 }
 0x28c   :  { %v3817_v44 = vpop.f32.mrf.mxu1 }
 0x28d   :  { %v517_v48 = vmax.f32 %v509_v43, 0.0 }
 0x28f   :  { %v520_v51 = vpack.c.bf16 %v517_v48, %v516_v47  ;;  %v365_v47 = vld [vmem:[%s5223_s5] sm:$0xff]  ;;  %v367_v48 = vld [vmem:[%s5223_s5 + $0x10] sm:$0xff] }
 0x291   :  { %3834 = vmatprep.subr.bf16.mxu1 %v520_v51 }
 0x292   :  { %3835 = vmatpush3.bf16.msra.mxu1 %v520_v51 }
 0x293   :  { %3836 = vmatprep.subr.bf16.mxu1 %v519_v54 }
 0x296   :  { %3837 = vmatpush3.bf16.msra.mxu1 %v519_v54 }
 0x297   :  { %3838 = vmatprep.subr.bf16.mxu1 %v518_v57 }
 0x29a   :  { %3839 = vmatpush3.bf16.msra.mxu1 %v518_v57 }
 0x29b   :  { %3844 = vmatprep.subr.bf16.mxu1 %v4202_v60 }
 0x29d   :  { %3841 = vmatmul.mubr.msk.bf16.vlgmr.msra.gmra.mxu1 %vm529_vm11, %v4201_v59 }
 0x29e   :  { %3845 = vmatpush3.bf16.msra.mxu1 %v4202_v60 }
 0x29f   :  { %3846 = vmatprep.subr.bf16.mxu1 %v4203_v61 }
 0x2a2   :  { %3847 = vmatpush3.bf16.msra.mxu1 %v4203_v61  ;;  %v3494_v61 = vld [vmem:[%s5224_s6] ss:$0 sm:$0xff]  ;;  %s4356_s6 = smov 64  }
 0x2a3   :  { %3860 = vmatprep.subr.bf16.mxu1 %v4204_v62 }
 0x35d   :  { %v3842_v63 = vpop.f32.mrf.mxu1 }
 0x35e   :  { %v579_v2 = vadd.f32 %v3842_v63, %v4497_v10 }
 0x35f   :  { %v570_v0 = vpop.f32.mrf.mxu1 }
 0x360   :  { %v571_v4 = vadd.f32 %v570_v0, %v4506_v20  ;;  %v585_v7 = vpack.c.bf16 %v579_v2, %v579_v2  ;;  %v4355_v0 = vmov -1e+30  }
 0x361   :  { %v3843_v1 = vpop.f32.mrf.mxu1 }
 0x363   :  { %v573_v3 = vpop.f32.mrf.mxu1 }
 0x364   :  { %v574_v5 = vadd.f32 %v573_v3, %v4508_v22 }
 0x366   :  { %v584_v6 = vpack.c.bf16 %v574_v5, %v571_v4 }
 0x368   :  { %3848 = vmatprep.mubr.msk.bf16.mxu1 %vm602_vm0, %v584_v6 }
 0x369   :  { %3849 = vmatmul.mubr.msk.bf16.vlgmr.msra.gmra.mxu1 %vm602_vm0, %v585_v7 }
 0x36a   :  { %3861 = vmatpush3.bf16.msra.mxu1 %v4204_v62  ;;  %3864 = vmatprep.mubr.msk.bf16.mxu1 %vm602_vm0, %v4515_v27  ;;  %v4623_v27 = vld [vmem:[%s5226_s8] sm:$0xff] }
 0x36b   :  { %3862 = vmatprep.subr.bf16.mxu1 %v4205_v8  ;;  %v752_v23 = vrot.slane %v4623_v27, %v4628_v14 }
 0x36e   :  { %3863 = vmatpush3.bf16.msra.mxu1 %v4205_v8 }
 0x371   :  { %3865 = vmatmul.mubr.msk.bf16.vlgmr.msra.gmra.mxu1 %vm602_vm0, %v4504_v19  ;;  %v589_v19 = vrot.slane %v4623_v27, %v4618_v12 }
 0x429   :  { %v3850_v13 = vpop.f32.mrf.mxu1 }
 0x42a   :  { %v652_v16 = vadd.f32 %v3850_v13, %v589_v19 }
 0x42b   :  { %v643_v15 = vpop.f32.mrf.mxu1 }
 0x42c   :  { %v644_v18 = vadd.f32 %v643_v15, %v589_v19  ;;  %v659_v26 = vmax.f32 %v652_v16, 0.0 }
 0x42d   :  { %v3851_v17 = vpop.f32.mrf.mxu1 }
 0x42e   :  { %v657_v21 = vmax.f32 %v644_v18, 0.0  ;;  %v661_v39 = vpack.c.bf16 %v659_v26, %v659_v26 }
 0x42f   :  { %v646_v24 = vpop.f32.mrf.mxu1 }
 0x430   :  { %v647_v25 = vadd.f32 %v646_v24, %v589_v19 }
 0x431   :  { %v3866_v28 = vpop.f32.mrf.mxu1 }
 0x432   :  { %v658_v30 = vmax.f32 %v647_v25, 0.0  ;;  %v813_v32 = vadd.f32 %v3866_v28, %v752_v23 }
 0x433   :  { %v804_v34 = vpop.f32.mrf.mxu1 }
 0x434   :  { %v660_v36 = vpack.c.bf16 %v658_v30, %v657_v21  ;;  %v4632_v38 = vpack.c.bf16 %v813_v32, %v813_v32  ;;  %v805_v43 = vadd.f32 %v804_v34, %v752_v23 }
 0x435   :  { %v3867_v40 = vpop.f32.mrf.mxu1 }
 0x436   :  { %824 = vrot.lane.b32.xlu0 %v4632_v38, %s4353_s22  ;;  %3856 = vmatprep.mubr.msk.bf16.mxu0 %vm602_vm0, %v660_v36 }
 0x437   :  { %3857 = vmatmul.mubr.msk.bf16.vlgmr.msra.gmra.mxu0 %vm602_vm0, %v661_v39  ;;  %v807_v42 = vpop.f32.mrf.mxu1 }
 0x438   :  { %v808_v44 = vadd.f32 %v807_v42, %v752_v23 }
 0x43a   :  { %v4638_v45 = vpack.c.bf16 %v808_v44, %v805_v43  ;;  %381 = vperm.xlu0 %4192, %v367_v48  }
 0x43c   :  { %822 = vrot.lane.b32.xlu1 %v4638_v45, %s4353_s22  ;;  %3872 = vmatprep.mubr.msk.bf16.mxu0 %vm826_vm12, %v4638_v45 }
 0x440   :  { %371 = vperm.xlu1 %4191, %v365_v47  }
 0x444   :  { %376 = vperm.xlu1 %4191, %v366_v49  }
 0x4a8   :  { %v825_v50 = vpop.permute.xlu0 %824 }
 0x4a9   :  { %v837_v51 = vsel %vm826_vm12, %v825_v50, 0  ;;  %4142 = vmatprep.subr.msk.bf16.mxu0 %vm826_vm12, %v825_v50 }
 0x4aa   :  { %3869 = vmatpush3.bf16.xpose.msra.mxu0 %v837_v51 }
 0x4ae   :  { %v823_v53 = vpop.permute.xlu1 %822 }
 0x4af   :  { %4143 = vmatprep.subr.msk.bf16.mxu0 %vm826_vm12, %v823_v53  ;;  %v834_v54 = vsel %vm826_vm12, %v823_v53, 0 }
 0x4b2   :  { %3871 = vmatpush3.bf16.xpose.msra.mxu0 %v834_v54 }
 0x4b5   :  { %v382_v63 = vpop.permute.xlu0 %381 }
 0x4b6   :  { %vm392_vm14 = vcmp.eq.f32.partialorder %v382_v63, %v3494_v61 }
 0x4b7   :  { %v4672_v8 = vsel %vm392_vm14, 0.0, %v4355_v0 }
 0x4b9   :  { %3873 = vmatmul.mubr.msk.bf16.vlgmr.msra.gmra.mxu0 %vm826_vm12, %v4632_v38 }
 0x4bb   :  { %v372_v60 = vpop.permute.xlu1 %371 }
 0x4bc   :  { %vm390_vm13 = vcmp.eq.f32.partialorder %v372_v60, %v3494_v61 }
 0x4bd   :  { %v4668_v1 = vsel %vm390_vm13, 0.0, %v4355_v0 }
 0x4bf   :  { %v377_v3 = vpop.permute.xlu1 %376 }
 0x4c0   :  { %vm391_vm1 = vcmp.eq.f32.partialorder %v377_v3, %v3494_v61 }
 0x4c1   :  { %v4674_v9 = vsel %vm391_vm1, 0.0, %v4355_v0 }
 0x4f7   :  { %v4659_v55 = vpop.f32.mrf.mxu0 }
 0x4f9   :  { %v4661_v57 = vpop.f32.mrf.mxu0 }
 0x4fb   :  { %v3859_v59 = vpop.f32.mrf.mxu0 }
 0x4fd   :  { %v4666_v62 = vpop.f32.mrf.mxu0 }
 0x579   :  { %v3874_v2 = vpop.f32.mrf.mxu0 }
 0x57a   :  { %v882_v13 = vadd.f32 %v3874_v2, %v4672_v8 }
 0x57b   :  { %v873_v4 = vpop.f32.mrf.mxu0 }
 0x57c   :  { %v874_v5 = vadd.f32 %v873_v4, %v4668_v1  ;;  %v893_v16 = vsel %vm441_vm3, %v882_v13, -inf }
 0x57d   :  { %v3875_v6 = vpop.f32.mrf.mxu0 }
 0x57e   :  { %v887_v7 = vsel %vm441_vm3, %v874_v5, -inf }
 0x57f   :  { %v876_v11 = vpop.f32.mrf.mxu0  ;;  %888 = vmax.xlane.f32.xlu1 %v887_v7  ;;  %v404_v7 = vld [vmem:[%s5227_s9 + $0x20] sm:$0xf] }
 0x580   :  { %v877_v19 = vadd.f32 %v876_v11, %v4674_v9  ;;  %v1217_v11 = vsel %vm451_vm15, %v404_v7, 0 }
 0x582   :  { %v890_v15 = vsel %vm441_vm3, %v877_v19, -inf }
 0x583   :  { %891 = vmax.xlane.f32.xlu0 %v890_v15 }
 0x587   :  { %894 = vmax.xlane.f32.xlu0 %v893_v16 }
 0x608   :  { %v889_v17 = vpop.xlane.xlu1 %888 }
 0x609   :  { %v896_v24 = vsub.f32 %v874_v5, %v889_v17 }
 0x60b   :  { %v899_v21 = vmul.f32 1.442695, %v896_v24 }
 0x60c   :  { %v892_v18 = vpop.xlane.xlu0 %891 }
 0x60d   :  { %v897_v23 = vsub.f32 %v877_v19, %v892_v18 }
 0x60f   :  { %v901_v25 = vmul.f32 1.442695, %v897_v23 }
 0x610   :  { %v895_v26 = vpop.xlane.xlu0 %894 }
 0x611   :  { %4226 = vpow2.f32 %v901_v25  ;;  %v898_v28 = vsub.f32 %v882_v13, %v895_v26 }
 0x613   :  { %v903_v30 = vmul.f32 1.442695, %v898_v28 }
 0x615   :  { %4228 = vpow2.f32 %v903_v30 }
 0x616   :  { %4230 = vpow2.f32 %v899_v21 }
 0x61e   :  { %v4227_v32 = vpop.eup %4226 }
 0x61f   :  { %v908_v34 = vsel %vm441_vm3, %v4227_v32, 0.0 }
 0x620   :  { %909 = vadd.xlane.f32.xlu0 %v908_v34 }
 0x622   :  { %v4229_v36 = vpop.eup %4228 }
 0x623   :  { %v911_v39 = vsel %vm441_vm3, %v4229_v36, 0.0  ;;  %v4231_v40 = vpop.eup %4230 }
 0x624   :  { %912 = vadd.xlane.f32.xlu1 %v911_v39  ;;  %v905_v42 = vsel %vm441_vm3, %v4231_v40, 0.0 }
 0x628   :  { %906 = vadd.xlane.f32.xlu1 %v905_v42 }
 0x636   :  { %924 = vrot.lane.b32.xlu0 %v4632_v38, %s4356_s6 }
 0x639   :  { %922 = vrot.lane.b32.xlu1 %v4638_v45, %s4356_s6 }
 0x63a   :  { %986 = vrot.lane.b32.xlu0 %v4638_v45, %s4357_s29 }
 0x63d   :  { %992 = vrot.lane.b32.xlu1 %v4632_v38, %s4358_s30 }
 0x641   :  { %990 = vrot.lane.b32.xlu1 %v4638_v45, %s4358_s30 }
 0x645   :  { %988 = vrot.lane.b32.xlu1 %v4632_v38, %s4357_s29 }
 0x6a9   :  { %v910_v43 = vpop.xlane.xlu0 %909 }
 0x6ad   :  { %v925_v44 = vpop.permute.xlu0 %924  ;;  %v913_v46 = vpop.xlane.xlu1 %912 }
 0x6ae   :  { %v934_v47 = vsel %vm451_vm15, %v925_v44, 0  ;;  %4144 = vmatprep.subr.msk.bf16.mxu1 %vm451_vm15, %v925_v44  ;;  %4232 = vrcp.f32 %v913_v46 }
 0x6af   :  { %3877 = vmatpush3.bf16.msra.mxu1 %v934_v47  ;;  %4234 = vrcp.f32 %v910_v43 }
 0x6b1   :  { %v907_v48 = vpop.xlane.xlu1 %906  ;;  %v987_v2 = vpop.permute.xlu0 %986 }
 0x6b2   :  { %4236 = vrcp.f32 %v907_v48 }
 0x6b5   :  { %v923_v49 = vpop.permute.xlu1 %922 }
 0x6b6   :  { %3878 = vmatprep.subr.bf16.mxu1 %v923_v49 }
 0x6b7   :  { %3879 = vmatpush3.bf16.msra.mxu1 %v923_v49 }
 0x6b9   :  { %v993_v50 = vpop.permute.xlu1 %992 }
 0x6ba   :  { %4145 = vmatprep.subr.msk.bf16.mxu1 %vm826_vm12, %v993_v50  ;;  %v1004_v3 = vsel %vm826_vm12, %v993_v50, 0 }
 0x6bb   :  { %v4233_v51 = vpop.eup %4232 }
 0x6bc   :  { %v4235_v53 = vpop.eup %4234  ;;  %v919_v59 = vmul.f32 %v4233_v51, %v4229_v36 }
 0x6bd   :  { %v918_v61 = vmul.f32 %v4235_v53, %v4227_v32  ;;  %v991_v4 = vpop.permute.xlu1 %990 }
 0x6be   :  { %v921_v0 = vpack.c.bf16 %v919_v59, %v919_v59  ;;  %v1001_v5 = vsel %vm826_vm12, %v991_v4, 0 }
 0x6bf   :  { %v4237_v54 = vpop.eup %4236 }
 0x6c0   :  { %v917_v60 = vmul.f32 %v4237_v54, %v4231_v40 }
 0x6c1   :  { %v989_v6 = vpop.permute.xlu1 %988 }
 0x6c2   :  { %v920_v63 = vpack.c.bf16 %v918_v61, %v917_v60 }
 0x6c4   :  { %3880 = vmatprep.mubr.msk.bf16.mxu1 %vm441_vm3, %v920_v63 }
 0x6c5   :  { %3881 = vmatmul.mubr.msk.bf16.vlgmr.msra.gmra.mxu1 %vm441_vm3, %v921_v0 }
 0x6c6   :  { %3885 = vmatpush3.bf16.xpose.msra.mxu1 %v1004_v3  ;;  %3888 = vmatprep.mubr.msk.bf16.mxu1 %vm826_vm12, %v987_v2 }
 0x6c7   :  { %4146 = vmatprep.subr.msk.bf16.mxu1 %vm826_vm12, %v991_v4 }
 0x6ce   :  { %3887 = vmatpush3.bf16.xpose.msra.mxu1 %v1001_v5 }
 0x6cf   :  { %4149 = vmatprep.subr.msk.bf16.mxu1 %vm451_vm15, %v404_v7 }
 0x6d5   :  { %3889 = vmatmul.mubr.msk.bf16.vlgmr.msra.gmra.mxu1 %vm826_vm12, %v989_v6 }
 0x6d6   :  { %3907 = vmatpush3.bf16.msra.mxu1 %v1217_v11  ;;  %v405_v11 = vld [vmem:[%s5227_s9 + $0x24] sm:$0xf] }
 0x785   :  { %v3882_v19 = vpop.f32.mrf.mxu1 }
 0x786   :  { %v985_v18 = vpack.c.bf16 %v3882_v19, %v3882_v19 }
 0x787   :  { %v970_v13 = vpop.f32.mrf.mxu1 }
 0x789   :  { %v3883_v15 = vpop.f32.mrf.mxu1 }
 0x78b   :  { %v973_v16 = vpop.f32.mrf.mxu1 }
 0x78c   :  { %v984_v17 = vpack.c.bf16 %v973_v16, %v970_v13 }
 0x78e   :  { %3908 = vmatprep.mubr.msk.bf16.mxu1 %vm826_vm12, %v984_v17 }
 0x78f   :  { %3909 = vmatmul.mubr.msk.bf16.vlgmr.msra.gmra.mxu1 %vm826_vm12, %v985_v18 }
 0x795   :  { %v3890_v23 = vpop.f32.mrf.mxu1 }
 0x796   :  { %v1049_v28 = vadd.f32 %v3890_v23, %v4672_v8 }
 0x797   :  { %v1040_v24 = vpop.f32.mrf.mxu1 }
 0x798   :  { %v1041_v25 = vadd.f32 %v1040_v24, %v4668_v1  ;;  %v1060_v36 = vsel %vm441_vm3, %v1049_v28, -inf }
 0x799   :  { %v3891_v26 = vpop.f32.mrf.mxu1 }
 0x79a   :  { %v1054_v21 = vsel %vm441_vm3, %v1041_v25, -inf }
 0x79b   :  { %v1043_v30 = vpop.f32.mrf.mxu1  ;;  %1055 = vmax.xlane.f32.xlu0 %v1054_v21 }
 0x79c   :  { %v1044_v32 = vadd.f32 %v1043_v30, %v4674_v9 }
 0x79e   :  { %v1057_v34 = vsel %vm441_vm3, %v1044_v32, -inf }
 0x79f   :  { %1058 = vmax.xlane.f32.xlu1 %v1057_v34  ;;  %1061 = vmax.xlane.f32.xlu0 %v1060_v36 }
 0x824   :  { %v1056_v39 = vpop.xlane.xlu0 %1055 }
 0x825   :  { %v1063_v40 = vsub.f32 %v1041_v25, %v1056_v39  ;;  %v1160_v25 = vsel %vm451_vm15, %v405_v11, 0 }
 0x827   :  { %v1066_v42 = vmul.f32 1.442695, %v1063_v40 }
 0x828   :  { %v1059_v43 = vpop.xlane.xlu1 %1058  ;;  %v1062_v44 = vpop.xlane.xlu0 %1061 }
 0x829   :  { %4238 = vpow2.f32 %v1066_v42  ;;  %v1064_v46 = vsub.f32 %v1044_v32, %v1059_v43  ;;  %v1065_v47 = vsub.f32 %v1049_v28, %v1062_v44 }
 0x82b   :  { %v1068_v48 = vmul.f32 1.442695, %v1064_v46  ;;  %v1070_v49 = vmul.f32 1.442695, %v1065_v47 }
 0x82d   :  { %4240 = vpow2.f32 %v1068_v48 }
 0x82e   :  { %4242 = vpow2.f32 %v1070_v49 }
 0x836   :  { %v4239_v50 = vpop.eup %4238 }
 0x837   :  { %v1072_v51 = vsel %vm441_vm3, %v4239_v50, 0.0 }
 0x838   :  { %1073 = vadd.xlane.f32.xlu0 %v1072_v51 }
 0x83a   :  { %v4241_v53 = vpop.eup %4240 }
 0x83b   :  { %v4243_v54 = vpop.eup %4242  ;;  %v1075_v59 = vsel %vm441_vm3, %v4241_v53, 0.0 }
 0x83c   :  { %1076 = vadd.xlane.f32.xlu0 %v1075_v59  ;;  %v1078_v60 = vsel %vm441_vm3, %v4243_v54, 0.0 }
 0x83d   :  { %1079 = vadd.xlane.f32.xlu1 %v1078_v60 }
 0x84e   :  { %1089 = vrot.lane.b32.xlu1 %v4638_v45, %s4359_s13 }
 0x84f   :  { %v4723_v61 = vpop.f32.mrf.mxu1 }
 0x851   :  { %v4725_v63 = vpop.f32.mrf.mxu1 }
 0x852   :  { %1273 = vrot.lane.b32.xlu1 %v4632_v38, %s4360_s14  ;;  %1091 = vrot.lane.b32.xlu0 %v4632_v38, %s4359_s13 }
 0x853   :  { %v3911_v0 = vpop.f32.mrf.mxu1 }
 0x856   :  { %1271 = vrot.lane.b32.xlu1 %v4638_v45, %s4360_s14  ;;  %1267 = vrot.lane.b32.xlu0 %v4638_v45, %s4361_s15 }
 0x85a   :  { %1269 = vrot.lane.b32.xlu1 %v4632_v38, %s4361_s15  ;;  %1500 = vrot.lane.b32.xlu0 %v4632_v38, %s4362_s16 }
 0x85e   :  { %1498 = vrot.lane.b32.xlu1 %v4638_v45, %s4362_s16  ;;  %1494 = vrot.lane.b32.xlu0 %v4638_v45, %s4363_s0 }
 0x862   :  { %1496 = vrot.lane.b32.xlu1 %v4632_v38, %s4363_s0 }
 0x8c1   :  { %v1074_v2 = vpop.xlane.xlu0 %1073 }
 0x8c2   :  { %4244 = vrcp.f32 %v1074_v2 }
 0x8c5   :  { %v1077_v3 = vpop.xlane.xlu0 %1076 }
 0x8c6   :  { %v1080_v4 = vpop.xlane.xlu1 %1079  ;;  %4246 = vrcp.f32 %v1077_v3 }
 0x8c7   :  { %4248 = vrcp.f32 %v1080_v4 }
 0x8c9   :  { %v1092_v5 = vpop.permute.xlu0 %1091 }
 0x8ca   :  { %v1101_v6 = vsel %vm451_vm15, %v1092_v5, 0  ;;  %4147 = vmatprep.subr.msk.bf16.mxu0 %vm451_vm15, %v1092_v5  ;;  %v1090_v7 = vpop.permute.xlu1 %1089 }
 0x8cb   :  { %3893 = vmatpush3.bf16.msra.mxu0 %v1101_v6 }
 0x8cc   :  { %3894 = vmatprep.subr.bf16.mxu0 %v1090_v7 }
 0x8cd   :  { %v1268_v40 = vpop.permute.xlu0 %1267 }
 0x8ce   :  { %v1274_v26 = vpop.permute.xlu1 %1273 }
 0x8cf   :  { %3895 = vmatpush3.bf16.msra.mxu0 %v1090_v7  ;;  %v4245_v19 = vpop.eup %4244  ;;  %v1285_v39 = vsel %vm826_vm12, %v1274_v26, 0 }
 0x8d0   :  { %4148 = vmatprep.subr.msk.bf16.mxu0 %vm451_vm15, %v405_v11  ;;  %v1084_v16 = vmul.f32 %v4245_v19, %v4239_v50 }
 0x8d1   :  { %v1501_v44 = vpop.permute.xlu0 %1500 }
 0x8d2   :  { %v1272_v42 = vpop.permute.xlu1 %1271  ;;  %v1512_v47 = vsel %vm826_vm12, %v1501_v44, 0 }
 0x8d3   :  { %v4247_v13 = vpop.eup %4246  ;;  %v1282_v43 = vsel %vm826_vm12, %v1272_v42, 0 }
 0x8d4   :  { %v4249_v15 = vpop.eup %4248  ;;  %v1085_v17 = vmul.f32 %v4247_v13, %v4241_v53 }
 0x8d5   :  { %v1086_v18 = vmul.f32 %v4249_v15, %v4243_v54  ;;  %v1495_v48 = vpop.permute.xlu0 %1494 }
 0x8d6   :  { %v1087_v23 = vpack.c.bf16 %v1085_v17, %v1084_v16  ;;  %v1270_v46 = vpop.permute.xlu1 %1269 }
 0x8d7   :  { %v1088_v24 = vpack.c.bf16 %v1086_v18, %v1086_v18 }
 0x8d8   :  { %3896 = vmatprep.mubr.msk.bf16.mxu0 %vm441_vm3, %v1087_v23 }
 0x8d9   :  { %3897 = vmatmul.mubr.msk.bf16.vlgmr.msra.gmra.mxu0 %vm441_vm3, %v1088_v24 }
 0x8da   :  { %3901 = vmatpush3.bf16.msra.mxu0 %v1160_v25  ;;  %v1499_v49 = vpop.permute.xlu1 %1498 }
 0x8db   :  { %4150 = vmatprep.subr.msk.bf16.mxu0 %vm826_vm12, %v1274_v26  ;;  %v1509_v50 = vsel %vm826_vm12, %v1499_v49, 0 }
 0x8de   :  { %v1497_v51 = vpop.permute.xlu1 %1496 }
 0x999   :  { %v3898_v28 = vpop.f32.mrf.mxu0 }
 0x99a   :  { %v1152_v36 = vpack.c.bf16 %v3898_v28, %v3898_v28 }
 0x99b   :  { %v1137_v21 = vpop.f32.mrf.mxu0 }
 0x99d   :  { %v3899_v30 = vpop.f32.mrf.mxu0 }
 0x99f   :  { %v1140_v32 = vpop.f32.mrf.mxu0 }
 0x9a0   :  { %v1151_v34 = vpack.c.bf16 %v1140_v32, %v1137_v21 }
 0x9a2   :  { %3902 = vmatprep.mubr.msk.bf16.mxu0 %vm826_vm12, %v1151_v34 }
 0x9a3   :  { %3903 = vmatmul.mubr.msk.bf16.vlgmr.msra.gmra.mxu0 %vm826_vm12, %v1152_v36 }
 0x9a4   :  { %3913 = vmatpush3.bf16.xpose.msra.mxu0 %v1285_v39  ;;  %3916 = vmatprep.mubr.msk.bf16.mxu0 %vm826_vm12, %v1268_v40 }
 0x9a5   :  { %4151 = vmatprep.subr.msk.bf16.mxu0 %vm826_vm12, %v1272_v42 }
 0x9ac   :  { %3915 = vmatpush3.bf16.xpose.msra.mxu0 %v1282_v43 }
 0x9ad   :  { %4154 = vmatprep.subr.msk.bf16.mxu0 %vm826_vm12, %v1501_v44 }
 0x9b3   :  { %3917 = vmatmul.mubr.msk.bf16.vlgmr.msra.gmra.mxu0 %vm826_vm12, %v1270_v46 }
 0x9b4   :  { %3935 = vmatpush3.bf16.xpose.msra.mxu0 %v1512_v47  ;;  %3938 = vmatprep.mubr.msk.bf16.mxu0 %vm826_vm12, %v1495_v48 }
 0x9b5   :  { %4155 = vmatprep.subr.msk.bf16.mxu0 %vm826_vm12, %v1499_v49 }
 0x9bc   :  { %3937 = vmatpush3.bf16.xpose.msra.mxu0 %v1509_v50 }
 0x9c3   :  { %3939 = vmatmul.mubr.msk.bf16.vlgmr.msra.gmra.mxu0 %vm826_vm12, %v1497_v51 }
 0xa63   :  { %v4768_v53 = vpop.f32.mrf.mxu0 }
 0xa65   :  { %v4770_v54 = vpop.f32.mrf.mxu0 }
 0xa67   :  { %v3905_v59 = vpop.f32.mrf.mxu0 }
 0xa69   :  { %v4772_v60 = vpop.f32.mrf.mxu0 }
 0xa73   :  { %v3918_v0 = vpop.f32.mrf.mxu0 }
 0xa74   :  { %v1330_v5 = vadd.f32 %v3918_v0, %v4672_v8 }
 0xa75   :  { %v1321_v2 = vpop.f32.mrf.mxu0 }
 0xa76   :  { %v1322_v3 = vadd.f32 %v1321_v2, %v4668_v1  ;;  %v1341_v13 = vsel %vm441_vm3, %v1330_v5, -inf }
 0xa77   :  { %v3919_v4 = vpop.f32.mrf.mxu0 }
 0xa78   :  { %v1335_v6 = vsel %vm441_vm3, %v1322_v3, -inf }
 0xa79   :  { %v1324_v7 = vpop.f32.mrf.mxu0  ;;  %1336 = vmax.xlane.f32.xlu0 %v1335_v6 }
 0xa7a   :  { %v1325_v11 = vadd.f32 %v1324_v7, %v4674_v9 }
 0xa7c   :  { %v1338_v19 = vsel %vm441_vm3, %v1325_v11, -inf }
 0xa7d   :  { %1339 = vmax.xlane.f32.xlu1 %v1338_v19  ;;  %1342 = vmax.xlane.f32.xlu0 %v1341_v13 }
 0xa83   :  { %v3940_v15 = vpop.f32.mrf.mxu0 }
 0xa84   :  { %v1557_v48 = vadd.f32 %v3940_v15, %v4672_v8 }
 0xa85   :  { %v1548_v16 = vpop.f32.mrf.mxu0 }
 0xa86   :  { %v1549_v47 = vadd.f32 %v1548_v16, %v4668_v1  ;;  %v1568_v51 = vsel %vm441_vm3, %v1557_v48, -inf }
 0xa87   :  { %v3941_v17 = vpop.f32.mrf.mxu0 }
 0xa88   :  { %v1562_v50 = vsel %vm441_vm3, %v1549_v47, -inf }
 0xa89   :  { %v1551_v44 = vpop.f32.mrf.mxu0 }
 0xa8a   :  { %v1552_v46 = vadd.f32 %v1551_v44, %v4674_v9  ;;  %v406_v44 = vld [vmem:[%s5227_s9 + $0x28] sm:$0xf] }
 0xa8c   :  { %v1565_v49 = vsel %vm441_vm3, %v1552_v46, -inf }
 0xb02   :  { %v1337_v18 = vpop.xlane.xlu0 %1336 }
 0xb03   :  { %v1344_v23 = vsub.f32 %v1322_v3, %v1337_v18 }
 0xb05   :  { %v1347_v24 = vmul.f32 1.442695, %v1344_v23 }
 0xb06   :  { %v1340_v25 = vpop.xlane.xlu1 %1339  ;;  %v1343_v26 = vpop.xlane.xlu0 %1342 }
 0xb07   :  { %4250 = vpow2.f32 %v1347_v24  ;;  %v1345_v28 = vsub.f32 %v1325_v11, %v1340_v25  ;;  %v1346_v21 = vsub.f32 %v1330_v5, %v1343_v26 }
 0xb09   :  { %v1349_v30 = vmul.f32 1.442695, %v1345_v28  ;;  %v1351_v32 = vmul.f32 1.442695, %v1346_v21 }
 0xb0b   :  { %4252 = vpow2.f32 %v1349_v30 }
 0xb0c   :  { %4254 = vpow2.f32 %v1351_v32 }
 0xb14   :  { %v4251_v34 = vpop.eup %4250 }
 0xb15   :  { %v1353_v36 = vsel %vm441_vm3, %v4251_v34, 0.0 }
 0xb16   :  { %1354 = vadd.xlane.f32.xlu0 %v1353_v36 }
 0xb18   :  { %v4253_v39 = vpop.eup %4252 }
 0xb19   :  { %v4255_v40 = vpop.eup %4254  ;;  %v1356_v42 = vsel %vm441_vm3, %v4253_v39, 0.0 }
 0xb1a   :  { %1357 = vadd.xlane.f32.xlu0 %v1356_v42  ;;  %v1359_v43 = vsel %vm441_vm3, %v4255_v40, 0.0 }
 0xb1b   :  { %1360 = vadd.xlane.f32.xlu1 %v1359_v43 }
 0xb2c   :  { %1370 = vrot.lane.b32.xlu1 %v4638_v45, %s4364_s19 }
 0xb30   :  { %1372 = vrot.lane.b32.xlu0 %v4632_v38, %s4364_s19 }
 0xb4f   :  { %1566 = vmax.xlane.f32.xlu0 %v1565_v49 }
 0xb50   :  { %1563 = vmax.xlane.f32.xlu1 %v1562_v50 }
 0xb53   :  { %1569 = vmax.xlane.f32.xlu0 %v1568_v51 }
 0xb9f   :  { %v1355_v59 = vpop.xlane.xlu0 %1354 }
 0xba0   :  { %4256 = vrcp.f32 %v1355_v59 }
 0xba3   :  { %v1358_v0 = vpop.xlane.xlu0 %1357 }
 0xba4   :  { %v1361_v2 = vpop.xlane.xlu1 %1360  ;;  %4258 = vrcp.f32 %v1358_v0 }
 0xba5   :  { %4260 = vrcp.f32 %v1361_v2 }
 0xba7   :  { %v1373_v3 = vpop.permute.xlu0 %1372 }
 0xba8   :  { %v1382_v4 = vsel %vm451_vm15, %v1373_v3, 0  ;;  %4152 = vmatprep.subr.msk.bf16.mxu1 %vm451_vm15, %v1373_v3  ;;  %v1371_v5 = vpop.permute.xlu1 %1370 }
 0xba9   :  { %3921 = vmatpush3.bf16.msra.mxu1 %v1382_v4 }
 0xbaa   :  { %3922 = vmatprep.subr.bf16.mxu1 %v1371_v5 }
 0xbad   :  { %3923 = vmatpush3.bf16.msra.mxu1 %v1371_v5  ;;  %v4257_v6 = vpop.eup %4256 }
 0xbae   :  { %v1365_v19 = vmul.f32 %v4257_v6, %v4251_v34  ;;  %4153 = vmatprep.subr.msk.bf16.mxu1 %vm451_vm15, %v406_v44 }
 0xbb1   :  { %v4259_v7 = vpop.eup %4258 }
 0xbb2   :  { %v4261_v11 = vpop.eup %4260  ;;  %v1366_v13 = vmul.f32 %v4259_v7, %v4253_v39 }
 0xbb3   :  { %v1367_v15 = vmul.f32 %v4261_v11, %v4255_v40 }
 0xbb4   :  { %v1368_v16 = vpack.c.bf16 %v1366_v13, %v1365_v19 }
 0xbb5   :  { %v1369_v17 = vpack.c.bf16 %v1367_v15, %v1367_v15 }
 0xbb6   :  { %3924 = vmatprep.mubr.msk.bf16.mxu1 %vm441_vm3, %v1368_v16 }
 0xbb7   :  { %3925 = vmatmul.mubr.msk.bf16.vlgmr.msra.gmra.mxu1 %vm441_vm3, %v1369_v17 }
 0xbd8   :  { %v1567_v18 = vpop.xlane.xlu0 %1566 }
 0xbd9   :  { %v1564_v23 = vpop.xlane.xlu1 %1563  ;;  %v1572_v24 = vsub.f32 %v1552_v46, %v1567_v18  ;;  %v1441_v46 = vsel %vm451_vm15, %v406_v44, 0  ;;  %v407_v18 = vld [vmem:[%s5227_s9 + $0x2c] sm:$0xf] }
 0xbda   :  { %v1571_v25 = vsub.f32 %v1549_v47, %v1564_v23  ;;  %3929 = vmatpush3.bf16.msra.mxu1 %v1441_v46  ;;  %v1256_v47 = vpop.f32.mrf.mxu1  ;;  %v1668_v23 = vsel %vm451_vm15, %v407_v18, 0 }
 0xbdb   :  { %v1576_v26 = vmul.f32 1.442695, %v1572_v24  ;;  %v1262_v24 = vadd.f32 %v4723_v61, %v4768_v53  ;;  %v4208_v61 = vld [vmem:[%s5228_s10 + $0x18] sm:$0xff]   ;;  %v4210_v53 = vld [vmem:[%s5227_s9 + $0x48] sm:$0xff]  }
 0xbdc   :  { %v1570_v28 = vpop.xlane.xlu0 %1569  ;;  %v1574_v30 = vmul.f32 1.442695, %v1571_v25  ;;  %3956 = vmatprep.subr.bf16.mxu0 %v4208_v61 }
 0xbdd   :  { %4262 = vpow2.f32 %v1576_v26  ;;  %v1573_v21 = vsub.f32 %v1557_v48, %v1570_v28  ;;  %v1254_v26 = vadd.f32 %v4725_v63, %v4770_v54  ;;  %v4209_v63 = vld [vmem:[%s5228_s10 + $0x10] sm:$0xff]   ;;  %3957 = vmatpush3.bf16.msra.mxu0 %v4208_v61  ;;  %v4838_v54 = vsub.s32 1, %v4479_v56 }
 0xbde   :  { %3958 = vmatprep.subr.bf16.mxu0 %v4209_v63 }
 0xbdf   :  { %v1578_v32 = vmul.f32 1.442695, %v1573_v21 }
 0xbe1   :  { %4264 = vpow2.f32 %v1578_v32  ;;  %3959 = vmatpush3.bf16.msra.mxu0 %v4209_v63 }
 0xbe2   :  { %4266 = vpow2.f32 %v1574_v30  ;;  %3976 = vmatprep.subr.bf16.mxu0 %v4351_v52 }
 0xbea   :  { %v4263_v34 = vpop.eup %4262 }
 0xbeb   :  { %v1583_v36 = vsel %vm441_vm3, %v4263_v34, 0.0 }
 0xbec   :  { %1584 = vadd.xlane.f32.xlu0 %v1583_v36 }
 0xbee   :  { %v4265_v39 = vpop.eup %4264 }
 0xbef   :  { %v1586_v40 = vsel %vm441_vm3, %v4265_v39, 0.0  ;;  %v4267_v42 = vpop.eup %4266 }
 0xbf0   :  { %1587 = vadd.xlane.f32.xlu1 %v1586_v40  ;;  %v1580_v43 = vsel %vm441_vm3, %v4267_v42, 0.0 }
 0xbf4   :  { %1581 = vadd.xlane.f32.xlu1 %v1580_v43 }
 0xc02   :  { %1599 = vrot.lane.b32.xlu0 %v4632_v38, %s4365_s23 }
 0xc05   :  { %1597 = vrot.lane.b32.xlu1 %v4638_v45, %s4365_s23 }
 0xc75   :  { %v1585_v48 = vpop.xlane.xlu0 %1584 }
 0xc77   :  { %v3926_v49 = vpop.f32.mrf.mxu1 }
 0xc78   :  { %v1433_v5 = vpack.c.bf16 %v3926_v49, %v3926_v49 }
 0xc79   :  { %v1418_v50 = vpop.f32.mrf.mxu1  ;;  %v1588_v51 = vpop.xlane.xlu1 %1587 }
 0xc7a   :  { %v1600_v59 = vpop.permute.xlu0 %1599  ;;  %4268 = vrcp.f32 %v1588_v51 }
 0xc7b   :  { %4156 = vmatprep.subr.msk.bf16.mxu1 %vm451_vm15, %v1600_v59  ;;  %v3927_v0 = vpop.f32.mrf.mxu1  ;;  %4270 = vrcp.f32 %v1585_v48  ;;  %v1609_v38 = vsel %vm451_vm15, %v1600_v59, 0  ;;  %v1733_v59 = vsub.s32 6, %v4479_v56 }
 0xc7c   :  { %v744_v0 = vsub.s32 5, %v4479_v56 }
 0xc7d   :  { %v1421_v2 = vpop.f32.mrf.mxu1  ;;  %v1582_v3 = vpop.xlane.xlu1 %1581 }
 0xc7e   :  { %v1432_v4 = vpack.c.bf16 %v1421_v2, %v1418_v50  ;;  %4272 = vrcp.f32 %v1582_v3 }
 0xc80   :  { %3930 = vmatprep.mubr.msk.bf16.mxu1 %vm826_vm12, %v1432_v4  ;;  %v738_v4 = vrot.slane %v4623_v27, %v4482_v58 }
 0xc81   :  { %3931 = vmatmul.mubr.msk.bf16.vlgmr.msra.gmra.mxu1 %vm826_vm12, %v1433_v5  ;;  %v1598_v45 = vpop.permute.xlu1 %1597 }
 0xc82   :  { %3943 = vmatpush3.bf16.msra.mxu1 %v1609_v38  ;;  %v1740_v38 = vsub.s32 7, %v4479_v56 }
 0xc83   :  { %3944 = vmatprep.subr.bf16.mxu1 %v1598_v45 }
 0xc86   :  { %3945 = vmatpush3.bf16.msra.mxu1 %v1598_v45 }
 0xc87   :  { %v4269_v6 = vpop.eup %4268  ;;  %4157 = vmatprep.subr.msk.bf16.mxu1 %vm451_vm15, %v407_v18 }
 0xc88   :  { %v4271_v7 = vpop.eup %4270  ;;  %v1594_v19 = vmul.f32 %v4269_v6, %v4265_v39 }
 0xc89   :  { %v1593_v15 = vmul.f32 %v4271_v7, %v4263_v34  ;;  %v1257_v34 = vadd.f32 %v1256_v47, %v4772_v60  ;;  %v665_v60 = vrot.slane %v4623_v27, %v4838_v54  ;;  %v4843_v47 = vsub.s32 3, %v4479_v56 }
 0xc8a   :  { %v1596_v17 = vpack.c.bf16 %v1594_v19, %v1594_v19  ;;  %v1734_v7 = vrot.slane %v4623_v27, %v1733_v59  ;;  %v745_v19 = vrot.slane %v4623_v27, %v744_v0 }
 0xc8b   :  { %v4273_v11 = vpop.eup %4272  ;;  %v727_v49 = vadd.f32 %v4659_v55, %v665_v60  ;;  %v719_v50 = vadd.f32 %v4661_v57, %v665_v60  ;;  %v1724_v51 = vrot.slane %v4623_v27, %v4843_v47  ;;  %v722_v57 = vadd.f32 %v4666_v62, %v665_v60  ;;  %v4322_v60 = vld [vmem:[%s5226_s8 + $0x8] sm:$0x1f] }
 0xc8c   :  { %v1592_v13 = vmul.f32 %v4273_v11, %v4267_v42 }
 0xc8d   :  { %v734_v3 = vadd.f32 %v727_v49, %v4497_v10  ;;  %v732_v55 = vadd.f32 %v719_v50, %v4506_v20  ;;  %v1753_v49 = vrot.slane %v4322_v60, %v4618_v12 }
 0xc8e   :  { %v1595_v16 = vpack.c.bf16 %v1593_v15, %v1592_v13 }
 0xc8f   :  { %v741_v15 = vmul.f32 %v738_v4, %v734_v3  ;;  %v739_v62 = vmul.f32 %v738_v4, %v732_v55 }
 0xc90   :  { %3946 = vmatprep.mubr.msk.bf16.mxu1 %vm441_vm3, %v1595_v16 }
 0xc91   :  { %3947 = vmatmul.mubr.msk.bf16.vlgmr.msra.gmra.mxu1 %vm441_vm3, %v1596_v17  ;;  %v1741_v17 = vrot.slane %v4623_v27, %v1740_v38 }
 0xc92   :  { %3951 = vmatpush3.bf16.msra.mxu1 %v1668_v23 }
 0xc93   :  { %3964 = vmatprep.subr.bf16.mxu1 %v4210_v53 }
 0xd41   :  { %v3932_v25 = vpop.f32.mrf.mxu1 }
 0xd42   :  { %v1493_v28 = vadd.f32 %v3932_v25, %v1262_v24  ;;  %v733_v24 = vadd.f32 %v722_v57, %v4508_v22 }
 0xd43   :  { %v1477_v21 = vpop.f32.mrf.mxu1 }
 0xd44   :  { %v1491_v30 = vadd.f32 %v1477_v21, %v1254_v26  ;;  %v748_v21 = vadd.f32 %v745_v19, %v741_v15 }
 0xd45   :  { %v3933_v32 = vpop.f32.mrf.mxu1 }
 0xd47   :  { %v1480_v36 = vpop.f32.mrf.mxu1 }
 0xd48   :  { %v1492_v39 = vadd.f32 %v1480_v36, %v1257_v34  ;;  %v746_v36 = vadd.f32 %v745_v19, %v739_v62 }
 0xd51   :  { %v3948_v40 = vpop.f32.mrf.mxu1 }
 0xd52   :  { %v1660_v48 = vpack.c.bf16 %v3948_v40, %v3948_v40  ;;  %v740_v40 = vmul.f32 %v738_v4, %v733_v24 }
 0xd53   :  { %v1645_v42 = vpop.f32.mrf.mxu1 }
 0xd55   :  { %v3949_v43 = vpop.f32.mrf.mxu1 }
 0xd57   :  { %v1648_v44 = vpop.f32.mrf.mxu1 }
 0xd58   :  { %v1659_v46 = vpack.c.bf16 %v1648_v44, %v1645_v42 }
 0xd5a   :  { %3952 = vmatprep.mubr.msk.bf16.mxu1 %vm826_vm12, %v1659_v46  ;;  %v747_v46 = vadd.f32 %v745_v19, %v740_v40  ;;  %v4323_v19 = vld [vmem:[%s5221_s3] sm:$0xff]  }
 0xd5b   :  { %3953 = vmatmul.mubr.msk.bf16.vlgmr.msra.gmra.mxu1 %vm826_vm12, %v1660_v48 }
 0xd5c   :  { %3965 = vmatpush3.bf16.msra.mxu1 %v4210_v53 }
 0xe1b   :  { %v3954_v2 = vpop.f32.mrf.mxu1 }
 0xe1c   :  { %v1720_v5 = vadd.f32 %v3954_v2, %v1493_v28 }
 0xe1d   :  { %v1704_v45 = vpop.f32.mrf.mxu1 }
 0xe1e   :  { %v1727_v6 = vadd.f32 %v1724_v51, %v1720_v5  ;;  %v1718_v11 = vadd.f32 %v1704_v45, %v1491_v30 }
 0xe1f   :  { %v3955_v13 = vpop.f32.mrf.mxu1 }
 0xe20   :  { %v1730_v16 = vadd.f32 %v1727_v6, %v4497_v10  ;;  %v1725_v18 = vadd.f32 %v1724_v51, %v1718_v11  ;;  %v1828_v13 = vrot.slane %v4322_v60, %v4838_v54 }
 0xe21   :  { %v1707_v23 = vpop.f32.mrf.mxu1 }
 0xe22   :  { %v1737_v25 = vmul.f32 %v1734_v7, %v1730_v16  ;;  %v1728_v26 = vadd.f32 %v1725_v18, %v4506_v20  ;;  %v1719_v28 = vadd.f32 %v1707_v23, %v1492_v39  ;;  %v4211_v20 = vld [vmem:[%s5227_s9 + $0x40] sm:$0xff]   ;;  %v4213_v39 = vld [vmem:[%s5227_s9 + $0x30] sm:$0xff]   ;;  %v1921_v23 = vrot.slane %v4322_v60, %v4843_v47 }
 0xe23   :  { %3966 = vmatprep.subr.bf16.mxu1 %v4211_v20 }
 0xe24   :  { %v1744_v30 = vadd.f32 %v1741_v17, %v1737_v25  ;;  %v1735_v32 = vmul.f32 %v1734_v7, %v1728_v26  ;;  %v1726_v34 = vadd.f32 %v1724_v51, %v1719_v28  ;;  %3967 = vmatpush3.bf16.msra.mxu1 %v4211_v20 }
 0xe26   :  { %v1747_v10 = vadd.f32 %v1744_v30, %v748_v21  ;;  %v1742_v42 = vadd.f32 %v1741_v17, %v1735_v32  ;;  %v1729_v43 = vadd.f32 %v1726_v34, %v4508_v22  ;;  %v4212_v22 = vld [vmem:[%s5227_s9 + $0x38] sm:$0xff]  }
 0xe27   :  { %3968 = vmatprep.subr.bf16.mxu1 %v4212_v22 }
 0xe28   :  { %v1736_v27 = vmul.f32 %v1734_v7, %v1729_v43  ;;  %v1745_v44 = vadd.f32 %v1742_v42, %v746_v36  ;;  %v1749_v53 = vpack.c.bf16 %v1747_v10, %v1747_v10  ;;  %3969 = vmatpush3.bf16.msra.mxu1 %v4212_v22 }
 0xe29   :  { %3970 = vmatprep.subr.bf16.mxu1 %v4213_v39 }
 0xe2a   :  { %v1743_v48 = vadd.f32 %v1741_v17, %v1736_v27  ;;  %v1914_v17 = vrot.slane %v4322_v60, %v4628_v14 }
 0xe2c   :  { %v1746_v61 = vadd.f32 %v1743_v48, %v747_v46  ;;  %3971 = vmatpush3.bf16.msra.mxu1 %v4213_v39  ;;  %v4324_v46 = vld [vmem:[%s5220_s2] sm:$0xff]   ;;  %v4325_v48 = vld [vmem:[%s5220_s2 + $0x8] sm:$0xff]  }
 0xe2e   :  { %v1748_v63 = vpack.c.bf16 %v1746_v61, %v1745_v44 }
 0xe30   :  { %3960 = vmatprep.mubr.msk.bf16.mxu0 %vm602_vm0, %v1748_v63 }
 0xe31   :  { %3961 = vmatmul.mubr.msk.bf16.vlgmr.msra.gmra.mxu0 %vm602_vm0, %v1749_v53 }
 0xe32   :  { %3980 = vmatprep.mubr.msk.bf16.mxu0 %vm4352_vm2, %v4351_v52 }
 0xef1   :  { %v3962_v50 = vpop.f32.mrf.mxu0 }
 0xef2   :  { %v1815_v2 = vadd.f32 %v3962_v50, %v1753_v49 }
 0xef3   :  { %v1806_v51 = vpop.f32.mrf.mxu0 }
 0xef4   :  { %v1807_v4 = vadd.f32 %v1806_v51, %v1753_v49  ;;  %v1822_v45 = vmax.f32 %v1815_v2, 0.0 }
 0xef5   :  { %v3963_v3 = vpop.f32.mrf.mxu0 }
 0xef6   :  { %v1820_v57 = vmax.f32 %v1807_v4, 0.0  ;;  %v1824_v11 = vpack.c.bf16 %v1822_v45, %v1822_v45 }
 0xef7   :  { %v1809_v5 = vpop.f32.mrf.mxu0 }
 0xef8   :  { %v1810_v55 = vadd.f32 %v1809_v5, %v1753_v49 }
 0xefa   :  { %v1821_v6 = vmax.f32 %v1810_v55, 0.0 }
 0xefc   :  { %v1823_v7 = vpack.c.bf16 %v1821_v6, %v1820_v57 }
 0xefe   :  { %3972 = vmatprep.mubr.msk.bf16.mxu1 %vm1853_vm4, %v1823_v7 }
 0xeff   :  { %3973 = vmatmul.mubr.msk.bf16.vlgmr.msra.gmra.mxu1 %vm1853_vm4, %v1824_v11 }
 0xf00   :  { %3998 = vmatprep.mubr.msk.bf16.mxu1 %vm529_vm11, %v4323_v19 }
 0xfbf   :  { %v3974_v15 = vpop.f32.mrf.mxu1 }
 0xfc0   :  { %v1903_v16 = vadd.f32 %v3974_v15, %v1828_v13 }
 0xfc1   :  { %v1894_v18 = vpop.f32.mrf.mxu1 }
 0xfc2   :  { %v1910_v62 = vadd.f32 %v1903_v16, %v1747_v10  ;;  %v1895_v24 = vadd.f32 %v1894_v18, %v1828_v13 }
 0xfc3   :  { %v3975_v25 = vpop.f32.mrf.mxu1 }
 0xfc4   :  { %v1917_v26 = vmul.f32 %v1914_v17, %v1910_v62  ;;  %v1908_v28 = vadd.f32 %v1895_v24, %v1745_v44 }
 0xfc5   :  { %v1897_v21 = vpop.f32.mrf.mxu1 }
 0xfc6   :  { %v4896_v30 = vadd.f32 %v1921_v23, %v1917_v26  ;;  %v1898_v32 = vadd.f32 %v1897_v21, %v1828_v13  ;;  %v1915_v34 = vmul.f32 %v1914_v17, %v1908_v28 }
 0xfc8   :  { %v1909_v36 = vadd.f32 %v1898_v32, %v1746_v61  ;;  %v4900_v40 = vpack.c.bf16 %v4896_v30, %v4896_v30  ;;  %v4904_v43 = vadd.f32 %v1921_v23, %v1915_v34  ;;  %v4326_v61 = vld [vmem:[%s5220_s2 + $0x10] sm:$0xff]  }
 0xfca   :  { %v1916_v42 = vmul.f32 %v1914_v17, %v1909_v36  ;;  %v1961_v10 = vsel %vm451_vm15, %v4900_v40, 0  ;;  %v4217_v36 = vld [vmem:[%s5228_s10 + $0x20] sm:$0xff]  }
 0xfcb   :  { %3977 = vmatpush3.bf16.msra.mxu0 %v1961_v10  ;;  %v4219_v10 = vld [vmem:[%s5227_s9 + $0x60] sm:$0xff]  }
 0xfcc   :  { %v4906_v27 = vadd.f32 %v1921_v23, %v1916_v42  ;;  %3978 = vmatprep.subr.bf16.mxu0 %v4351_v52  ;;  %v4218_v42 = vld [vmem:[%s5227_s9 + $0x68] sm:$0xff]  }
 0xfce   :  { %v4911_v44 = vpack.c.bf16 %v4906_v27, %v4904_v43 }
 0xfd0   :  { %3979 = vmatpush3.bf16.msra.mxu0 %v4911_v44 }
 0xfd3   :  { %3981 = vmatmul.mubr.msk.bf16.vlgmr.msra.gmra.mxu0 %vm441_vm3, %v4324_v46 }
 0xfd4   :  { %3984 = vmatprep.mubr.msk.bf16.mxu0 %vm4352_vm2, %v4351_v52 }
 0xfdb   :  { %3985 = vmatmul.mubr.msk.bf16.gmra.mxu0 %vm441_vm3, %v4325_v48 }
 0xfdc   :  { %3988 = vmatprep.mubr.msk.bf16.mxu0 %vm4352_vm2, %v4351_v52 }
 0xfe3   :  { %3989 = vmatmul.mubr.msk.bf16.gmra.mxu0 %vm441_vm3, %v4326_v61 }
0x1093   :  { %v1997_v63 = vpop.f32.mrf.mxu0 }
0x1094   :  { %v1998_v13 = vadd.f32 %v1997_v63, %v4568_v29  ;;  %v4214_v29 = vld [vmem:[%s5227_s9 + $0x58] sm:$0xff]  }
0x1095   :  { %v3982_v53 = vpop.f32.mrf.mxu0  ;;  %4002 = vmatprep.subr.bf16.mxu0 %v4214_v29 }
0x1096   :  { %4003 = vmatpush3.bf16.msra.mxu0 %v4214_v29 }
0x1097   :  { %v2000_v20 = vpop.f32.mrf.mxu0 }
0x1098   :  { %v2001_v6 = vadd.f32 %v2000_v20, %v4570_v31  ;;  %v4327_v31 = vld [vmem:[%s5221_s3 + $0x8] ss:$0 sps:$4 sm:$0xff]  }
0x1099   :  { %v3983_v22 = vpop.f32.mrf.mxu0 }
0x109a   :  { %v2021_v17 = vmax.f32 %v2001_v6, 0.0 }
0x109b   :  { %v2005_v39 = vpop.f32.mrf.mxu0 }
0x109c   :  { %v2006_v55 = vadd.f32 %v2005_v39, %v4572_v33  ;;  %v4215_v33 = vld [vmem:[%s5227_s9 + $0x50] sm:$0xff]  }
0x109d   :  { %v3986_v60 = vpop.f32.mrf.mxu0  ;;  %4004 = vmatprep.subr.bf16.mxu0 %v4215_v33 }
0x109e   :  { %v2022_v15 = vmax.f32 %v2006_v55, 0.0  ;;  %4005 = vmatpush3.bf16.msra.mxu0 %v4215_v33 }
0x109f   :  { %v2008_v49 = vpop.f32.mrf.mxu0 }
0x10a0   :  { %v2009_v3 = vadd.f32 %v2008_v49, %v4574_v35  ;;  %v2020_v35 = vmax.f32 %v1998_v13, 0.0 }
0x10a1   :  { %v3987_v50 = vpop.f32.mrf.mxu0 }
0x10a2   :  { %v2023_v7 = vmax.f32 %v2009_v3, 0.0 }
0x10a3   :  { %v2013_v51 = vpop.f32.mrf.mxu0 }
0x10a4   :  { %v2014_v4 = vadd.f32 %v2013_v51, %v4576_v37  ;;  %v2027_v18 = vpack.c.bf16 %v2023_v7, %v2022_v15  ;;  %v2026_v37 = vpack.c.bf16 %v2021_v17, %v2020_v35 }
0x10a5   :  { %v3990_v2 = vpop.f32.mrf.mxu0 }
0x10a6   :  { %v2024_v11 = vmax.f32 %v2014_v4, 0.0 }
0x10a7   :  { %v2016_v5 = vpop.f32.mrf.mxu0 }
0x10a8   :  { %v2017_v45 = vadd.f32 %v2016_v5, %v4580_v41  ;;  %v4216_v41 = vld [vmem:[%s5228_s10 + $0x28] sm:$0xff]  }
0x10a9   :  { %v3991_v57 = vpop.f32.mrf.mxu0  ;;  %4018 = vmatprep.subr.bf16.mxu0 %v4216_v41 }
0x10aa   :  { %v2025_v19 = vmax.f32 %v2017_v45, 0.0 }
0x10ac   :  { %v2028_v16 = vpack.c.bf16 %v2025_v19, %v2024_v11 }
0x10ae   :  { %3992 = vmatprep.subr.bf16.mxu1 %v2028_v16 }
0x10af   :  { %3993 = vmatpush3.bf16.msra.mxu1 %v2028_v16 }
0x10b0   :  { %3994 = vmatprep.subr.bf16.mxu1 %v2027_v18 }
0x10b3   :  { %3995 = vmatpush3.bf16.msra.mxu1 %v2027_v18 }
0x10b4   :  { %3996 = vmatprep.subr.bf16.mxu1 %v2026_v37 }
0x10b7   :  { %3997 = vmatpush3.bf16.msra.mxu1 %v2026_v37 }
0x10b8   :  { %4010 = vmatprep.subr.bf16.mxu1 %v4218_v42 }
0x10ba   :  { %3999 = vmatmul.mubr.msk.bf16.vlgmr.msra.gmra.mxu1 %vm529_vm11, %v4327_v31 }
0x10bb   :  { %4011 = vmatpush3.bf16.msra.mxu1 %v4218_v42 }
0x10bc   :  { %4012 = vmatprep.subr.bf16.mxu1 %v4219_v10 }
0x10bf   :  { %4013 = vmatpush3.bf16.msra.mxu1 %v4219_v10 }
0x117a   :  { %v4000_v62 = vpop.f32.mrf.mxu1 }
0x117b   :  { %v2072_v25 = vadd.f32 %v4000_v62, %v4896_v30 }
0x117c   :  { %v2063_v23 = vpop.f32.mrf.mxu1 }
0x117d   :  { %v2064_v28 = vadd.f32 %v2063_v23, %v4904_v43  ;;  %v2078_v34 = vpack.c.bf16 %v2072_v25, %v2072_v25 }
0x117e   :  { %v4001_v24 = vpop.f32.mrf.mxu1 }
0x1180   :  { %v2066_v26 = vpop.f32.mrf.mxu1 }
0x1181   :  { %v2067_v21 = vadd.f32 %v2066_v26, %v4906_v27 }
0x1183   :  { %v2077_v32 = vpack.c.bf16 %v2067_v21, %v2064_v28 }
0x1185   :  { %4006 = vmatprep.mubr.msk.bf16.mxu0 %vm602_vm0, %v2077_v32 }
0x1186   :  { %4007 = vmatmul.mubr.msk.bf16.vlgmr.msra.gmra.mxu0 %vm602_vm0, %v2078_v34 }
0x1187   :  { %4019 = vmatpush3.bf16.msra.mxu0 %v4216_v41  ;;  %4022 = vmatprep.mubr.msk.bf16.mxu0 %vm602_vm0, %v4911_v44  ;;  %v4970_v44 = vld [vmem:[%s5226_s8 + $0x10] sm:$0xff] }
0x1188   :  { %4020 = vmatprep.subr.bf16.mxu0 %v4217_v36  ;;  %v2244_v20 = vrot.slane %v4970_v44, %v4628_v14 }
0x118b   :  { %4021 = vmatpush3.bf16.msra.mxu0 %v4217_v36 }
0x118e   :  { %4023 = vmatmul.mubr.msk.bf16.vlgmr.msra.gmra.mxu0 %vm602_vm0, %v4900_v40  ;;  %v2082_v40 = vrot.slane %v4970_v44, %v4618_v12 }
0x1246   :  { %v4008_v46 = vpop.f32.mrf.mxu0 }
0x1247   :  { %v2144_v61 = vadd.f32 %v4008_v46, %v2082_v40 }
0x1248   :  { %v2135_v48 = vpop.f32.mrf.mxu0 }
0x1249   :  { %v2136_v53 = vadd.f32 %v2135_v48, %v2082_v40  ;;  %v2151_v60 = vmax.f32 %v2144_v61, 0.0 }
0x124a   :  { %v4009_v63 = vpop.f32.mrf.mxu0 }
0x124b   :  { %v2149_v50 = vmax.f32 %v2136_v53, 0.0  ;;  %v2153_v55 = vpack.c.bf16 %v2151_v60, %v2151_v60 }
0x124c   :  { %v2138_v22 = vpop.f32.mrf.mxu0 }
0x124d   :  { %v2139_v39 = vadd.f32 %v2138_v22, %v2082_v40 }
0x124e   :  { %v4024_v49 = vpop.f32.mrf.mxu0 }
0x124f   :  { %v2150_v51 = vmax.f32 %v2139_v39, 0.0  ;;  %v2305_v2 = vadd.f32 %v4024_v49, %v2244_v20 }
0x1250   :  { %v2296_v3 = vpop.f32.mrf.mxu0 }
0x1251   :  { %v2152_v4 = vpack.c.bf16 %v2150_v51, %v2149_v50  ;;  %v4976_v5 = vpack.c.bf16 %v2305_v2, %v2305_v2  ;;  %v2297_v6 = vadd.f32 %v2296_v3, %v2244_v20 }
0x1252   :  { %v4025_v45 = vpop.f32.mrf.mxu0 }
0x1253   :  { %2316 = vrot.lane.b32.xlu1 %v4976_v5, %s4353_s22  ;;  %4014 = vmatprep.mubr.msk.bf16.mxu1 %vm602_vm0, %v2152_v4 }
0x1254   :  { %4015 = vmatmul.mubr.msk.bf16.vlgmr.msra.gmra.mxu1 %vm602_vm0, %v2153_v55  ;;  %v2299_v57 = vpop.f32.mrf.mxu0 }
0x1255   :  { %v2300_v7 = vadd.f32 %v2299_v57, %v2244_v20 }
0x1257   :  { %v4982_v11 = vpack.c.bf16 %v2300_v7, %v2297_v6 }
0x1259   :  { %2314 = vrot.lane.b32.xlu1 %v4982_v11, %s4353_s22  ;;  %4030 = vmatprep.mubr.msk.bf16.mxu1 %vm826_vm12, %v4982_v11 }
0x12c5   :  { %v2317_v19 = vpop.permute.xlu1 %2316 }
0x12c6   :  { %v2328_v13 = vsel %vm826_vm12, %v2317_v19, 0  ;;  %4158 = vmatprep.subr.msk.bf16.mxu1 %vm826_vm12, %v2317_v19 }
0x12c7   :  { %4027 = vmatpush3.bf16.xpose.msra.mxu1 %v2328_v13 }
0x12cb   :  { %v2315_v15 = vpop.permute.xlu1 %2314 }
0x12cc   :  { %4159 = vmatprep.subr.msk.bf16.mxu1 %vm826_vm12, %v2315_v15  ;;  %v2325_v16 = vsel %vm826_vm12, %v2315_v15, 0 }
0x12cf   :  { %4029 = vmatpush3.bf16.xpose.msra.mxu1 %v2325_v16 }
0x12d6   :  { %4031 = vmatmul.mubr.msk.bf16.vlgmr.msra.gmra.mxu1 %vm826_vm12, %v4976_v5 }
0x1314   :  { %v4994_v17 = vpop.f32.mrf.mxu1 }
0x1316   :  { %v4996_v18 = vpop.f32.mrf.mxu1 }
0x1318   :  { %v4017_v35 = vpop.f32.mrf.mxu1 }
0x131a   :  { %v4998_v37 = vpop.f32.mrf.mxu1 }
0x1396   :  { %v4032_v31 = vpop.f32.mrf.mxu1 }
0x1397   :  { %v2373_v62 = vadd.f32 %v4032_v31, %v4672_v8 }
0x1398   :  { %v2364_v29 = vpop.f32.mrf.mxu1 }
0x1399   :  { %v2365_v33 = vadd.f32 %v2364_v29, %v4668_v1  ;;  %v2384_v28 = vsel %vm441_vm3, %v2373_v62, -inf }
0x139a   :  { %v4033_v41 = vpop.f32.mrf.mxu1 }
0x139b   :  { %v2378_v23 = vsel %vm441_vm3, %v2365_v33, -inf  ;;  %v3561_v41 = vld [vmem:[%s5227_s9 + $0x70] sm:$0xf] }
0x139c   :  { %v2367_v24 = vpop.f32.mrf.mxu1  ;;  %2379 = vmax.xlane.f32.xlu0 %v2378_v23 }
0x139d   :  { %v2368_v25 = vadd.f32 %v2367_v24, %v4674_v9 }
0x139f   :  { %v2381_v26 = vsel %vm441_vm3, %v2368_v25, -inf }
0x13a0   :  { %2382 = vmax.xlane.f32.xlu1 %v2381_v26  ;;  %2385 = vmax.xlane.f32.xlu0 %v2384_v28 }
0x1425   :  { %v2380_v21 = vpop.xlane.xlu0 %2379 }
0x1426   :  { %v2387_v32 = vsub.f32 %v2365_v33, %v2380_v21 }
0x1428   :  { %v2390_v34 = vmul.f32 1.442695, %v2387_v32 }
0x1429   :  { %v2383_v36 = vpop.xlane.xlu1 %2382  ;;  %v2386_v42 = vpop.xlane.xlu0 %2385 }
0x142a   :  { %4274 = vpow2.f32 %v2390_v34  ;;  %v2388_v10 = vsub.f32 %v2368_v25, %v2383_v36  ;;  %v2389_v40 = vsub.f32 %v2373_v62, %v2386_v42  ;;  %v2708_v62 = vsel %vm451_vm15, %v3561_v41, 0 }
0x142c   :  { %v2392_v46 = vmul.f32 1.442695, %v2388_v10  ;;  %v2394_v48 = vmul.f32 1.442695, %v2389_v40 }
0x142e   :  { %4276 = vpow2.f32 %v2392_v46 }
0x142f   :  { %4278 = vpow2.f32 %v2394_v48 }
0x1437   :  { %v4275_v61 = vpop.eup %4274 }
0x1438   :  { %v2396_v63 = vsel %vm441_vm3, %v4275_v61, 0.0 }
0x1439   :  { %2397 = vadd.xlane.f32.xlu0 %v2396_v63 }
0x143b   :  { %v4277_v53 = vpop.eup %4276 }
0x143c   :  { %v4279_v20 = vpop.eup %4278  ;;  %v2399_v22 = vsel %vm441_vm3, %v4277_v53, 0.0 }
0x143d   :  { %2400 = vadd.xlane.f32.xlu0 %v2399_v22  ;;  %v2402_v39 = vsel %vm441_vm3, %v4279_v20, 0.0 }
0x143e   :  { %2403 = vadd.xlane.f32.xlu1 %v2402_v39 }
0x144f   :  { %2413 = vrot.lane.b32.xlu1 %v4982_v11, %s4356_s6 }
0x1453   :  { %2483 = vrot.lane.b32.xlu1 %v4976_v5, %s4358_s30  ;;  %2415 = vrot.lane.b32.xlu0 %v4976_v5, %s4356_s6 }
0x1457   :  { %2481 = vrot.lane.b32.xlu1 %v4982_v11, %s4358_s30  ;;  %2477 = vrot.lane.b32.xlu0 %v4982_v11, %s4357_s29 }
0x145b   :  { %2479 = vrot.lane.b32.xlu1 %v4976_v5, %s4357_s29 }
0x14c2   :  { %v2398_v60 = vpop.xlane.xlu0 %2397 }
0x14c3   :  { %4280 = vrcp.f32 %v2398_v60 }
0x14c6   :  { %v2401_v49 = vpop.xlane.xlu0 %2400 }
0x14c7   :  { %v2404_v50 = vpop.xlane.xlu1 %2403  ;;  %4282 = vrcp.f32 %v2401_v49 }
0x14c8   :  { %4284 = vrcp.f32 %v2404_v50 }
0x14ca   :  { %v2416_v51 = vpop.permute.xlu0 %2415 }
0x14cb   :  { %v2414_v2 = vpop.permute.xlu1 %2413  ;;  %v2425_v3 = vsel %vm451_vm15, %v2416_v51, 0  ;;  %4160 = vmatprep.subr.msk.bf16.mxu0 %vm451_vm15, %v2416_v51 }
0x14cc   :  { %4035 = vmatpush3.bf16.msra.mxu0 %v2425_v3 }
0x14cd   :  { %4036 = vmatprep.subr.bf16.mxu0 %v2414_v2 }
0x14ce   :  { %v2478_v35 = vpop.permute.xlu0 %2477 }
0x14cf   :  { %v2484_v4 = vpop.permute.xlu1 %2483 }
0x14d0   :  { %4037 = vmatpush3.bf16.msra.mxu0 %v2414_v2  ;;  %v4281_v55 = vpop.eup %4280  ;;  %v2495_v16 = vsel %vm826_vm12, %v2484_v4, 0 }
0x14d1   :  { %4161 = vmatprep.subr.msk.bf16.mxu0 %vm826_vm12, %v2484_v4  ;;  %v2408_v6 = vmul.f32 %v4281_v55, %v4275_v61 }
0x14d3   :  { %v2482_v31 = vpop.permute.xlu1 %2481 }
0x14d4   :  { %v4283_v45 = vpop.eup %4282  ;;  %v2492_v29 = vsel %vm826_vm12, %v2482_v31, 0 }
0x14d5   :  { %v4285_v57 = vpop.eup %4284  ;;  %v2409_v7 = vmul.f32 %v4283_v45, %v4277_v53 }
0x14d6   :  { %v2410_v19 = vmul.f32 %v4285_v57, %v4279_v20 }
0x14d7   :  { %v2411_v13 = vpack.c.bf16 %v2409_v7, %v2408_v6  ;;  %v2480_v33 = vpop.permute.xlu1 %2479 }
0x14d8   :  { %v2412_v15 = vpack.c.bf16 %v2410_v19, %v2410_v19 }
0x14d9   :  { %4038 = vmatprep.mubr.msk.bf16.mxu0 %vm441_vm3, %v2411_v13 }
0x14da   :  { %4039 = vmatmul.mubr.msk.bf16.vlgmr.msra.gmra.mxu0 %vm441_vm3, %v2412_v15 }
0x14db   :  { %4043 = vmatpush3.bf16.xpose.msra.mxu0 %v2495_v16  ;;  %4046 = vmatprep.mubr.msk.bf16.mxu0 %vm826_vm12, %v2478_v35 }
0x14dc   :  { %4162 = vmatprep.subr.msk.bf16.mxu0 %vm826_vm12, %v2482_v31 }
0x14e3   :  { %4045 = vmatpush3.bf16.xpose.msra.mxu0 %v2492_v29 }
0x14e4   :  { %4165 = vmatprep.subr.msk.bf16.mxu0 %vm451_vm15, %v3561_v41  ;;  %v3562_v41 = vld [vmem:[%s5227_s9 + $0x74] sm:$0xf] }
0x14ea   :  { %4047 = vmatmul.mubr.msk.bf16.vlgmr.msra.gmra.mxu0 %vm826_vm12, %v2480_v33 }
0x14eb   :  { %4065 = vmatpush3.bf16.msra.mxu0 %v2708_v62 }
0x159a   :  { %v4040_v23 = vpop.f32.mrf.mxu0 }
0x159b   :  { %v2476_v21 = vpack.c.bf16 %v4040_v23, %v4040_v23 }
0x159c   :  { %v2461_v24 = vpop.f32.mrf.mxu0 }
0x159e   :  { %v4041_v25 = vpop.f32.mrf.mxu0 }
0x15a0   :  { %v2464_v26 = vpop.f32.mrf.mxu0 }
0x15a1   :  { %v2475_v28 = vpack.c.bf16 %v2464_v26, %v2461_v24 }
0x15a3   :  { %4066 = vmatprep.mubr.msk.bf16.mxu0 %vm826_vm12, %v2475_v28 }
0x15a4   :  { %4067 = vmatmul.mubr.msk.bf16.vlgmr.msra.gmra.mxu0 %vm826_vm12, %v2476_v21 }
0x15aa   :  { %v4048_v32 = vpop.f32.mrf.mxu0 }
0x15ab   :  { %v2540_v10 = vadd.f32 %v4048_v32, %v4672_v8 }
0x15ac   :  { %v2531_v34 = vpop.f32.mrf.mxu0 }
0x15ad   :  { %v2532_v36 = vadd.f32 %v2531_v34, %v4668_v1  ;;  %v2551_v63 = vsel %vm441_vm3, %v2540_v10, -inf  ;;  %v2651_v34 = vsel %vm451_vm15, %v3562_v41, 0 }
0x15ae   :  { %v4049_v42 = vpop.f32.mrf.mxu0 }
0x15af   :  { %v2545_v40 = vsel %vm441_vm3, %v2532_v36, -inf }
0x15b0   :  { %v2534_v46 = vpop.f32.mrf.mxu0  ;;  %2546 = vmax.xlane.f32.xlu0 %v2545_v40 }
0x15b1   :  { %v2535_v48 = vadd.f32 %v2534_v46, %v4674_v9 }
0x15b3   :  { %v2548_v61 = vsel %vm441_vm3, %v2535_v48, -inf }
0x15b4   :  { %2549 = vmax.xlane.f32.xlu1 %v2548_v61  ;;  %2552 = vmax.xlane.f32.xlu0 %v2551_v63 }
0x1639   :  { %v2547_v53 = vpop.xlane.xlu0 %2546 }
0x163a   :  { %v2554_v20 = vsub.f32 %v2532_v36, %v2547_v53 }
0x163c   :  { %v2557_v22 = vmul.f32 1.442695, %v2554_v20 }
0x163d   :  { %v2550_v39 = vpop.xlane.xlu1 %2549  ;;  %v2553_v60 = vpop.xlane.xlu0 %2552 }
0x163e   :  { %4286 = vpow2.f32 %v2557_v22  ;;  %v2555_v49 = vsub.f32 %v2535_v48, %v2550_v39  ;;  %v2556_v50 = vsub.f32 %v2540_v10, %v2553_v60 }
0x1640   :  { %v2559_v51 = vmul.f32 1.442695, %v2555_v49  ;;  %v2561_v2 = vmul.f32 1.442695, %v2556_v50 }
0x1642   :  { %4288 = vpow2.f32 %v2559_v51 }
0x1643   :  { %4290 = vpow2.f32 %v2561_v2 }
0x164b   :  { %v4287_v3 = vpop.eup %4286 }
0x164c   :  { %v2563_v4 = vsel %vm441_vm3, %v4287_v3, 0.0 }
0x164d   :  { %2564 = vadd.xlane.f32.xlu0 %v2563_v4 }
0x164f   :  { %v4289_v55 = vpop.eup %4288 }
0x1650   :  { %v4291_v45 = vpop.eup %4290  ;;  %v2566_v57 = vsel %vm441_vm3, %v4289_v55, 0.0 }
0x1651   :  { %2567 = vadd.xlane.f32.xlu0 %v2566_v57  ;;  %v2569_v6 = vsel %vm441_vm3, %v4291_v45, 0.0 }
0x1652   :  { %2570 = vadd.xlane.f32.xlu1 %v2569_v6 }
0x1663   :  { %2580 = vrot.lane.b32.xlu1 %v4982_v11, %s4359_s13 }
0x1664   :  { %v5049_v7 = vpop.f32.mrf.mxu0 }
0x1666   :  { %v5051_v19 = vpop.f32.mrf.mxu0 }
0x1667   :  { %2764 = vrot.lane.b32.xlu1 %v4976_v5, %s4360_s14  ;;  %2582 = vrot.lane.b32.xlu0 %v4976_v5, %s4359_s13 }
0x1668   :  { %v4069_v13 = vpop.f32.mrf.mxu0 }
0x166b   :  { %2762 = vrot.lane.b32.xlu1 %v4982_v11, %s4360_s14  ;;  %2758 = vrot.lane.b32.xlu0 %v4982_v11, %s4361_s15 }
0x166f   :  { %2760 = vrot.lane.b32.xlu1 %v4976_v5, %s4361_s15  ;;  %2991 = vrot.lane.b32.xlu0 %v4976_v5, %s4362_s16 }
0x1673   :  { %2989 = vrot.lane.b32.xlu1 %v4982_v11, %s4362_s16  ;;  %2985 = vrot.lane.b32.xlu0 %v4982_v11, %s4363_s0 }
0x1677   :  { %2987 = vrot.lane.b32.xlu1 %v4976_v5, %s4363_s0 }
0x16d6   :  { %v2565_v15 = vpop.xlane.xlu0 %2564 }
0x16d7   :  { %4292 = vrcp.f32 %v2565_v15 }
0x16da   :  { %v2568_v16 = vpop.xlane.xlu0 %2567 }
0x16db   :  { %v2571_v35 = vpop.xlane.xlu1 %2570  ;;  %4294 = vrcp.f32 %v2568_v16 }
0x16dc   :  { %4296 = vrcp.f32 %v2571_v35 }
0x16de   :  { %v2583_v31 = vpop.permute.xlu0 %2582 }
0x16df   :  { %v2592_v29 = vsel %vm451_vm15, %v2583_v31, 0  ;;  %4163 = vmatprep.subr.msk.bf16.mxu1 %vm451_vm15, %v2583_v31  ;;  %v2581_v33 = vpop.permute.xlu1 %2580 }
0x16e0   :  { %4051 = vmatpush3.bf16.msra.mxu1 %v2592_v29 }
0x16e1   :  { %4052 = vmatprep.subr.bf16.mxu1 %v2581_v33 }
0x16e2   :  { %v2759_v53 = vpop.permute.xlu0 %2758 }
0x16e3   :  { %v2765_v36 = vpop.permute.xlu1 %2764 }
0x16e4   :  { %4053 = vmatpush3.bf16.msra.mxu1 %v2581_v33  ;;  %v4293_v62 = vpop.eup %4292  ;;  %v2776_v63 = vsel %vm826_vm12, %v2765_v36, 0 }
0x16e5   :  { %4164 = vmatprep.subr.msk.bf16.mxu1 %vm451_vm15, %v3562_v41  ;;  %v2575_v25 = vmul.f32 %v4293_v62, %v4287_v3 }
0x16e6   :  { %v2992_v39 = vpop.permute.xlu0 %2991 }
0x16e7   :  { %v2763_v20 = vpop.permute.xlu1 %2762  ;;  %v3003_v49 = vsel %vm826_vm12, %v2992_v39, 0 }
0x16e8   :  { %v4295_v23 = vpop.eup %4294  ;;  %v2773_v22 = vsel %vm826_vm12, %v2763_v20, 0 }
0x16e9   :  { %v4297_v24 = vpop.eup %4296  ;;  %v2576_v26 = vmul.f32 %v4295_v23, %v4289_v55 }
0x16ea   :  { %v2577_v28 = vmul.f32 %v4297_v24, %v4291_v45  ;;  %v2986_v50 = vpop.permute.xlu0 %2985 }
0x16eb   :  { %v2578_v21 = vpack.c.bf16 %v2576_v26, %v2575_v25  ;;  %v2761_v60 = vpop.permute.xlu1 %2760 }
0x16ec   :  { %v2579_v32 = vpack.c.bf16 %v2577_v28, %v2577_v28 }
0x16ed   :  { %4054 = vmatprep.mubr.msk.bf16.mxu1 %vm441_vm3, %v2578_v21 }
0x16ee   :  { %4055 = vmatmul.mubr.msk.bf16.vlgmr.msra.gmra.mxu1 %vm441_vm3, %v2579_v32 }
0x16ef   :  { %4059 = vmatpush3.bf16.msra.mxu1 %v2651_v34  ;;  %v2990_v51 = vpop.permute.xlu1 %2989 }
0x16f0   :  { %4166 = vmatprep.subr.msk.bf16.mxu1 %vm826_vm12, %v2765_v36  ;;  %v3000_v2 = vsel %vm826_vm12, %v2990_v51, 0 }
0x16f3   :  { %v2988_v3 = vpop.permute.xlu1 %2987 }
0x17ae   :  { %v4056_v42 = vpop.f32.mrf.mxu1 }
0x17af   :  { %v2643_v61 = vpack.c.bf16 %v4056_v42, %v4056_v42 }
0x17b0   :  { %v2628_v10 = vpop.f32.mrf.mxu1 }
0x17b2   :  { %v4057_v40 = vpop.f32.mrf.mxu1 }
0x17b4   :  { %v2631_v46 = vpop.f32.mrf.mxu1 }
0x17b5   :  { %v2642_v48 = vpack.c.bf16 %v2631_v46, %v2628_v10 }
0x17b7   :  { %4060 = vmatprep.mubr.msk.bf16.mxu1 %vm826_vm12, %v2642_v48 }
0x17b8   :  { %4061 = vmatmul.mubr.msk.bf16.vlgmr.msra.gmra.mxu1 %vm826_vm12, %v2643_v61 }
0x17b9   :  { %4071 = vmatpush3.bf16.xpose.msra.mxu1 %v2776_v63  ;;  %4074 = vmatprep.mubr.msk.bf16.mxu1 %vm826_vm12, %v2759_v53 }
0x17ba   :  { %4167 = vmatprep.subr.msk.bf16.mxu1 %vm826_vm12, %v2763_v20 }
0x17c1   :  { %4073 = vmatpush3.bf16.xpose.msra.mxu1 %v2773_v22 }
0x17c2   :  { %4170 = vmatprep.subr.msk.bf16.mxu1 %vm826_vm12, %v2992_v39 }
0x17c8   :  { %4075 = vmatmul.mubr.msk.bf16.vlgmr.msra.gmra.mxu1 %vm826_vm12, %v2761_v60 }
0x17c9   :  { %4093 = vmatpush3.bf16.xpose.msra.mxu1 %v3003_v49  ;;  %4096 = vmatprep.mubr.msk.bf16.mxu1 %vm826_vm12, %v2986_v50 }
0x17ca   :  { %4171 = vmatprep.subr.msk.bf16.mxu1 %vm826_vm12, %v2990_v51 }
0x17d1   :  { %4095 = vmatpush3.bf16.xpose.msra.mxu1 %v3000_v2 }
0x17d8   :  { %4097 = vmatmul.mubr.msk.bf16.vlgmr.msra.gmra.mxu1 %vm826_vm12, %v2988_v3 }
0x1878   :  { %v5094_v4 = vpop.f32.mrf.mxu1 }
0x187a   :  { %v5096_v55 = vpop.f32.mrf.mxu1 }
0x187c   :  { %v4063_v45 = vpop.f32.mrf.mxu1 }
0x187e   :  { %v5098_v57 = vpop.f32.mrf.mxu1 }
0x1888   :  { %v4076_v6 = vpop.f32.mrf.mxu1 }
0x1889   :  { %v2821_v35 = vadd.f32 %v4076_v6, %v4672_v8 }
0x188a   :  { %v2812_v13 = vpop.f32.mrf.mxu1 }
0x188b   :  { %v2813_v15 = vadd.f32 %v2812_v13, %v4668_v1  ;;  %v2832_v62 = vsel %vm441_vm3, %v2821_v35, -inf }
0x188c   :  { %v4077_v16 = vpop.f32.mrf.mxu1 }
0x188d   :  { %v2826_v31 = vsel %vm441_vm3, %v2813_v15, -inf }
0x188e   :  { %v2815_v29 = vpop.f32.mrf.mxu1  ;;  %2827 = vmax.xlane.f32.xlu0 %v2826_v31 }
0x188f   :  { %v2816_v33 = vadd.f32 %v2815_v29, %v4674_v9 }
0x1891   :  { %v2829_v41 = vsel %vm441_vm3, %v2816_v33, -inf }
0x1892   :  { %2830 = vmax.xlane.f32.xlu1 %v2829_v41  ;;  %2833 = vmax.xlane.f32.xlu0 %v2832_v62 }
0x1898   :  { %v4098_v23 = vpop.f32.mrf.mxu1 }
0x1899   :  { %v3048_v49 = vadd.f32 %v4098_v23, %v4672_v8 }
0x189a   :  { %v3039_v24 = vpop.f32.mrf.mxu1 }
0x189b   :  { %v3040_v60 = vadd.f32 %v3039_v24, %v4668_v1  ;;  %v3059_v2 = vsel %vm441_vm3, %v3048_v49, -inf }
0x189c   :  { %v4099_v25 = vpop.f32.mrf.mxu1 }
0x189d   :  { %v3053_v51 = vsel %vm441_vm3, %v3040_v60, -inf }
0x189e   :  { %v3042_v22 = vpop.f32.mrf.mxu1 }
0x189f   :  { %v3043_v39 = vadd.f32 %v3042_v22, %v4674_v9 }
0x18a1   :  { %v3056_v50 = vsel %vm441_vm3, %v3043_v39, -inf }
0x1917   :  { %v2828_v26 = vpop.xlane.xlu0 %2827 }
0x1918   :  { %v2835_v28 = vsub.f32 %v2813_v15, %v2828_v26 }
0x191a   :  { %v2838_v21 = vmul.f32 1.442695, %v2835_v28 }
0x191b   :  { %v2831_v32 = vpop.xlane.xlu1 %2830  ;;  %v2834_v34 = vpop.xlane.xlu0 %2833 }
0x191c   :  { %4298 = vpow2.f32 %v2838_v21  ;;  %v2836_v36 = vsub.f32 %v2816_v33, %v2831_v32  ;;  %v2837_v42 = vsub.f32 %v2821_v35, %v2834_v34 }
0x191e   :  { %v2840_v10 = vmul.f32 1.442695, %v2836_v36  ;;  %v2842_v40 = vmul.f32 1.442695, %v2837_v42 }
0x1920   :  { %4300 = vpow2.f32 %v2840_v10 }
0x1921   :  { %4302 = vpow2.f32 %v2842_v40 }
0x1929   :  { %v4299_v46 = vpop.eup %4298 }
0x192a   :  { %v2844_v48 = vsel %vm441_vm3, %v4299_v46, 0.0 }
0x192b   :  { %2845 = vadd.xlane.f32.xlu0 %v2844_v48 }
0x192d   :  { %v4301_v61 = vpop.eup %4300 }
0x192e   :  { %v4303_v63 = vpop.eup %4302  ;;  %v2847_v53 = vsel %vm441_vm3, %v4301_v61, 0.0 }
0x192f   :  { %2848 = vadd.xlane.f32.xlu0 %v2847_v53  ;;  %v2850_v20 = vsel %vm441_vm3, %v4303_v63, 0.0  ;;  %v2747_v53 = vpop.f32.mrf.mxu0 }
0x1930   :  { %2851 = vadd.xlane.f32.xlu1 %v2850_v20 }
0x1941   :  { %2861 = vrot.lane.b32.xlu1 %v4982_v11, %s4364_s19 }
0x1945   :  { %2863 = vrot.lane.b32.xlu0 %v4976_v5, %s4364_s19 }
0x1964   :  { %3057 = vmax.xlane.f32.xlu0 %v3056_v50 }
0x1965   :  { %3054 = vmax.xlane.f32.xlu1 %v3053_v51 }
0x1968   :  { %3060 = vmax.xlane.f32.xlu0 %v3059_v2 }
0x19b4   :  { %v2846_v3 = vpop.xlane.xlu0 %2845 }
0x19b5   :  { %4304 = vrcp.f32 %v2846_v3 }
0x19b8   :  { %v2849_v45 = vpop.xlane.xlu0 %2848 }
0x19b9   :  { %v2852_v6 = vpop.xlane.xlu1 %2851  ;;  %4306 = vrcp.f32 %v2849_v45 }
0x19ba   :  { %4308 = vrcp.f32 %v2852_v6 }
0x19bc   :  { %v2864_v9 = vpop.permute.xlu0 %2863 }
0x19bd   :  { %v2873_v1 = vsel %vm451_vm15, %v2864_v9, 0  ;;  %4168 = vmatprep.subr.msk.bf16.mxu0 %vm451_vm15, %v2864_v9  ;;  %v2862_v8 = vpop.permute.xlu1 %2861 }
0x19be   :  { %4079 = vmatpush3.bf16.msra.mxu0 %v2873_v1 }
0x19bf   :  { %4080 = vmatprep.subr.bf16.mxu0 %v2862_v8 }
0x19c2   :  { %4081 = vmatpush3.bf16.msra.mxu0 %v2862_v8  ;;  %v4305_v13 = vpop.eup %4304 }
0x19c3   :  { %v2856_v35 = vmul.f32 %v4305_v13, %v4299_v46 }
0x19c6   :  { %v4307_v15 = vpop.eup %4306 }
0x19c7   :  { %v4309_v16 = vpop.eup %4308  ;;  %v2857_v31 = vmul.f32 %v4307_v15, %v4301_v61  ;;  %v3563_v61 = vld [vmem:[%s5227_s9 + $0x78] sm:$0xf] }
0x19c8   :  { %v2858_v29 = vmul.f32 %v4309_v16, %v4303_v63  ;;  %4169 = vmatprep.subr.msk.bf16.mxu0 %vm451_vm15, %v3563_v61  ;;  %v2932_v63 = vsel %vm451_vm15, %v3563_v61, 0  ;;  %v3215_v61 = vrot.slane %v4970_v44, %v4843_v47 }
0x19c9   :  { %v2859_v33 = vpack.c.bf16 %v2857_v31, %v2856_v35  ;;  %v3564_v31 = vld [vmem:[%s5227_s9 + $0x7c] sm:$0xf] }
0x19ca   :  { %v2860_v41 = vpack.c.bf16 %v2858_v29, %v2858_v29  ;;  %v3159_v29 = vsel %vm451_vm15, %v3564_v31, 0 }
0x19cb   :  { %4082 = vmatprep.mubr.msk.bf16.mxu0 %vm441_vm3, %v2859_v33  ;;  %v2753_v33 = vadd.f32 %v5049_v7, %v5094_v4  ;;  %v4220_v7 = vld [vmem:[%s5228_s10 + $0x38] sm:$0xff]  }
0x19cc   :  { %4083 = vmatmul.mubr.msk.bf16.vlgmr.msra.gmra.mxu0 %vm441_vm3, %v2860_v41  ;;  %4114 = vmatprep.subr.bf16.mxu1 %v4220_v7  ;;  %v4222_v4 = vld [vmem:[%s5227_s9 + $0x98] sm:$0xff]  }
0x19cd   :  { %4087 = vmatpush3.bf16.msra.mxu0 %v2932_v63  ;;  %4115 = vmatpush3.bf16.msra.mxu1 %v4220_v7 }
0x19ed   :  { %v3058_v62 = vpop.xlane.xlu0 %3057 }
0x19ee   :  { %v3055_v23 = vpop.xlane.xlu1 %3054  ;;  %v3063_v24 = vsub.f32 %v3043_v39, %v3058_v62  ;;  %v2745_v62 = vadd.f32 %v5051_v19, %v5096_v55  ;;  %v4221_v19 = vld [vmem:[%s5228_s10 + $0x30] sm:$0xff]   ;;  %v2157_v55 = vrot.slane %v4970_v44, %v4838_v54 }
0x19ef   :  { %v3062_v25 = vsub.f32 %v3040_v60, %v3055_v23  ;;  %4116 = vmatprep.subr.bf16.mxu1 %v4221_v19 }
0x19f0   :  { %v3067_v26 = vmul.f32 1.442695, %v3063_v24  ;;  %4117 = vmatpush3.bf16.msra.mxu1 %v4221_v19 }
0x19f1   :  { %v3061_v28 = vpop.xlane.xlu0 %3060  ;;  %v3065_v32 = vmul.f32 1.442695, %v3062_v25  ;;  %4134 = vmatprep.subr.bf16.mxu1 %v4351_v52 }
0x19f2   :  { %4310 = vpow2.f32 %v3067_v26  ;;  %v3064_v21 = vsub.f32 %v3048_v49, %v3061_v28  ;;  %v2748_v28 = vadd.f32 %v2747_v53, %v5098_v57  ;;  %v2219_v57 = vadd.f32 %v4994_v17, %v2157_v55 }
0x19f3   :  { %v3225_v17 = vrot.slane %v4970_v44, %v1733_v59 }
0x19f4   :  { %v3069_v34 = vmul.f32 1.442695, %v3064_v21  ;;  %v2226_v53 = vadd.f32 %v2219_v57, %v4896_v30 }
0x19f6   :  { %4312 = vpow2.f32 %v3069_v34 }
0x19f7   :  { %4314 = vpow2.f32 %v3065_v32 }
0x19ff   :  { %v4311_v36 = vpop.eup %4310 }
0x1a00   :  { %v3074_v42 = vsel %vm441_vm3, %v4311_v36, 0.0 }
0x1a01   :  { %3075 = vadd.xlane.f32.xlu0 %v3074_v42 }
0x1a03   :  { %v4313_v10 = vpop.eup %4312 }
0x1a04   :  { %v3077_v40 = vsel %vm441_vm3, %v4313_v10, 0.0  ;;  %v4315_v46 = vpop.eup %4314 }
0x1a05   :  { %3078 = vadd.xlane.f32.xlu1 %v3077_v40  ;;  %v3071_v48 = vsel %vm441_vm3, %v4315_v46, 0.0 }
0x1a09   :  { %3072 = vadd.xlane.f32.xlu1 %v3071_v48  ;;  %v2211_v48 = vadd.f32 %v4996_v18, %v2157_v55 }
0x1a17   :  { %3090 = vrot.lane.b32.xlu0 %v4976_v5, %s4365_s23 }
0x1a1a   :  { %3088 = vrot.lane.b32.xlu1 %v4982_v11, %s4365_s23 }
0x1a8a   :  { %v3076_v20 = vpop.xlane.xlu0 %3075 }
0x1a8c   :  { %v4084_v22 = vpop.f32.mrf.mxu0 }
0x1a8d   :  { %v2924_v45 = vpack.c.bf16 %v4084_v22, %v4084_v22 }
0x1a8e   :  { %v2909_v39 = vpop.f32.mrf.mxu0  ;;  %v3079_v60 = vpop.xlane.xlu1 %3078 }
0x1a8f   :  { %v3091_v49 = vpop.permute.xlu0 %3090  ;;  %4316 = vrcp.f32 %v3079_v60 }
0x1a90   :  { %4172 = vmatprep.subr.msk.bf16.mxu0 %vm451_vm15, %v3091_v49  ;;  %v4085_v50 = vpop.f32.mrf.mxu0  ;;  %4318 = vrcp.f32 %v3076_v20  ;;  %v3100_v5 = vsel %vm451_vm15, %v3091_v49, 0  ;;  %v2230_v20 = vrot.slane %v4970_v44, %v4482_v58  ;;  %v2214_v49 = vadd.f32 %v4998_v37, %v2157_v55 }
0x1a92   :  { %v2912_v51 = vpop.f32.mrf.mxu0  ;;  %v3073_v2 = vpop.xlane.xlu1 %3072 }
0x1a93   :  { %v2923_v3 = vpack.c.bf16 %v2912_v51, %v2909_v39  ;;  %4320 = vrcp.f32 %v3073_v2  ;;  %v2224_v39 = vadd.f32 %v2211_v48, %v4904_v43  ;;  %v2237_v51 = vrot.slane %v4970_v44, %v744_v0 }
0x1a95   :  { %4088 = vmatprep.mubr.msk.bf16.mxu0 %vm826_vm12, %v2923_v3  ;;  %v2233_v3 = vmul.f32 %v2230_v20, %v2226_v53  ;;  %v2231_v37 = vmul.f32 %v2230_v20, %v2224_v39 }
0x1a96   :  { %4089 = vmatmul.mubr.msk.bf16.vlgmr.msra.gmra.mxu0 %vm826_vm12, %v2924_v45  ;;  %v3089_v11 = vpop.permute.xlu1 %3088  ;;  %v3232_v45 = vrot.slane %v4970_v44, %v1740_v38 }
0x1a97   :  { %4101 = vmatpush3.bf16.msra.mxu0 %v3100_v5 }
0x1a98   :  { %4102 = vmatprep.subr.bf16.mxu0 %v3089_v11 }
0x1a9b   :  { %4103 = vmatpush3.bf16.msra.mxu0 %v3089_v11 }
0x1a9c   :  { %v4317_v6 = vpop.eup %4316  ;;  %4173 = vmatprep.subr.msk.bf16.mxu0 %vm451_vm15, %v3564_v31 }
0x1a9d   :  { %v4319_v9 = vpop.eup %4318  ;;  %v3085_v8 = vmul.f32 %v4317_v6, %v4313_v10  ;;  %v2225_v6 = vadd.f32 %v2214_v49, %v4906_v27 }
0x1a9e   :  { %v3084_v15 = vmul.f32 %v4319_v9, %v4311_v36 }
0x1a9f   :  { %v3087_v35 = vpack.c.bf16 %v3085_v8, %v3085_v8  ;;  %v2240_v8 = vadd.f32 %v2237_v51, %v2233_v3 }
0x1aa0   :  { %v4321_v1 = vpop.eup %4320 }
0x1aa1   :  { %v3083_v13 = vmul.f32 %v4321_v1, %v4315_v46 }
0x1aa3   :  { %v3086_v16 = vpack.c.bf16 %v3084_v15, %v3083_v13 }
0x1aa5   :  { %4104 = vmatprep.mubr.msk.bf16.mxu0 %vm441_vm3, %v3086_v16  ;;  %v2238_v16 = vadd.f32 %v2237_v51, %v2231_v37 }
0x1aa6   :  { %4105 = vmatmul.mubr.msk.bf16.vlgmr.msra.gmra.mxu0 %vm441_vm3, %v3087_v35  ;;  %v2232_v35 = vmul.f32 %v2230_v20, %v2225_v6 }
0x1aa7   :  { %4109 = vmatpush3.bf16.msra.mxu0 %v3159_v29 }
0x1aa8   :  { %4122 = vmatprep.subr.bf16.mxu0 %v4222_v4  ;;  %v2239_v29 = vadd.f32 %v2237_v51, %v2232_v35 }
0x1b56   :  { %v4090_v41 = vpop.f32.mrf.mxu0 }
0x1b57   :  { %v2984_v23 = vadd.f32 %v4090_v41, %v2753_v33 }
0x1b58   :  { %v2968_v24 = vpop.f32.mrf.mxu0 }
0x1b59   :  { %v2982_v25 = vadd.f32 %v2968_v24, %v2745_v62  ;;  %v4225_v24 = vld [vmem:[%s5227_s9 + $0x80] sm:$0xff]  }
0x1b5a   :  { %v4091_v26 = vpop.f32.mrf.mxu0 }
0x1b5c   :  { %v2971_v21 = vpop.f32.mrf.mxu0 }
0x1b5d   :  { %v2983_v32 = vadd.f32 %v2971_v21, %v2748_v28 }
0x1b66   :  { %v4106_v34 = vpop.f32.mrf.mxu0 }
0x1b67   :  { %v3151_v46 = vpack.c.bf16 %v4106_v34, %v4106_v34 }
0x1b68   :  { %v3136_v36 = vpop.f32.mrf.mxu0 }
0x1b6a   :  { %v4107_v42 = vpop.f32.mrf.mxu0 }
0x1b6c   :  { %v3139_v10 = vpop.f32.mrf.mxu0 }
0x1b6d   :  { %v3150_v40 = vpack.c.bf16 %v3139_v10, %v3136_v36 }
0x1b6f   :  { %4110 = vmatprep.mubr.msk.bf16.mxu0 %vm826_vm12, %v3150_v40 }
0x1b70   :  { %4111 = vmatmul.mubr.msk.bf16.vlgmr.msra.gmra.mxu0 %vm826_vm12, %v3151_v46 }
0x1b71   :  { %4123 = vmatpush3.bf16.msra.mxu0 %v4222_v4 }
0x1c30   :  { %v4112_v63 = vpop.f32.mrf.mxu0 }
0x1c31   :  { %v3211_v22 = vadd.f32 %v4112_v63, %v2984_v23 }
0x1c32   :  { %v3195_v60 = vpop.f32.mrf.mxu0 }
0x1c33   :  { %v3218_v50 = vadd.f32 %v3215_v61, %v3211_v22  ;;  %v3209_v18 = vadd.f32 %v3195_v60, %v2982_v25  ;;  %v3552_v25 = vld [vmem:[%s5226_s8 + $0x18] sm:$0x1f] }
0x1c34   :  { %v4113_v2 = vpop.f32.mrf.mxu0  ;;  %v3244_v26 = vrot.slane %v3552_v25, %v4618_v12  ;;  %v3319_v55 = vrot.slane %v3552_v25, %v4838_v54  ;;  %v3404_v48 = vrot.slane %v3552_v25, %v4628_v14  ;;  %v3411_v20 = vrot.slane %v3552_v25, %v4843_v47  ;;  %v364_v47 = vld [vmem:[%s5222_s4] sm:$0x1] }
0x1c35   :  { %v3221_v58 = vadd.f32 %v3218_v50, %v4896_v30  ;;  %v3216_v5 = vadd.f32 %v3215_v61, %v3209_v18 }
0x1c36   :  { %v3198_v11 = vpop.f32.mrf.mxu0 }
0x1c37   :  { %v3228_v9 = vmul.f32 %v3225_v17, %v3221_v58  ;;  %v3219_v59 = vadd.f32 %v3216_v5, %v4904_v43  ;;  %v3210_v1 = vadd.f32 %v3198_v11, %v2983_v32  ;;  %v4223_v43 = vld [vmem:[%s5227_s9 + $0x90] sm:$0xff]  }
0x1c38   :  { %4124 = vmatprep.subr.bf16.mxu0 %v4223_v43 }
0x1c39   :  { %v3235_v13 = vadd.f32 %v3232_v45, %v3228_v9  ;;  %v3226_v0 = vmul.f32 %v3225_v17, %v3219_v59  ;;  %v3217_v15 = vadd.f32 %v3215_v61, %v3210_v1  ;;  %4125 = vmatpush3.bf16.msra.mxu0 %v4223_v43 }
0x1c3b   :  { %v3238_v30 = vadd.f32 %v3235_v13, %v2240_v8  ;;  %v3233_v31 = vadd.f32 %v3232_v45, %v3226_v0  ;;  %v3220_v56 = vadd.f32 %v3217_v15, %v4906_v27  ;;  %v4224_v27 = vld [vmem:[%s5227_s9 + $0x88] sm:$0xff]  }
0x1c3c   :  { %4126 = vmatprep.subr.bf16.mxu0 %v4224_v27 }
0x1c3d   :  { %v3227_v38 = vmul.f32 %v3225_v17, %v3220_v56  ;;  %v3236_v44 = vadd.f32 %v3233_v31, %v2238_v16  ;;  %v3240_v23 = vpack.c.bf16 %v3238_v30, %v3238_v30  ;;  %4127 = vmatpush3.bf16.msra.mxu0 %v4224_v27 }
0x1c3e   :  { %4128 = vmatprep.subr.bf16.mxu0 %v4225_v24 }
0x1c3f   :  { %v3234_v33 = vadd.f32 %v3232_v45, %v3227_v38 }
0x1c41   :  { %v3237_v41 = vadd.f32 %v3234_v33, %v2239_v29  ;;  %4129 = vmatpush3.bf16.msra.mxu0 %v4225_v24 }
0x1c43   :  { %v3239_v62 = vpack.c.bf16 %v3237_v41, %v3236_v44 }
0x1c45   :  { %4118 = vmatprep.mubr.msk.bf16.mxu1 %vm602_vm0, %v3239_v62 }
0x1c46   :  { %4119 = vmatmul.mubr.msk.bf16.vlgmr.msra.gmra.mxu1 %vm602_vm0, %v3240_v23 }
0x1c47   :  { %4138 = vmatprep.mubr.msk.bf16.mxu1 %vm4352_vm2, %v4351_v52  ;;  %vm3463_vm2 = vcmask 254976  }
0x1d06   :  { %v4120_v28 = vpop.f32.mrf.mxu1 }
0x1d07   :  { %v3306_v32 = vadd.f32 %v4120_v28, %v3244_v26 }
0x1d08   :  { %v3297_v21 = vpop.f32.mrf.mxu1 }
0x1d09   :  { %v3298_v36 = vadd.f32 %v3297_v21, %v3244_v26  ;;  %v3313_v40 = vmax.f32 %v3306_v32, 0.0 }
0x1d0a   :  { %v4121_v34 = vpop.f32.mrf.mxu1 }
0x1d0b   :  { %v3311_v46 = vmax.f32 %v3298_v36, 0.0  ;;  %v3315_v4 = vpack.c.bf16 %v3313_v40, %v3313_v40 }
0x1d0c   :  { %v3300_v42 = vpop.f32.mrf.mxu1 }
0x1d0d   :  { %v3301_v10 = vadd.f32 %v3300_v42, %v3244_v26 }
0x1d0f   :  { %v3312_v7 = vmax.f32 %v3301_v10, 0.0 }
0x1d11   :  { %v3314_v19 = vpack.c.bf16 %v3312_v7, %v3311_v46 }
0x1d13   :  { %4130 = vmatprep.mubr.msk.bf16.mxu0 %vm1853_vm4, %v3314_v19 }
0x1d14   :  { %4131 = vmatmul.mubr.msk.bf16.vlgmr.msra.gmra.mxu0 %vm1853_vm4, %v3315_v4 }
0x1dd4   :  { %v4132_v57 = vpop.f32.mrf.mxu0 }
0x1dd5   :  { %v3393_v12 = vadd.f32 %v4132_v57, %v3319_v55 }
0x1dd6   :  { %v3384_v61 = vpop.f32.mrf.mxu0 }
0x1dd7   :  { %v3400_v63 = vadd.f32 %v3393_v12, %v3238_v30  ;;  %v3385_v53 = vadd.f32 %v3384_v61, %v3319_v55 }
0x1dd8   :  { %v4133_v22 = vpop.f32.mrf.mxu0 }
0x1dd9   :  { %v3407_v39 = vmul.f32 %v3404_v48, %v3400_v63  ;;  %v3398_v60 = vadd.f32 %v3385_v53, %v3236_v44 }
0x1dda   :  { %v3387_v49 = vpop.f32.mrf.mxu0 }
0x1ddb   :  { %v3388_v50 = vadd.f32 %v3387_v49, %v3319_v55  ;;  %v3414_v17 = vadd.f32 %v3411_v20, %v3407_v39  ;;  %v3405_v18 = vmul.f32 %v3404_v48, %v3398_v60 }
0x1ddd   :  { %v3399_v51 = vadd.f32 %v3388_v50, %v3237_v41  ;;  %v3416_v2 = vpack.c.bf16 %v3414_v17, %v3414_v17  ;;  %v3412_v58 = vadd.f32 %v3411_v20, %v3405_v18 }
0x1ddf   :  { %v3406_v3 = vmul.f32 %v3404_v48, %v3399_v51  ;;  %v3421_v54 = vsel %vm451_vm15, %v3416_v2, 0 }
0x1de0   :  { %4135 = vmatpush3.bf16.msra.mxu1 %v3421_v54 }
0x1de1   :  { %v3413_v14 = vadd.f32 %v3411_v20, %v3406_v3  ;;  %4136 = vmatprep.subr.bf16.mxu1 %v4351_v52 }
0x1de3   :  { %v3415_v45 = vpack.c.bf16 %v3413_v14, %v3412_v58 }
0x1de5   :  { %4137 = vmatpush3.bf16.msra.mxu1 %v3415_v45 }
0x1de8   :  { %4139 = vmatmul.mubr.msk.bf16.vlgmr.msra.gmra.mxu1 %vm441_vm3, %v364_v47 }
0x1ea8   :  { %v3457_v5 = vpop.f32.mrf.mxu1 }
0x1ea9   :  { %3464 = vst.msk [vmem:[#allocation2] sm:$0x3] %vm3463_vm2, %v3457_v5 }
0x1eaa   :  { %v4140_v37 = vpop.f32.mrf.mxu1 }
0x1eab   :  { %4339 = shalt.err (!%p4336_p4)
}
0x1eac   :  { %3474 = dma.vmem_to_hbm [thread:$0]  %s3472_s12, 32, %s5229_s11, [#allocation3]   ;;  %v3460_v52 = vpop.f32.mrf.mxu1 }
0x1eae   :  { %v4141_v11 = vpop.f32.mrf.mxu1 }
0x1eaf   :  { %4348 = dma.done.wait [#allocation3], 32  }
0x1eb0   :  { %4349 = vsyncadd [#allocation3], 4294967264 }
0x1eb1   :  { %3478 = vsyncpa [#allocation3], 1 }

</bundles_post_ra>
